<compile_context>
chip_gen: v7x
topology: tpu7x:2x2x1
jax: 0.10.0
libtpu: 0.0.40
codegen_flags: <defaults>
</compile_context>

<pallas_src>
import functools
import math

import jax
import jax.numpy as jnp
from jax.experimental import pallas as pl
from jax.experimental.pallas import tpu as pltpu

_NEG = -1e30      # finite "-inf": NaN-safe softmax even for an all-masked row
_LN_EPS = 1e-5


# --------------------------------------------------------------------------- tiling helpers

def _row_cap():
    """Row-tile cap: larger on 128-MiB-VMEM chips (v5e/v6e), conservative otherwise."""
    try:
        info = pltpu.get_tpu_info()
        vmem = getattr(info, "vmem_capacity_bytes", 64 << 20)
        return 1024 if vmem >= (100 << 20) else 512
    except Exception:
        return 512


def _row_plan(m, cap):
    """(tile, padded_rows): largest pow-2 divisor of m up to cap, else pad m up to a tile."""
    if m <= 16:
        return m, m
    for t in (2048, 1024, 512, 256, 128, 64, 32, 16):
        if t <= cap and m % t == 0:
            return t, m
    t = 16
    while t * 2 <= min(cap, m):
        t *= 2
    return t, -(-m // t) * t


def _batch_tile(b, cap=8):
    """Batch tile for the fused layer kernel: prefer >=2 grid steps (pipelining/megacore)."""
    bt = 1
    for c in (2, 4, 8):
        if c <= cap and b % c == 0 and b // c >= 2:
            bt = c
    return bt


# --------------------------------------------------------------------------- matmul kernels

def _conv_bn_relu_kernel(x_ref, w_ref, s_ref, t_ref, o_ref):
    # bf16 MXU operands (cast in VMEM, no extra HBM pass), f32 accumulate + BN/ReLU epilogue.
    acc = jnp.dot(x_ref[...].astype(jnp.bfloat16), w_ref[...],
                  preferred_element_type=jnp.float32)
    o_ref[...] = jnp.maximum(acc * s_ref[...] + t_ref[...], 0.0).astype(o_ref.dtype)


def pallas_conv1x1_bn_relu(x, w_bf16, scale, shift):
    """(M, 2048) pixels @ (2048, E) 1x1-conv weight, fused BatchNorm(eval)+ReLU, bf16 out."""
    M, K = x.shape
    N = w_bf16.shape[1]
    tm, Mp = _row_plan(M, _row_cap())
    if Mp != M:
        x = jnp.pad(x, ((0, Mp - M), (0, 0)))
    out = pl.pallas_call(
        _conv_bn_relu_kernel,
        out_shape=jax.ShapeDtypeStruct((Mp, N), jnp.bfloat16),
        grid=(Mp // tm,),
        in_specs=[
            pl.BlockSpec((tm, K), lambda i: (i, 0)),
            pl.BlockSpec((K, N), lambda i: (0, 0)),
            pl.BlockSpec((1, N), lambda i: (0, 0)),
            pl.BlockSpec((1, N), lambda i: (0, 0)),
        ],
        out_specs=pl.BlockSpec((tm, N), lambda i: (i, 0)),
        compiler_params=pltpu.CompilerParams(dimension_semantics=("parallel",)),
    )(x, w_bf16, scale, shift)
    return out[:M] if Mp != M else out


def _matmul_kernel(x_ref, w_ref, o_ref):
    o_ref[...] = jnp.dot(x_ref[...].astype(jnp.bfloat16), w_ref[...],
                         preferred_element_type=jnp.float32)


def pallas_matmul(x, w_bf16, tn_cap=1024):
    """(M, K) f32 @ (K, N) bf16 -> f32, tiled over rows AND the (128-aligned) N dim."""
    M, K = x.shape
    N = w_bf16.shape[1]
    tm, Mp = _row_plan(M, _row_cap())
    if Mp != M:
        x = jnp.pad(x, ((0, Mp - M), (0, 0)))
    tn = N
    for t in (2048, 1024, 512, 256, 128):
        if t <= tn_cap and N % t == 0:
            tn = t
            break
    out = pl.pallas_call(
        _matmul_kernel,
        out_shape=jax.ShapeDtypeStruct((Mp, N), jnp.float32),
        grid=(Mp // tm, N // tn),
        in_specs=[
            pl.BlockSpec((tm, K), lambda i, j: (i, 0)),
            pl.BlockSpec((K, tn), lambda i, j: (0, j)),
        ],
        out_specs=pl.BlockSpec((tm, tn), lambda i, j: (i, j)),
        compiler_params=pltpu.CompilerParams(
            dimension_semantics=("parallel", "parallel")),
    )(x, w_bf16)
    return out[:M] if Mp != M else out


# --------------------------------------------------------------------------- fused decoder layer

def _decoder_layer_kernel(
    # activations / mask (per batch tile)
    tgt_ref, enc_ref, pad_ref,
    # self-attention (packed QKV) + LayerNorm
    sa_wqkv_ref, sa_bqkv_ref, sa_wo_ref, sa_bo_ref, ln1_g_ref, ln1_b_ref,
    # cross-attention (Q + packed KV) + LayerNorm
    ca_wq_ref, ca_bq_ref, ca_wkv_ref, ca_bkv_ref, ca_wo_ref, ca_bo_ref, ln2_g_ref, ln2_b_ref,
    # feed-forward + LayerNorm
    ff_w1_ref, ff_b1_ref, ff_w2_ref, ff_b2_ref, ln3_g_ref, ln3_b_ref,
    # outputs
    out_ref, attn_ref,
    *, num_heads, num_pixels, eps):
    """One transformerDecoderLayer forward (eval mode), fused in VMEM for one batch tile."""
    bt, L, E = tgt_ref.shape
    Sp = enc_ref.shape[1]          # pixel dim padded to a multiple of 128 (lane-dense)
    H = num_heads
    Dh = E // H

    x = tgt_ref[...].reshape(bt * L, E)                 # f32 residual stream
    e_bf = enc_ref[...].reshape(bt * Sp, E)             # bf16 K/V source (storage + MXU)

    # self-attention additive bias: causal (in-kernel iota) AND key-not-padded
    row = jax.lax.broadcasted_iota(jnp.int32, (L, L), 0)
    col = jax.lax.broadcasted_iota(jnp.int32, (L, L), 1)
    causal_ok = jnp.broadcast_to((row >= col)[None], (bt, L, L))
    key_ok = jnp.broadcast_to(pad_ref[...] > 0.5, (bt, L, L))     # pad_ref: (bt,1,L)
    self_bias = jnp.where(jnp.logical_and(causal_ok, key_ok), 0.0, _NEG)

    # cross-attention bias only masks the zero-padded pixel columns S..Sp
    if Sp > num_pixels:
        col_s = jax.lax.broadcasted_iota(jnp.int32, (L, Sp), 1)
        cross_bias = jnp.where(col_s < num_pixels, 0.0, _NEG)[None]
    else:
        cross_bias = None

    def layer_norm(z, g_ref, b_ref):
        mean = jnp.mean(z, axis=-1, keepdims=True)
        ctr = z - mean
        var = jnp.mean(ctr * ctr, axis=-1, keepdims=True)
        return ctr * jax.lax.rsqrt(var + eps) * g_ref[...] + b_ref[...]

    def softmax(s):
        m = jnp.max(s, axis=-1, keepdims=True)
        p = jnp.exp(s - m)
        return p * pl.reciprocal(jnp.sum(p, axis=-1, keepdims=True), approx=True)

    def attention(q_all, k_all, v_all, n_q, n_kv, bias, attn_out_ref):
        # q_all/k_all/v_all: f32 (rows, H*Dh); per-head slices, batch(bt)-leading einsums.
        # The 1/sqrt(Dh) scale is already folded into the Q projection weights.
        ctx_heads = []
        for h in range(H):                                # static unroll (H is small)
            sl = slice(h * Dh, (h + 1) * Dh)
            q = q_all[:, sl].astype(jnp.bfloat16).reshape(bt, n_q, Dh)
            k = k_all[:, sl].astype(jnp.bfloat16).reshape(bt, n_kv, Dh)
            v = v_all[:, sl].astype(jnp.bfloat16).reshape(bt, n_kv, Dh)
            s = jnp.einsum("bqd,bkd->bqk", q, k, preferred_element_type=jnp.float32)
            if bias is not None:
                s = s + bias
            p = softmax(s)                                # f32
            if attn_out_ref is not None:
                attn_out_ref[:, h, :, :] = p              # final (B,H,L,Sp) layout, lane-dense
            ctx_heads.append(jnp.einsum("bqk,bkd->bqd", p.astype(jnp.bfloat16), v,
                                        preferred_element_type=jnp.float32))
        return jnp.concatenate(ctx_heads, axis=-1).reshape(bt * n_q, E)

    # --- self-attention: packed QKV projection + concatenated-heads output projection ---
    qkv = jnp.dot(x.astype(jnp.bfloat16), sa_wqkv_ref[...],
                  preferred_element_type=jnp.float32) + sa_bqkv_ref[...]
    ctx = attention(qkv[:, :E], qkv[:, E:2 * E], qkv[:, 2 * E:], L, L, self_bias, None)
    sa = jnp.dot(ctx.astype(jnp.bfloat16), sa_wo_ref[...],
                 preferred_element_type=jnp.float32) + sa_bo_ref[...]
    t1 = layer_norm(x + sa, ln1_g_ref, ln1_b_ref)

    # --- cross-attention: Q from captions, packed KV from encoded image pixels ---
    q_all = jnp.dot(t1.astype(jnp.bfloat16), ca_wq_ref[...],
                    preferred_element_type=jnp.float32) + ca_bq_ref[...]
    kv = jnp.dot(e_bf, ca_wkv_ref[...],
                 preferred_element_type=jnp.float32) + ca_bkv_ref[...]
    ctx = attention(q_all, kv[:, :E], kv[:, E:], L, Sp, cross_bias, attn_ref)
    ca = jnp.dot(ctx.astype(jnp.bfloat16), ca_wo_ref[...],
                 preferred_element_type=jnp.float32) + ca_bo_ref[...]
    t2 = layer_norm(t1 + ca, ln2_g_ref, ln2_b_ref)

    # --- feed-forward ---
    h1 = jnp.maximum(jnp.dot(t2.astype(jnp.bfloat16), ff_w1_ref[...],
                             preferred_element_type=jnp.float32) + ff_b1_ref[...], 0.0)
    ff = jnp.dot(h1.astype(jnp.bfloat16), ff_w2_ref[...],
                 preferred_element_type=jnp.float32) + ff_b2_ref[...]
    t3 = layer_norm(t2 + ff, ln3_g_ref, ln3_b_ref)

    out_ref[...] = t3.reshape(bt, L, E)


def pallas_decoder_layer(tgt, enc_bf, pad_valid, lp, *, num_heads, num_pixels):
    """Fused transformerDecoderLayer. Returns (new_tgt (B,L,E), attn (B,H,L,Sp))."""
    B, L, E = tgt.shape
    Sp = enc_bf.shape[1]
    H = num_heads
    bt = _batch_tile(B)

    weights = (lp["sa_wqkv"], lp["sa_bqkv"], lp["sa_wo"], lp["sa_bo"],
               lp["ln1_g"], lp["ln1_b"],
               lp["ca_wq"], lp["ca_bq"], lp["ca_wkv"], lp["ca_bkv"],
               lp["ca_wo"], lp["ca_bo"], lp["ln2_g"], lp["ln2_b"],
               lp["ff_w1"], lp["ff_b1"], lp["ff_w2"], lp["ff_b2"],
               lp["ln3_g"], lp["ln3_b"])

    in_specs = [
        pl.BlockSpec((bt, L, E), lambda i: (i, 0, 0)),
        pl.BlockSpec((bt, Sp, E), lambda i: (i, 0, 0)),
        pl.BlockSpec((bt, 1, L), lambda i: (i, 0, 0)),
    ] + [pl.BlockSpec(w.shape, lambda i, n=w.ndim: (0,) * n) for w in weights]  # resident

    out, attn = pl.pallas_call(
        functools.partial(_decoder_layer_kernel, num_heads=H,
                          num_pixels=num_pixels, eps=_LN_EPS),
        out_shape=(jax.ShapeDtypeStruct((B, L, E), jnp.float32),
                   jax.ShapeDtypeStruct((B, H, L, Sp), jnp.float32)),
        grid=(B // bt,),
        in_specs=in_specs,
        out_specs=(pl.BlockSpec((bt, L, E), lambda i: (i, 0, 0)),
                   pl.BlockSpec((bt, H, L, Sp), lambda i: (i, 0, 0, 0))),
        compiler_params=pltpu.CompilerParams(
            dimension_semantics=("parallel",),
            vmem_limit_bytes=64 * 1024 * 1024),
    )(tgt, enc_bf, pad_valid.reshape(B, 1, L), *weights)
    return out, attn


# --------------------------------------------------------------------------- params / prep

def make_positional_encoding(d_model, max_len):
    position = jnp.arange(max_len, dtype=jnp.float32)[:, None]
    div_term = jnp.exp(jnp.arange(0, d_model, 2, dtype=jnp.float32) *
                       (-math.log(10000.0) / d_model))
    pe = jnp.zeros((max_len, d_model), jnp.float32)
    pe = pe.at[:, 0::2].set(jnp.sin(position * div_term))
    pe = pe.at[:, 1::2].set(jnp.cos(position * div_term))
    return pe


def init_params(key, vocab_size, embed_dim, num_dec_layer, dec_ff_dim,
                encoder_dim=2048, pad_id=0):
    """PyTorch-layout f32 parameters (as they would come from the reference module)."""
    E = embed_dim
    keys = jax.random.split(key, 3 + num_dec_layer)
    params = {
        "conv_w": jax.random.normal(keys[0], (encoder_dim, E), jnp.float32) * 0.02,
        "bn_gamma": jnp.ones((E,), jnp.float32),
        "bn_beta": jnp.zeros((E,), jnp.float32),
        "bn_mean": jnp.zeros((E,), jnp.float32),
        "bn_var": jnp.ones((E,), jnp.float32),
        "cptn_emb": (jax.random.normal(keys[1], (vocab_size, E), jnp.float32) * 0.02
                     ).at[pad_id].set(0.0),
        "predictor_w": jax.random.normal(keys[2], (E, vocab_size), jnp.float32) * 0.02,
    }
    layers = []
    for li in range(num_dec_layer):
        lk = jax.random.split(keys[3 + li], 6)

        def attn_params(k1, k2):
            return {
                "in_proj_w": jax.random.normal(k1, (3 * E, E), jnp.float32) * 0.02,
                "in_proj_b": jnp.zeros((3 * E,), jnp.float32),
                "out_proj_w": jax.random.normal(k2, (E, E), jnp.float32) * 0.02,
                "out_proj_b": jnp.zeros((E,), jnp.float32),
            }

        layers.append({
            "self_attn": attn_params(lk[0], lk[1]),
            "cross_attn": attn_params(lk[2], lk[3]),
            "self_attn_norm_g": jnp.ones((E,), jnp.float32),
            "self_attn_norm_b": jnp.zeros((E,), jnp.float32),
            "multihead_norm_g": jnp.ones((E,), jnp.float32),
            "multihead_norm_b": jnp.zeros((E,), jnp.float32),
            "ff_w1": jax.random.normal(lk[4], (E, dec_ff_dim), jnp.float32) * 0.02,
            "ff_b1": jnp.zeros((dec_ff_dim,), jnp.float32),
            "ff_w2": jax.random.normal(lk[5], (dec_ff_dim, E), jnp.float32) * 0.02,
            "ff_b2": jnp.zeros((E,), jnp.float32),
            "ff_norm_g": jnp.ones((E,), jnp.float32),
            "ff_norm_b": jnp.zeros((E,), jnp.float32),
        })
    params["layers"] = layers
    return params


def prepare_params(params, num_heads, max_pe_len=52, bn_eps=1e-5):
    """One-time packing: QKV fusion, bf16 weight casts, BN fold, vocab padding, PE table."""
    E = params["conv_w"].shape[1]
    Dh = E // num_heads
    q_scale = 1.0 / math.sqrt(Dh)

    def pack_self(p):
        w, b = p["in_proj_w"], p["in_proj_b"]          # torch layout: y = W x
        wq, wk, wv = w[:E].T * q_scale, w[E:2 * E].T, w[2 * E:].T
        bq, bk, bv = b[:E] * q_scale, b[E:2 * E], b[2 * E:]
        return (jnp.concatenate([wq, wk, wv], 1).astype(jnp.bfloat16),
                jnp.concatenate([bq, bk, bv]).reshape(1, 3 * E).astype(jnp.float32),
                p["out_proj_w"].T.astype(jnp.bfloat16),
                p["out_proj_b"].reshape(1, E).astype(jnp.float32))

    def pack_cross(p):
        w, b = p["in_proj_w"], p["in_proj_b"]
        return ((w[:E].T * q_scale).astype(jnp.bfloat16),
                (b[:E] * q_scale).reshape(1, E).astype(jnp.float32),
                jnp.concatenate([w[E:2 * E].T, w[2 * E:].T], 1).astype(jnp.bfloat16),
                jnp.concatenate([b[E:2 * E], b[2 * E:]]).reshape(1, 2 * E).astype(jnp.float32),
                p["out_proj_w"].T.astype(jnp.bfloat16),
                p["out_proj_b"].reshape(1, E).astype(jnp.float32))

    bn_scale = params["bn_gamma"] * jax.lax.rsqrt(params["bn_var"] + bn_eps)
    bn_shift = params["bn_beta"] - params["bn_mean"] * bn_scale

    V = params["predictor_w"].shape[1]
    Vp = ((V + 127) // 128) * 128
    pred_w = jnp.pad(params["predictor_w"], ((0, 0), (0, Vp - V))).astype(jnp.bfloat16)

    layers = []
    for lp in params["layers"]:
        sa_wqkv, sa_bqkv, sa_wo, sa_bo = pack_self(lp["self_attn"])
        ca_wq, ca_bq, ca_wkv, ca_bkv, ca_wo, ca_bo = pack_cross(lp["cross_attn"])
        layers.append(dict(
            sa_wqkv=sa_wqkv, sa_bqkv=sa_bqkv, sa_wo=sa_wo, sa_bo=sa_bo,
            ln1_g=lp["self_attn_norm_g"].reshape(1, E),
            ln1_b=lp["self_attn_norm_b"].reshape(1, E),
            ca_wq=ca_wq, ca_bq=ca_bq, ca_wkv=ca_wkv, ca_bkv=ca_bkv,
            ca_wo=ca_wo, ca_bo=ca_bo,
            ln2_g=lp["multihead_norm_g"].reshape(1, E),
            ln2_b=lp["multihead_norm_b"].reshape(1, E),
            ff_w1=lp["ff_w1"].astype(jnp.bfloat16), ff_b1=lp["ff_b1"].reshape(1, -1),
            ff_w2=lp["ff_w2"].astype(jnp.bfloat16), ff_b2=lp["ff_b2"].reshape(1, E),
            ln3_g=lp["ff_norm_g"].reshape(1, E),
            ln3_b=lp["ff_norm_b"].reshape(1, E)))

    return dict(
        conv_w=params["conv_w"].astype(jnp.bfloat16),
        bn_scale=bn_scale.reshape(1, E).astype(jnp.float32),
        bn_shift=bn_shift.reshape(1, E).astype(jnp.float32),
        cptn_emb=params["cptn_emb"],
        pos_enc=make_positional_encoding(E, max_pe_len),
        predictor_w=pred_w,
        layers=layers)


# --------------------------------------------------------------------------- forward

def decoder_with_transformer_forward(prep, encoder_out, encoded_captions,
                                     caption_lengths, *, num_heads, vocab_size, pad_id=0):
    B, Hs, Ws, Cin = encoder_out.shape
    E = prep["cptn_emb"].shape[1]
    L = encoded_captions.shape[1]
    S = Hs * Ws
    Sp = ((S + 127) // 128) * 128            # pixel dim padded for lane-dense attn output

    # --- 1x1 conv + BatchNorm(eval) + ReLU (fused, row-tiled, bf16 out for K/V) ---
    enc = pallas_conv1x1_bn_relu(encoder_out.reshape(B * S, Cin),
                                 prep["conv_w"], prep["bn_scale"], prep["bn_shift"])
    enc = enc.reshape(B, S, E)

    # --- sort by caption length, descending (stays on device; no host sync) ---
    lengths = caption_lengths.reshape(B)
    sort_ind = jnp.argsort(-lengths)
    sorted_lengths = lengths[sort_ind]
    enc = enc[sort_ind]
    encoded_captions = encoded_captions[sort_ind]
    decode_lengths = sorted_lengths - 1      # device array; host .tolist() after dispatch

    if Sp > S:                               # zero-padded pixels; masked in the kernel
        enc = jnp.pad(enc, ((0, 0), (0, Sp - S), (0, 0)))

    pad_valid = (encoded_captions != pad_id).astype(jnp.float32)   # (B, L)

    # --- caption embedding + positional encoding (dropout = identity, eval) ---
    tgt = jnp.take(prep["cptn_emb"], encoded_captions, axis=0) + prep["pos_enc"][:L][None]

    # --- one fused Pallas kernel per decoder layer ---
    attns_all = []
    for lp in prep["layers"]:
        tgt, attn = pallas_decoder_layer(tgt, enc, pad_valid, lp,
                                         num_heads=num_heads, num_pixels=S)
        attns_all.append(attn)
    attns_all = jnp.stack(attns_all)[..., :S]     # (num_layers, B, H, L, num_pixels)

    # --- predictor (bias=False), row + vocab tiled, bf16 operands ---
    preds = pallas_matmul(tgt.reshape(B * L, E),
                          prep["predictor_w"])[:, :vocab_size].reshape(B, L, vocab_size)

    return preds, encoded_captions, decode_lengths, attns_all, sort_ind


# --------------------------------------------------------------------------- demo

if __name__ == "__main__":
    vocab_size = 50
    embed_dim = 32
    enc_image_size = 4
    encoder_dim = 2048           # fixed by the module's Conv2d(in_channels=2048, ...)
    num_dec_layer = 2
    num_heads = 2
    dec_ff_dim = 64
    max_cap_len = 8
    B = 2

    root = jax.random.PRNGKey(0)
    k_param, k_img = jax.random.split(root)
    params = init_params(k_param, vocab_size, embed_dim, num_dec_layer,
                         dec_ff_dim, encoder_dim)
    prep = prepare_params(params, num_heads)      # one-time packing / bf16 cast / padding

    encoder_out = jax.random.normal(
        k_img, (B, enc_image_size, enc_image_size, encoder_dim), jnp.float32)
    encoded_captions = jnp.array([[1, 5, 7, 3, 9, 2, 0, 0],
                                  [1, 4, 8, 6, 0, 0, 0, 0]], dtype=jnp.int32)
    caption_lengths = jnp.array([[6], [4]], dtype=jnp.int32)

    fwd = jax.jit(functools.partial(decoder_with_transformer_forward,
                                    num_heads=num_heads, vocab_size=vocab_size))
    preds, caps, dec_lens, attns, sort_ind = fwd(
        prep, encoder_out, encoded_captions, caption_lengths)
    jax.block_until_ready((preds, attns))

    assert preds.shape == (B, max_cap_len, vocab_size)
    assert attns.shape == (num_dec_layer, B, num_heads, max_cap_len, enc_image_size ** 2)
    assert caps.shape == (B, max_cap_len)
    assert [int(v) for v in dec_lens] == [5, 3]     # host read only after full dispatch
    assert bool(jnp.all(jnp.isfinite(preds))) and bool(jnp.all(jnp.isfinite(attns)))
    # softmax rows sum to 1 (approx-reciprocal tolerance; padded pixel columns are exactly 0)
    assert bool(jnp.allclose(jnp.sum(attns, axis=-1), 1.0, atol=5e-3))
    print("KERNEL_OK")
</pallas_src>

<mosaic_0001>
module attributes {stable_mosaic.version = 11 : i64} {
  func.func @_conv_bn_relu_kernel(%arg0: i32, %arg1: memref<32x2048xf32, #tpu.memory_space<vmem>>, %arg2: memref<2048x32xbf16, #tpu.memory_space<vmem>>, %arg3: memref<1x32xf32, #tpu.memory_space<vmem>>, %arg4: memref<1x32xf32, #tpu.memory_space<vmem>>, %arg5: memref<32x32xbf16, #tpu.memory_space<vmem>>) attributes {dimension_semantics = [#tpu.dimension_semantics<parallel>], iteration_bounds = array<i64: 1>, scalar_prefetch = 0 : i64, scratch_operands = 0 : i64, tpu.core_type = #tpu.core_type<tc>, window_params = [{transform_indices = @transform_0, window_bounds = array<i64: 32, 2048>}, {pipeline_mode = #tpu.pipeline_mode<synchronous>, transform_indices = @transform_1, window_bounds = array<i64: 2048, 32>}, {pipeline_mode = #tpu.pipeline_mode<synchronous>, transform_indices = @transform_2, window_bounds = array<i64: 1, 32>}, {pipeline_mode = #tpu.pipeline_mode<synchronous>, transform_indices = @transform_3, window_bounds = array<i64: 1, 32>}, {transform_indices = @transform_4, window_bounds = array<i64: 32, 32>}]} {
    %c0 = arith.constant 0 : index
    %c0_0 = arith.constant 0 : index
    %0 = vector.load %arg1[%c0, %c0_0] : memref<32x2048xf32, #tpu.memory_space<vmem>>, vector<32x2048xf32>
    %1 = arith.truncf %0 : vector<32x2048xf32> to vector<32x2048xbf16>
    %c0_1 = arith.constant 0 : index
    %c0_2 = arith.constant 0 : index
    %2 = vector.load %arg2[%c0_1, %c0_2] : memref<2048x32xbf16, #tpu.memory_space<vmem>>, vector<2048x32xbf16>
    %cst = arith.constant dense<0.000000e+00> : vector<32x32xf32>
    %3 = tpu.matmul %1, %2, %cst {dimension_numbers = #tpu.dot_dimension_numbers<[1], [0], [0], [1], [0, 0, 1, 1], [], []>} : vector<32x2048xbf16>, vector<2048x32xbf16>, vector<32x32xf32> -> vector<32x32xf32>
    %c0_3 = arith.constant 0 : index
    %c0_4 = arith.constant 0 : index
    %4 = vector.load %arg3[%c0_3, %c0_4] : memref<1x32xf32, #tpu.memory_space<vmem>>, vector<1x32xf32>
    %5 = vector.broadcast %4 : vector<1x32xf32> to vector<32x32xf32>
    %6 = arith.mulf %3, %5 : vector<32x32xf32>
    %c0_5 = arith.constant 0 : index
    %c0_6 = arith.constant 0 : index
    %7 = vector.load %arg4[%c0_5, %c0_6] : memref<1x32xf32, #tpu.memory_space<vmem>>, vector<1x32xf32>
    %8 = vector.broadcast %7 : vector<1x32xf32> to vector<32x32xf32>
    %9 = arith.addf %6, %8 : vector<32x32xf32>
    %cst_7 = arith.constant 0.000000e+00 : f32
    %10 = vector.broadcast %cst_7 : f32 to vector<32x32xf32>
    %11 = arith.maximumf %9, %10 : vector<32x32xf32>
    %12 = arith.truncf %11 : vector<32x32xf32> to vector<32x32xbf16>
    %c0_8 = arith.constant 0 : index
    %c0_9 = arith.constant 0 : index
    %13 = vector.load %arg5[%c0_8, %c0_9] : memref<32x32xbf16, #tpu.memory_space<vmem>>, vector<32x32xbf16>
    tpu.vector_store %arg5[%c0_8, %c0_9], %12 {strides = array<i32>} : memref<32x32xbf16, #tpu.memory_space<vmem>>, vector<32x32xbf16>,
    return
  }
  func.func @transform_0(%arg0: i32) -> (i32, i32) {
    %c0_i32 = arith.constant 0 : i32
    %c0_i32_0 = arith.constant 0 : i32
    return %arg0, %c0_i32 : i32, i32
  }
  func.func @transform_1(%arg0: i32) -> (i32, i32) {
    %c0_i32 = arith.constant 0 : i32
    %c0_i32_0 = arith.constant 0 : i32
    %c0_i32_1 = arith.constant 0 : i32
    return %c0_i32, %c0_i32_0 : i32, i32
  }
  func.func @transform_2(%arg0: i32) -> (i32, i32) {
    %c0_i32 = arith.constant 0 : i32
    %c0_i32_0 = arith.constant 0 : i32
    %c0_i32_1 = arith.constant 0 : i32
    return %c0_i32, %c0_i32_0 : i32, i32
  }
  func.func @transform_3(%arg0: i32) -> (i32, i32) {
    %c0_i32 = arith.constant 0 : i32
    %c0_i32_0 = arith.constant 0 : i32
    %c0_i32_1 = arith.constant 0 : i32
    return %c0_i32, %c0_i32_0 : i32, i32
  }
  func.func @transform_4(%arg0: i32) -> (i32, i32) {
    %c0_i32 = arith.constant 0 : i32
    %c0_i32_0 = arith.constant 0 : i32
    return %arg0, %c0_i32 : i32, i32
  }
}

module attributes {stable_mosaic.version = 11 : i64} {
  func.func @_decoder_layer_kernel(%arg0: i32, %arg1: memref<1x8x32xf32, #tpu.memory_space<vmem>>, %arg2: memref<1x128x32xbf16, #tpu.memory_space<vmem>>, %arg3: memref<1x1x8xf32, #tpu.memory_space<vmem>>, %arg4: memref<32x96xbf16, #tpu.memory_space<vmem>>, %arg5: memref<1x96xf32, #tpu.memory_space<vmem>>, %arg6: memref<32x32xbf16, #tpu.memory_space<vmem>>, %arg7: memref<1x32xf32, #tpu.memory_space<vmem>>, %arg8: memref<1x32xf32, #tpu.memory_space<vmem>>, %arg9: memref<1x32xf32, #tpu.memory_space<vmem>>, %arg10: memref<32x32xbf16, #tpu.memory_space<vmem>>, %arg11: memref<1x32xf32, #tpu.memory_space<vmem>>, %arg12: memref<32x64xbf16, #tpu.memory_space<vmem>>, %arg13: memref<1x64xf32, #tpu.memory_space<vmem>>, %arg14: memref<32x32xbf16, #tpu.memory_space<vmem>>, %arg15: memref<1x32xf32, #tpu.memory_space<vmem>>, %arg16: memref<1x32xf32, #tpu.memory_space<vmem>>, %arg17: memref<1x32xf32, #tpu.memory_space<vmem>>, %arg18: memref<32x64xbf16, #tpu.memory_space<vmem>>, %arg19: memref<1x64xf32, #tpu.memory_space<vmem>>, %arg20: memref<64x32xbf16, #tpu.memory_space<vmem>>, %arg21: memref<1x32xf32, #tpu.memory_space<vmem>>, %arg22: memref<1x32xf32, #tpu.memory_space<vmem>>, %arg23: memref<1x32xf32, #tpu.memory_space<vmem>>, %arg24: memref<1x8x32xf32, #tpu.memory_space<vmem>>, %arg25: memref<1x2x8x128xf32, #tpu.memory_space<vmem>>) attributes {dimension_semantics = [#tpu.dimension_semantics<parallel>], iteration_bounds = array<i64: 2>, scalar_prefetch = 0 : i64, scratch_operands = 0 : i64, tpu.core_type = #tpu.core_type<tc>, window_params = [{transform_indices = @transform_0, window_bounds = array<i64: 1, 8, 32>}, {transform_indices = @transform_1, window_bounds = array<i64: 1, 128, 32>}, {transform_indices = @transform_2, window_bounds = array<i64: 1, 1, 8>}, {pipeline_mode = #tpu.pipeline_mode<synchronous>, transform_indices = @transform_3, window_bounds = array<i64: 32, 96>}, {pipeline_mode = #tpu.pipeline_mode<synchronous>, transform_indices = @transform_4, window_bounds = array<i64: 1, 96>}, {pipeline_mode = #tpu.pipeline_mode<synchronous>, transform_indices = @transform_5, window_bounds = array<i64: 32, 32>}, {pipeline_mode = #tpu.pipeline_mode<synchronous>, transform_indices = @transform_6, window_bounds = array<i64: 1, 32>}, {pipeline_mode = #tpu.pipeline_mode<synchronous>, transform_indices = @transform_7, window_bounds = array<i64: 1, 32>}, {pipeline_mode = #tpu.pipeline_mode<synchronous>, transform_indices = @transform_8, window_bounds = array<i64: 1, 32>}, {pipeline_mode = #tpu.pipeline_mode<synchronous>, transform_indices = @transform_9, window_bounds = array<i64: 32, 32>}, {pipeline_mode = #tpu.pipeline_mode<synchronous>, transform_indices = @transform_10, window_bounds = array<i64: 1, 32>}, {pipeline_mode = #tpu.pipeline_mode<synchronous>, transform_indices = @transform_11, window_bounds = array<i64: 32, 64>}, {pipeline_mode = #tpu.pipeline_mode<synchronous>, transform_indices = @transform_12, window_bounds = array<i64: 1, 64>}, {pipeline_mode = #tpu.pipeline_mode<synchronous>, transform_indices = @transform_13, window_bounds = array<i64: 32, 32>}, {pipeline_mode = #tpu.pipeline_mode<synchronous>, transform_indices = @transform_14, window_bounds = array<i64: 1, 32>}, {pipeline_mode = #tpu.pipeline_mode<synchronous>, transform_indices = @transform_15, window_bounds = array<i64: 1, 32>}, {pipeline_mode = #tpu.pipeline_mode<synchronous>, transform_indices = @transform_16, window_bounds = array<i64: 1, 32>}, {pipeline_mode = #tpu.pipeline_mode<synchronous>, transform_indices = @transform_17, window_bounds = array<i64: 32, 64>}, {pipeline_mode = #tpu.pipeline_mode<synchronous>, transform_indices = @transform_18, window_bounds = array<i64: 1, 64>}, {pipeline_mode = #tpu.pipeline_mode<synchronous>, transform_indices = @transform_19, window_bounds = array<i64: 64, 32>}, {pipeline_mode = #tpu.pipeline_mode<synchronous>, transform_indices = @transform_20, window_bounds = array<i64: 1, 32>}, {pipeline_mode = #tpu.pipeline_mode<synchronous>, transform_indices = @transform_21, window_bounds = array<i64: 1, 32>}, {pipeline_mode = #tpu.pipeline_mode<synchronous>, transform_indices = @transform_22, window_bounds = array<i64: 1, 32>}, {transform_indices = @transform_23, window_bounds = array<i64: 1, 8, 32>}, {transform_indices = @transform_24, window_bounds = array<i64: 1, 2, 8, 128>}]} {
    %c0 = arith.constant 0 : index
    %c0_0 = arith.constant 0 : index
    %c0_1 = arith.constant 0 : index
    %0 = vector.load %arg1[%c0, %c0_0, %c0_1] : memref<1x8x32xf32, #tpu.memory_space<vmem>>, vector<1x8x32xf32>
    %1 = vector.shape_cast %0 : vector<1x8x32xf32> to vector<8x32xf32>
    %c0_2 = arith.constant 0 : index
    %c0_3 = arith.constant 0 : index
    %c0_4 = arith.constant 0 : index
    %2 = vector.load %arg2[%c0_2, %c0_3, %c0_4] : memref<1x128x32xbf16, #tpu.memory_space<vmem>>, vector<1x128x32xbf16>
    %3 = vector.shape_cast %2 : vector<1x128x32xbf16> to vector<128x32xbf16>
    %4 = tpu.iota {dimensions = array<i32: 0>} : vector<8x8xi32>
    %5 = tpu.iota {dimensions = array<i32: 1>} : vector<8x8xi32>
    %6 = arith.cmpi sge, %4, %5 : vector<8x8xi32>
    %7 = vector.shape_cast %6 : vector<8x8xi1> to vector<1x8x8xi1>
    %c0_5 = arith.constant 0 : index
    %c0_6 = arith.constant 0 : index
    %c0_7 = arith.constant 0 : index
    %8 = vector.load %arg3[%c0_5, %c0_6, %c0_7] : memref<1x1x8xf32, #tpu.memory_space<vmem>>, vector<1x1x8xf32>
    %cst = arith.constant 5.000000e-01 : f32
    %9 = vector.broadcast %cst : f32 to vector<1x1x8xf32>
    %10 = arith.cmpf ogt, %8, %9 : vector<1x1x8xf32>
    %11 = vector.shape_cast %10 : vector<1x1x8xi1> to vector<1x1x8xi1>
    %12 = vector.broadcast %11 : vector<1x1x8xi1> to vector<1x8x8xi1>
    %13 = arith.andi %7, %12 : vector<1x8x8xi1>
    %cst_8 = arith.constant 0.000000e+00 : f32
    %cst_9 = arith.constant -1.000000e+30 : f32
    %14 = vector.broadcast %cst_8 : f32 to vector<1x8x8xf32>
    %15 = vector.broadcast %cst_9 : f32 to vector<1x8x8xf32>
    %16 = arith.select %13, %14, %15 : vector<1x8x8xi1>, vector<1x8x8xf32>
    %17 = tpu.iota {dimensions = array<i32: 1>} : vector<8x128xi32>
    %c16_i32 = arith.constant 16 : i32
    %18 = vector.broadcast %c16_i32 : i32 to vector<8x128xi32>
    %19 = arith.cmpi slt, %17, %18 : vector<8x128xi32>
    %cst_10 = arith.constant 0.000000e+00 : f32
    %cst_11 = arith.constant -1.000000e+30 : f32
    %20 = vector.broadcast %cst_10 : f32 to vector<8x128xf32>
    %21 = vector.broadcast %cst_11 : f32 to vector<8x128xf32>
    %22 = arith.select %19, %20, %21 : vector<8x128xi1>, vector<8x128xf32>
    %23 = vector.shape_cast %22 : vector<8x128xf32> to vector<1x8x128xf32>
    %24 = arith.truncf %1 : vector<8x32xf32> to vector<8x32xbf16>
    %c0_12 = arith.constant 0 : index
    %c0_13 = arith.constant 0 : index
    %25 = vector.load %arg4[%c0_12, %c0_13] : memref<32x96xbf16, #tpu.memory_space<vmem>>, vector<32x96xbf16>
    %cst_14 = arith.constant dense<0.000000e+00> : vector<8x96xf32>
    %26 = tpu.matmul %24, %25, %cst_14 {dimension_numbers = #tpu.dot_dimension_numbers<[1], [0], [0], [1], [0, 0, 1, 1], [], []>} : vector<8x32xbf16>, vector<32x96xbf16>, vector<8x96xf32> -> vector<8x96xf32>
    %c0_15 = arith.constant 0 : index
    %c0_16 = arith.constant 0 : index
    %27 = vector.load %arg5[%c0_15, %c0_16] : memref<1x96xf32, #tpu.memory_space<vmem>>, vector<1x96xf32>
    %28 = vector.broadcast %27 : vector<1x96xf32> to vector<8x96xf32>
    %29 = arith.addf %26, %28 : vector<8x96xf32>
    %30 = vector.extract_strided_slice %29 {offsets = [0, 0], sizes = [8, 32], strides = [1, 1]} : vector<8x96xf32> to vector<8x32xf32>
    %31 = vector.extract_strided_slice %29 {offsets = [0, 32], sizes = [8, 32], strides = [1, 1]} : vector<8x96xf32> to vector<8x32xf32>
    %32 = vector.extract_strided_slice %29 {offsets = [0, 64], sizes = [8, 32], strides = [1, 1]} : vector<8x96xf32> to vector<8x32xf32>
    %33 = vector.extract_strided_slice %30 {offsets = [0, 0], sizes = [8, 16], strides = [1, 1]} : vector<8x32xf32> to vector<8x16xf32>
    %34 = arith.truncf %33 : vector<8x16xf32> to vector<8x16xbf16>
    %35 = vector.shape_cast %34 : vector<8x16xbf16> to vector<1x8x16xbf16>
    %36 = vector.extract_strided_slice %31 {offsets = [0, 0], sizes = [8, 16], strides = [1, 1]} : vector<8x32xf32> to vector<8x16xf32>
    %37 = arith.truncf %36 : vector<8x16xf32> to vector<8x16xbf16>
    %38 = vector.shape_cast %37 : vector<8x16xbf16> to vector<1x8x16xbf16>
    %39 = vector.extract_strided_slice %32 {offsets = [0, 0], sizes = [8, 16], strides = [1, 1]} : vector<8x32xf32> to vector<8x16xf32>
    %40 = arith.truncf %39 : vector<8x16xf32> to vector<8x16xbf16>
    %41 = vector.shape_cast %40 : vector<8x16xbf16> to vector<1x8x16xbf16>
    "tpu.trace_start"() <{level = 10 : i32, message = "bqd,bkd->bqk"}> : () -> ()
    %cst_17 = arith.constant dense<0.000000e+00> : vector<1x8x8xf32>
    %42 = tpu.matmul %35, %38, %cst_17 {dimension_numbers = #tpu.dot_dimension_numbers<[2], [2], [1], [1], [0, 0, 0, 1, 1, 1], [0], [0]>} : vector<1x8x16xbf16>, vector<1x8x16xbf16>, vector<1x8x8xf32> -> vector<1x8x8xf32>
    "tpu.trace_stop"() : () -> ()
    %43 = arith.addf %42, %16 : vector<1x8x8xf32>
    %cst_18 = arith.constant dense<0xFF800000> : vector<1x8xf32>
    %44 = vector.multi_reduction <maximumf>, %43, %cst_18 [2] : vector<1x8x8xf32> to vector<1x8xf32>
    %45 = vector.shape_cast %44 : vector<1x8xf32> to vector<1x8x1xf32>
    %46 = vector.broadcast %45 : vector<1x8x1xf32> to vector<1x8x8xf32>
    %47 = arith.subf %43, %46 : vector<1x8x8xf32>
    %48 = math.exp %47 : vector<1x8x8xf32>
    %cst_19 = arith.constant dense<0.000000e+00> : vector<1x8xf32>
    %49 = vector.multi_reduction <add>, %48, %cst_19 [2] : vector<1x8x8xf32> to vector<1x8xf32>
    %50 = vector.shape_cast %49 : vector<1x8xf32> to vector<1x8x1xf32>
    %51 = tpu.reciprocal %50 {approx = true} : vector<1x8x1xf32> -> vector<1x8x1xf32>
    %52 = vector.broadcast %51 : vector<1x8x1xf32> to vector<1x8x8xf32>
    %53 = arith.mulf %48, %52 : vector<1x8x8xf32>
    %54 = arith.truncf %53 : vector<1x8x8xf32> to vector<1x8x8xbf16>
    "tpu.trace_start"() <{level = 10 : i32, message = "bqk,bkd->bqd"}> : () -> ()
    %cst_20 = arith.constant dense<0.000000e+00> : vector<1x8x16xf32>
    %55 = tpu.matmul %54, %41, %cst_20 {dimension_numbers = #tpu.dot_dimension_numbers<[2], [1], [1], [2], [0, 0, 0, 1, 1, 2], [0], [0]>} : vector<1x8x8xbf16>, vector<1x8x16xbf16>, vector<1x8x16xf32> -> vector<1x8x16xf32>
    "tpu.trace_stop"() : () -> ()
    %56 = vector.extract_strided_slice %30 {offsets = [0, 16], sizes = [8, 16], strides = [1, 1]} : vector<8x32xf32> to vector<8x16xf32>
    %57 = arith.truncf %56 : vector<8x16xf32> to vector<8x16xbf16>
    %58 = vector.shape_cast %57 : vector<8x16xbf16> to vector<1x8x16xbf16>
    %59 = vector.extract_strided_slice %31 {offsets = [0, 16], sizes = [8, 16], strides = [1, 1]} : vector<8x32xf32> to vector<8x16xf32>
    %60 = arith.truncf %59 : vector<8x16xf32> to vector<8x16xbf16>
    %61 = vector.shape_cast %60 : vector<8x16xbf16> to vector<1x8x16xbf16>
    %62 = vector.extract_strided_slice %32 {offsets = [0, 16], sizes = [8, 16], strides = [1, 1]} : vector<8x32xf32> to vector<8x16xf32>
    %63 = arith.truncf %62 : vector<8x16xf32> to vector<8x16xbf16>
    %64 = vector.shape_cast %63 : vector<8x16xbf16> to vector<1x8x16xbf16>
    "tpu.trace_start"() <{level = 10 : i32, message = "bqd,bkd->bqk"}> : () -> ()
    %cst_21 = arith.constant dense<0.000000e+00> : vector<1x8x8xf32>
    %65 = tpu.matmul %58, %61, %cst_21 {dimension_numbers = #tpu.dot_dimension_numbers<[2], [2], [1], [1], [0, 0, 0, 1, 1, 1], [0], [0]>} : vector<1x8x16xbf16>, vector<1x8x16xbf16>, vector<1x8x8xf32> -> vector<1x8x8xf32>
    "tpu.trace_stop"() : () -> ()
    %66 = arith.addf %65, %16 : vector<1x8x8xf32>
    %cst_22 = arith.constant dense<0xFF800000> : vector<1x8xf32>
    %67 = vector.multi_reduction <maximumf>, %66, %cst_22 [2] : vector<1x8x8xf32> to vector<1x8xf32>
    %68 = vector.shape_cast %67 : vector<1x8xf32> to vector<1x8x1xf32>
    %69 = vector.broadcast %68 : vector<1x8x1xf32> to vector<1x8x8xf32>
    %70 = arith.subf %66, %69 : vector<1x8x8xf32>
    %71 = math.exp %70 : vector<1x8x8xf32>
    %cst_23 = arith.constant dense<0.000000e+00> : vector<1x8xf32>
    %72 = vector.multi_reduction <add>, %71, %cst_23 [2] : vector<1x8x8xf32> to vector<1x8xf32>
    %73 = vector.shape_cast %72 : vector<1x8xf32> to vector<1x8x1xf32>
    %74 = tpu.reciprocal %73 {approx = true} : vector<1x8x1xf32> -> vector<1x8x1xf32>
    %75 = vector.broadcast %74 : vector<1x8x1xf32> to vector<1x8x8xf32>
    %76 = arith.mulf %71, %75 : vector<1x8x8xf32>
    %77 = arith.truncf %76 : vector<1x8x8xf32> to vector<1x8x8xbf16>
    "tpu.trace_start"() <{level = 10 : i32, message = "bqk,bkd->bqd"}> : () -> ()
    %cst_24 = arith.constant dense<0.000000e+00> : vector<1x8x16xf32>
    %78 = tpu.matmul %77, %64, %cst_24 {dimension_numbers = #tpu.dot_dimension_numbers<[2], [1], [1], [2], [0, 0, 0, 1, 1, 2], [0], [0]>} : vector<1x8x8xbf16>, vector<1x8x16xbf16>, vector<1x8x16xf32> -> vector<1x8x16xf32>
    "tpu.trace_stop"() : () -> ()
    %79 = tpu.concatenate %55, %78 in 2 : vector<1x8x16xf32>, vector<1x8x16xf32> -> vector<1x8x32xf32>
    %80 = vector.shape_cast %79 : vector<1x8x32xf32> to vector<8x32xf32>
    %81 = arith.truncf %80 : vector<8x32xf32> to vector<8x32xbf16>
    %c0_25 = arith.constant 0 : index
    %c0_26 = arith.constant 0 : index
    %82 = vector.load %arg6[%c0_25, %c0_26] : memref<32x32xbf16, #tpu.memory_space<vmem>>, vector<32x32xbf16>
    %cst_27 = arith.constant dense<0.000000e+00> : vector<8x32xf32>
    %83 = tpu.matmul %81, %82, %cst_27 {dimension_numbers = #tpu.dot_dimension_numbers<[1], [0], [0], [1], [0, 0, 1, 1], [], []>} : vector<8x32xbf16>, vector<32x32xbf16>, vector<8x32xf32> -> vector<8x32xf32>
    %c0_28 = arith.constant 0 : index
    %c0_29 = arith.constant 0 : index
    %84 = vector.load %arg7[%c0_28, %c0_29] : memref<1x32xf32, #tpu.memory_space<vmem>>, vector<1x32xf32>
    %85 = vector.broadcast %84 : vector<1x32xf32> to vector<8x32xf32>
    %86 = arith.addf %83, %85 : vector<8x32xf32>
    %87 = arith.addf %1, %86 : vector<8x32xf32>
    %cst_30 = arith.constant dense<0.000000e+00> : vector<8xf32>
    %88 = vector.multi_reduction <add>, %87, %cst_30 [1] : vector<8x32xf32> to vector<8xf32>
    %89 = vector.shape_cast %88 : vector<8xf32> to vector<8x1xf32>
    %cst_31 = arith.constant 3.200000e+01 : f32
    %90 = vector.broadcast %cst_31 : f32 to vector<8x1xf32>
    %91 = arith.divf %89, %90 : vector<8x1xf32>
    %92 = vector.broadcast %91 : vector<8x1xf32> to vector<8x32xf32>
    %93 = arith.subf %87, %92 : vector<8x32xf32>
    %94 = arith.mulf %93, %93 : vector<8x32xf32>
    %cst_32 = arith.constant dense<0.000000e+00> : vector<8xf32>
    %95 = vector.multi_reduction <add>, %94, %cst_32 [1] : vector<8x32xf32> to vector<8xf32>
    %96 = vector.shape_cast %95 : vector<8xf32> to vector<8x1xf32>
    %cst_33 = arith.constant 3.200000e+01 : f32
    %97 = vector.broadcast %cst_33 : f32 to vector<8x1xf32>
    %98 = arith.divf %96, %97 : vector<8x1xf32>
    %cst_34 = arith.constant 9.99999974E-6 : f32
    %99 = vector.broadcast %cst_34 : f32 to vector<8x1xf32>
    %100 = arith.addf %98, %99 : vector<8x1xf32>
    %101 = math.rsqrt %100 : vector<8x1xf32>
    %102 = vector.broadcast %101 : vector<8x1xf32> to vector<8x32xf32>
    %103 = arith.mulf %93, %102 : vector<8x32xf32>
    %c0_35 = arith.constant 0 : index
    %c0_36 = arith.constant 0 : index
    %104 = vector.load %arg8[%c0_35, %c0_36] : memref<1x32xf32, #tpu.memory_space<vmem>>, vector<1x32xf32>
    %105 = vector.broadcast %104 : vector<1x32xf32> to vector<8x32xf32>
    %106 = arith.mulf %103, %105 : vector<8x32xf32>
    %c0_37 = arith.constant 0 : index
    %c0_38 = arith.constant 0 : index
    %107 = vector.load %arg9[%c0_37, %c0_38] : memref<1x32xf32, #tpu.memory_space<vmem>>, vector<1x32xf32>
    %108 = vector.broadcast %107 : vector<1x32xf32> to vector<8x32xf32>
    %109 = arith.addf %106, %108 : vector<8x32xf32>
    %110 = arith.truncf %109 : vector<8x32xf32> to vector<8x32xbf16>
    %c0_39 = arith.constant 0 : index
    %c0_40 = arith.constant 0 : index
    %111 = vector.load %arg10[%c0_39, %c0_40] : memref<32x32xbf16, #tpu.memory_space<vmem>>, vector<32x32xbf16>
    %cst_41 = arith.constant dense<0.000000e+00> : vector<8x32xf32>
    %112 = tpu.matmul %110, %111, %cst_41 {dimension_numbers = #tpu.dot_dimension_numbers<[1], [0], [0], [1], [0, 0, 1, 1], [], []>} : vector<8x32xbf16>, vector<32x32xbf16>, vector<8x32xf32> -> vector<8x32xf32>
    %c0_42 = arith.constant 0 : index
    %c0_43 = arith.constant 0 : index
    %113 = vector.load %arg11[%c0_42, %c0_43] : memref<1x32xf32, #tpu.memory_space<vmem>>, vector<1x32xf32>
    %114 = vector.broadcast %113 : vector<1x32xf32> to vector<8x32xf32>
    %115 = arith.addf %112, %114 : vector<8x32xf32>
    %c0_44 = arith.constant 0 : index
    %c0_45 = arith.constant 0 : index
    %116 = vector.load %arg12[%c0_44, %c0_45] : memref<32x64xbf16, #tpu.memory_space<vmem>>, vector<32x64xbf16>
    %cst_46 = arith.constant dense<0.000000e+00> : vector<128x64xf32>
    %117 = tpu.matmul %3, %116, %cst_46 {dimension_numbers = #tpu.dot_dimension_numbers<[1], [0], [0], [1], [0, 0, 1, 1], [], []>} : vector<128x32xbf16>, vector<32x64xbf16>, vector<128x64xf32> -> vector<128x64xf32>
    %c0_47 = arith.constant 0 : index
    %c0_48 = arith.constant 0 : index
    %118 = vector.load %arg13[%c0_47, %c0_48] : memref<1x64xf32, #tpu.memory_space<vmem>>, vector<1x64xf32>
    %119 = vector.broadcast %118 : vector<1x64xf32> to vector<128x64xf32>
    %120 = arith.addf %117, %119 : vector<128x64xf32>
    %121 = vector.extract_strided_slice %120 {offsets = [0, 0], sizes = [128, 32], strides = [1, 1]} : vector<128x64xf32> to vector<128x32xf32>
    %122 = vector.extract_strided_slice %120 {offsets = [0, 32], sizes = [128, 32], strides = [1, 1]} : vector<128x64xf32> to vector<128x32xf32>
    %123 = vector.extract_strided_slice %115 {offsets = [0, 0], sizes = [8, 16], strides = [1, 1]} : vector<8x32xf32> to vector<8x16xf32>
    %124 = arith.truncf %123 : vector<8x16xf32> to vector<8x16xbf16>
    %125 = vector.shape_cast %124 : vector<8x16xbf16> to vector<1x8x16xbf16>
    %126 = vector.extract_strided_slice %121 {offsets = [0, 0], sizes = [128, 16], strides = [1, 1]} : vector<128x32xf32> to vector<128x16xf32>
    %127 = arith.truncf %126 : vector<128x16xf32> to vector<128x16xbf16>
    %128 = vector.shape_cast %127 : vector<128x16xbf16> to vector<1x128x16xbf16>
    %129 = vector.extract_strided_slice %122 {offsets = [0, 0], sizes = [128, 16], strides = [1, 1]} : vector<128x32xf32> to vector<128x16xf32>
    %130 = arith.truncf %129 : vector<128x16xf32> to vector<128x16xbf16>
    %131 = vector.shape_cast %130 : vector<128x16xbf16> to vector<1x128x16xbf16>
    "tpu.trace_start"() <{level = 10 : i32, message = "bqd,bkd->bqk"}> : () -> ()
    %cst_49 = arith.constant dense<0.000000e+00> : vector<1x8x128xf32>
    %132 = tpu.matmul %125, %128, %cst_49 {dimension_numbers = #tpu.dot_dimension_numbers<[2], [2], [1], [1], [0, 0, 0, 1, 1, 1], [0], [0]>} : vector<1x8x16xbf16>, vector<1x128x16xbf16>, vector<1x8x128xf32> -> vector<1x8x128xf32>
    "tpu.trace_stop"() : () -> ()
    %133 = arith.addf %132, %23 : vector<1x8x128xf32>
    %cst_50 = arith.constant dense<0xFF800000> : vector<1x8xf32>
    %134 = vector.multi_reduction <maximumf>, %133, %cst_50 [2] : vector<1x8x128xf32> to vector<1x8xf32>
    %135 = vector.shape_cast %134 : vector<1x8xf32> to vector<1x8x1xf32>
    %136 = vector.broadcast %135 : vector<1x8x1xf32> to vector<1x8x128xf32>
    %137 = arith.subf %133, %136 : vector<1x8x128xf32>
    %138 = math.exp %137 : vector<1x8x128xf32>
    %cst_51 = arith.constant dense<0.000000e+00> : vector<1x8xf32>
    %139 = vector.multi_reduction <add>, %138, %cst_51 [2] : vector<1x8x128xf32> to vector<1x8xf32>
    %140 = vector.shape_cast %139 : vector<1x8xf32> to vector<1x8x1xf32>
    %141 = tpu.reciprocal %140 {approx = true} : vector<1x8x1xf32> -> vector<1x8x1xf32>
    %142 = vector.broadcast %141 : vector<1x8x1xf32> to vector<1x8x128xf32>
    %143 = arith.mulf %138, %142 : vector<1x8x128xf32>
    %c0_52 = arith.constant 0 : index
    %c0_53 = arith.constant 0 : index
    %c0_54 = arith.constant 0 : index
    %c0_55 = arith.constant 0 : index
    %144 = vector.load %arg25[%c0_52, %c0_53, %c0_54, %c0_55] : memref<1x2x8x128xf32, #tpu.memory_space<vmem>>, vector<1x1x8x128xf32>
    %145 = vector.shape_cast %144 : vector<1x1x8x128xf32> to vector<1x8x128xf32>
    %146 = vector.shape_cast %143 : vector<1x8x128xf32> to vector<1x1x8x128xf32>
    tpu.vector_store %arg25[%c0_52, %c0_53, %c0_54, %c0_55], %146 {strides = array<i32>} : memref<1x2x8x128xf32, #tpu.memory_space<vmem>>, vector<1x1x8x128xf32>,
    %147 = arith.truncf %143 : vector<1x8x128xf32> to vector<1x8x128xbf16>
    "tpu.trace_start"() <{level = 10 : i32, message = "bqk,bkd->bqd"}> : () -> ()
    %cst_56 = arith.constant dense<0.000000e+00> : vector<1x8x16xf32>
    %148 = tpu.matmul %147, %131, %cst_56 {dimension_numbers = #tpu.dot_dimension_numbers<[2], [1], [1], [2], [0, 0, 0, 1, 1, 2], [0], [0]>} : vector<1x8x128xbf16>, vector<1x128x16xbf16>, vector<1x8x16xf32> -> vector<1x8x16xf32>
    "tpu.trace_stop"() : () -> ()
    %149 = vector.extract_strided_slice %115 {offsets = [0, 16], sizes = [8, 16], strides = [1, 1]} : vector<8x32xf32> to vector<8x16xf32>
    %150 = arith.truncf %149 : vector<8x16xf32> to vector<8x16xbf16>
    %151 = vector.shape_cast %150 : vector<8x16xbf16> to vector<1x8x16xbf16>
    %152 = vector.extract_strided_slice %121 {offsets = [0, 16], sizes = [128, 16], strides = [1, 1]} : vector<128x32xf32> to vector<128x16xf32>
    %153 = arith.truncf %152 : vector<128x16xf32> to vector<128x16xbf16>
    %154 = vector.shape_cast %153 : vector<128x16xbf16> to vector<1x128x16xbf16>
    %155 = vector.extract_strided_slice %122 {offsets = [0, 16], sizes = [128, 16], strides = [1, 1]} : vector<128x32xf32> to vector<128x16xf32>
    %156 = arith.truncf %155 : vector<128x16xf32> to vector<128x16xbf16>
    %157 = vector.shape_cast %156 : vector<128x16xbf16> to vector<1x128x16xbf16>
    "tpu.trace_start"() <{level = 10 : i32, message = "bqd,bkd->bqk"}> : () -> ()
    %cst_57 = arith.constant dense<0.000000e+00> : vector<1x8x128xf32>
    %158 = tpu.matmul %151, %154, %cst_57 {dimension_numbers = #tpu.dot_dimension_numbers<[2], [2], [1], [1], [0, 0, 0, 1, 1, 1], [0], [0]>} : vector<1x8x16xbf16>, vector<1x128x16xbf16>, vector<1x8x128xf32> -> vector<1x8x128xf32>
    "tpu.trace_stop"() : () -> ()
    %159 = arith.addf %158, %23 : vector<1x8x128xf32>
    %cst_58 = arith.constant dense<0xFF800000> : vector<1x8xf32>
    %160 = vector.multi_reduction <maximumf>, %159, %cst_58 [2] : vector<1x8x128xf32> to vector<1x8xf32>
    %161 = vector.shape_cast %160 : vector<1x8xf32> to vector<1x8x1xf32>
    %162 = vector.broadcast %161 : vector<1x8x1xf32> to vector<1x8x128xf32>
    %163 = arith.subf %159, %162 : vector<1x8x128xf32>
    %164 = math.exp %163 : vector<1x8x128xf32>
    %cst_59 = arith.constant dense<0.000000e+00> : vector<1x8xf32>
    %165 = vector.multi_reduction <add>, %164, %cst_59 [2] : vector<1x8x128xf32> to vector<1x8xf32>
    %166 = vector.shape_cast %165 : vector<1x8xf32> to vector<1x8x1xf32>
    %167 = tpu.reciprocal %166 {approx = true} : vector<1x8x1xf32> -> vector<1x8x1xf32>
    %168 = vector.broadcast %167 : vector<1x8x1xf32> to vector<1x8x128xf32>
    %169 = arith.mulf %164, %168 : vector<1x8x128xf32>
    %c0_60 = arith.constant 0 : index
    %c1 = arith.constant 1 : index
    %c0_61 = arith.constant 0 : index
    %c0_62 = arith.constant 0 : index
    %170 = vector.load %arg25[%c0_60, %c1, %c0_61, %c0_62] : memref<1x2x8x128xf32, #tpu.memory_space<vmem>>, vector<1x1x8x128xf32>
    %171 = vector.shape_cast %170 : vector<1x1x8x128xf32> to vector<1x8x128xf32>
    %172 = vector.shape_cast %169 : vector<1x8x128xf32> to vector<1x1x8x128xf32>
    tpu.vector_store %arg25[%c0_60, %c1, %c0_61, %c0_62], %172 {strides = array<i32>} : memref<1x2x8x128xf32, #tpu.memory_space<vmem>>, vector<1x1x8x128xf32>,
    %173 = arith.truncf %169 : vector<1x8x128xf32> to vector<1x8x128xbf16>
    "tpu.trace_start"() <{level = 10 : i32, message = "bqk,bkd->bqd"}> : () -> ()
    %cst_63 = arith.constant dense<0.000000e+00> : vector<1x8x16xf32>
    %174 = tpu.matmul %173, %157, %cst_63 {dimension_numbers = #tpu.dot_dimension_numbers<[2], [1], [1], [2], [0, 0, 0, 1, 1, 2], [0], [0]>} : vector<1x8x128xbf16>, vector<1x128x16xbf16>, vector<1x8x16xf32> -> vector<1x8x16xf32>
    "tpu.trace_stop"() : () -> ()
    %175 = tpu.concatenate %148, %174 in 2 : vector<1x8x16xf32>, vector<1x8x16xf32> -> vector<1x8x32xf32>
    %176 = vector.shape_cast %175 : vector<1x8x32xf32> to vector<8x32xf32>
    %177 = arith.truncf %176 : vector<8x32xf32> to vector<8x32xbf16>
    %c0_64 = arith.constant 0 : index
    %c0_65 = arith.constant 0 : index
    %178 = vector.load %arg14[%c0_64, %c0_65] : memref<32x32xbf16, #tpu.memory_space<vmem>>, vector<32x32xbf16>
    %cst_66 = arith.constant dense<0.000000e+00> : vector<8x32xf32>
    %179 = tpu.matmul %177, %178, %cst_66 {dimension_numbers = #tpu.dot_dimension_numbers<[1], [0], [0], [1], [0, 0, 1, 1], [], []>} : vector<8x32xbf16>, vector<32x32xbf16>, vector<8x32xf32> -> vector<8x32xf32>
    %c0_67 = arith.constant 0 : index
    %c0_68 = arith.constant 0 : index
    %180 = vector.load %arg15[%c0_67, %c0_68] : memref<1x32xf32, #tpu.memory_space<vmem>>, vector<1x32xf32>
    %181 = vector.broadcast %180 : vector<1x32xf32> to vector<8x32xf32>
    %182 = arith.addf %179, %181 : vector<8x32xf32>
    %183 = arith.addf %109, %182 : vector<8x32xf32>
    %cst_69 = arith.constant dense<0.000000e+00> : vector<8xf32>
    %184 = vector.multi_reduction <add>, %183, %cst_69 [1] : vector<8x32xf32> to vector<8xf32>
    %185 = vector.shape_cast %184 : vector<8xf32> to vector<8x1xf32>
    %cst_70 = arith.constant 3.200000e+01 : f32
    %186 = vector.broadcast %cst_70 : f32 to vector<8x1xf32>
    %187 = arith.divf %185, %186 : vector<8x1xf32>
    %188 = vector.broadcast %187 : vector<8x1xf32> to vector<8x32xf32>
    %189 = arith.subf %183, %188 : vector<8x32xf32>
    %190 = arith.mulf %189, %189 : vector<8x32xf32>
    %cst_71 = arith.constant dense<0.000000e+00> : vector<8xf32>
    %191 = vector.multi_reduction <add>, %190, %cst_71 [1] : vector<8x32xf32> to vector<8xf32>
    %192 = vector.shape_cast %191 : vector<8xf32> to vector<8x1xf32>
    %cst_72 = arith.constant 3.200000e+01 : f32
    %193 = vector.broadcast %cst_72 : f32 to vector<8x1xf32>
    %194 = arith.divf %192, %193 : vector<8x1xf32>
    %cst_73 = arith.constant 9.99999974E-6 : f32
    %195 = vector.broadcast %cst_73 : f32 to vector<8x1xf32>
    %196 = arith.addf %194, %195 : vector<8x1xf32>
    %197 = math.rsqrt %196 : vector<8x1xf32>
    %198 = vector.broadcast %197 : vector<8x1xf32> to vector<8x32xf32>
    %199 = arith.mulf %189, %198 : vector<8x32xf32>
    %c0_74 = arith.constant 0 : index
    %c0_75 = arith.constant 0 : index
    %200 = vector.load %arg16[%c0_74, %c0_75] : memref<1x32xf32, #tpu.memory_space<vmem>>, vector<1x32xf32>
    %201 = vector.broadcast %200 : vector<1x32xf32> to vector<8x32xf32>
    %202 = arith.mulf %199, %201 : vector<8x32xf32>
    %c0_76 = arith.constant 0 : index
    %c0_77 = arith.constant 0 : index
    %203 = vector.load %arg17[%c0_76, %c0_77] : memref<1x32xf32, #tpu.memory_space<vmem>>, vector<1x32xf32>
    %204 = vector.broadcast %203 : vector<1x32xf32> to vector<8x32xf32>
    %205 = arith.addf %202, %204 : vector<8x32xf32>
    %206 = arith.truncf %205 : vector<8x32xf32> to vector<8x32xbf16>
    %c0_78 = arith.constant 0 : index
    %c0_79 = arith.constant 0 : index
    %207 = vector.load %arg18[%c0_78, %c0_79] : memref<32x64xbf16, #tpu.memory_space<vmem>>, vector<32x64xbf16>
    %cst_80 = arith.constant dense<0.000000e+00> : vector<8x64xf32>
    %208 = tpu.matmul %206, %207, %cst_80 {dimension_numbers = #tpu.dot_dimension_numbers<[1], [0], [0], [1], [0, 0, 1, 1], [], []>} : vector<8x32xbf16>, vector<32x64xbf16>, vector<8x64xf32> -> vector<8x64xf32>
    %c0_81 = arith.constant 0 : index
    %c0_82 = arith.constant 0 : index
    %209 = vector.load %arg19[%c0_81, %c0_82] : memref<1x64xf32, #tpu.memory_space<vmem>>, vector<1x64xf32>
    %210 = vector.broadcast %209 : vector<1x64xf32> to vector<8x64xf32>
    %211 = arith.addf %208, %210 : vector<8x64xf32>
    %cst_83 = arith.constant 0.000000e+00 : f32
    %212 = vector.broadcast %cst_83 : f32 to vector<8x64xf32>
    %213 = arith.maximumf %211, %212 : vector<8x64xf32>
    %214 = arith.truncf %213 : vector<8x64xf32> to vector<8x64xbf16>
    %c0_84 = arith.constant 0 : index
    %c0_85 = arith.constant 0 : index
    %215 = vector.load %arg20[%c0_84, %c0_85] : memref<64x32xbf16, #tpu.memory_space<vmem>>, vector<64x32xbf16>
    %cst_86 = arith.constant dense<0.000000e+00> : vector<8x32xf32>
    %216 = tpu.matmul %214, %215, %cst_86 {dimension_numbers = #tpu.dot_dimension_numbers<[1], [0], [0], [1], [0, 0, 1, 1], [], []>} : vector<8x64xbf16>, vector<64x32xbf16>, vector<8x32xf32> -> vector<8x32xf32>
    %c0_87 = arith.constant 0 : index
    %c0_88 = arith.constant 0 : index
    %217 = vector.load %arg21[%c0_87, %c0_88] : memref<1x32xf32, #tpu.memory_space<vmem>>, vector<1x32xf32>
    %218 = vector.broadcast %217 : vector<1x32xf32> to vector<8x32xf32>
    %219 = arith.addf %216, %218 : vector<8x32xf32>
    %220 = arith.addf %205, %219 : vector<8x32xf32>
    %cst_89 = arith.constant dense<0.000000e+00> : vector<8xf32>
    %221 = vector.multi_reduction <add>, %220, %cst_89 [1] : vector<8x32xf32> to vector<8xf32>
    %222 = vector.shape_cast %221 : vector<8xf32> to vector<8x1xf32>
    %cst_90 = arith.constant 3.200000e+01 : f32
    %223 = vector.broadcast %cst_90 : f32 to vector<8x1xf32>
    %224 = arith.divf %222, %223 : vector<8x1xf32>
    %225 = vector.broadcast %224 : vector<8x1xf32> to vector<8x32xf32>
    %226 = arith.subf %220, %225 : vector<8x32xf32>
    %227 = arith.mulf %226, %226 : vector<8x32xf32>
    %cst_91 = arith.constant dense<0.000000e+00> : vector<8xf32>
    %228 = vector.multi_reduction <add>, %227, %cst_91 [1] : vector<8x32xf32> to vector<8xf32>
    %229 = vector.shape_cast %228 : vector<8xf32> to vector<8x1xf32>
    %cst_92 = arith.constant 3.200000e+01 : f32
    %230 = vector.broadcast %cst_92 : f32 to vector<8x1xf32>
    %231 = arith.divf %229, %230 : vector<8x1xf32>
    %cst_93 = arith.constant 9.99999974E-6 : f32
    %232 = vector.broadcast %cst_93 : f32 to vector<8x1xf32>
    %233 = arith.addf %231, %232 : vector<8x1xf32>
    %234 = math.rsqrt %233 : vector<8x1xf32>
    %235 = vector.broadcast %234 : vector<8x1xf32> to vector<8x32xf32>
    %236 = arith.mulf %226, %235 : vector<8x32xf32>
    %c0_94 = arith.constant 0 : index
    %c0_95 = arith.constant 0 : index
    %237 = vector.load %arg22[%c0_94, %c0_95] : memref<1x32xf32, #tpu.memory_space<vmem>>, vector<1x32xf32>
    %238 = vector.broadcast %237 : vector<1x32xf32> to vector<8x32xf32>
    %239 = arith.mulf %236, %238 : vector<8x32xf32>
    %c0_96 = arith.constant 0 : index
    %c0_97 = arith.constant 0 : index
    %240 = vector.load %arg23[%c0_96, %c0_97] : memref<1x32xf32, #tpu.memory_space<vmem>>, vector<1x32xf32>
    %241 = vector.broadcast %240 : vector<1x32xf32> to vector<8x32xf32>
    %242 = arith.addf %239, %241 : vector<8x32xf32>
    %243 = vector.shape_cast %242 : vector<8x32xf32> to vector<1x8x32xf32>
    %c0_98 = arith.constant 0 : index
    %c0_99 = arith.constant 0 : index
    %c0_100 = arith.constant 0 : index
    %244 = vector.load %arg24[%c0_98, %c0_99, %c0_100] : memref<1x8x32xf32, #tpu.memory_space<vmem>>, vector<1x8x32xf32>
    tpu.vector_store %arg24[%c0_98, %c0_99, %c0_100], %243 {strides = array<i32>} : memref<1x8x32xf32, #tpu.memory_space<vmem>>, vector<1x8x32xf32>,
    return
  }
  func.func @transform_0(%arg0: i32) -> (i32, i32, i32) {
    %c0_i32 = arith.constant 0 : i32
    %c0_i32_0 = arith.constant 0 : i32
    %c0_i32_1 = arith.constant 0 : i32
    return %arg0, %c0_i32, %c0_i32_0 : i32, i32, i32
  }
  func.func @transform_1(%arg0: i32) -> (i32, i32, i32) {
    %c0_i32 = arith.constant 0 : i32
    %c0_i32_0 = arith.constant 0 : i32
    %c0_i32_1 = arith.constant 0 : i32
    return %arg0, %c0_i32, %c0_i32_0 : i32, i32, i32
  }
  func.func @transform_2(%arg0: i32) -> (i32, i32, i32) {
    %c0_i32 = arith.constant 0 : i32
    %c0_i32_0 = arith.constant 0 : i32
    %c0_i32_1 = arith.constant 0 : i32
    return %arg0, %c0_i32, %c0_i32_0 : i32, i32, i32
  }
  func.func @transform_3(%arg0: i32) -> (i32, i32) {
    %c0_i32 = arith.constant 0 : i32
    %c0_i32_0 = arith.constant 0 : i32
    %c0_i32_1 = arith.constant 0 : i32
    return %c0_i32, %c0_i32_0 : i32, i32
  }
  func.func @transform_4(%arg0: i32) -> (i32, i32) {
    %c0_i32 = arith.constant 0 : i32
    %c0_i32_0 = arith.constant 0 : i32
    %c0_i32_1 = arith.constant 0 : i32
    return %c0_i32, %c0_i32_0 : i32, i32
  }
  func.func @transform_5(%arg0: i32) -> (i32, i32) {
    %c0_i32 = arith.constant 0 : i32
    %c0_i32_0 = arith.constant 0 : i32
    %c0_i32_1 = arith.constant 0 : i32
    return %c0_i32, %c0_i32_0 : i32, i32
  }
  func.func @transform_6(%arg0: i32) -> (i32, i32) {
    %c0_i32 = arith.constant 0 : i32
    %c0_i32_0 = arith.constant 0 : i32
    %c0_i32_1 = arith.constant 0 : i32
    return %c0_i32, %c0_i32_0 : i32, i32
  }
  func.func @transform_7(%arg0: i32) -> (i32, i32) {
    %c0_i32 = arith.constant 0 : i32
    %c0_i32_0 = arith.constant 0 : i32
    %c0_i32_1 = arith.constant 0 : i32
    return %c0_i32, %c0_i32_0 : i32, i32
  }
  func.func @transform_8(%arg0: i32) -> (i32, i32) {
    %c0_i32 = arith.constant 0 : i32
    %c0_i32_0 = arith.constant 0 : i32
    %c0_i32_1 = arith.constant 0 : i32
    return %c0_i32, %c0_i32_0 : i32, i32
  }
  func.func @transform_9(%arg0: i32) -> (i32, i32) {
    %c0_i32 = arith.constant 0 : i32
    %c0_i32_0 = arith.constant 0 : i32
    %c0_i32_1 = arith.constant 0 : i32
    return %c0_i32, %c0_i32_0 : i32, i32
  }
  func.func @transform_10(%arg0: i32) -> (i32, i32) {
    %c0_i32 = arith.constant 0 : i32
    %c0_i32_0 = arith.constant 0 : i32
    %c0_i32_1 = arith.constant 0 : i32
    return %c0_i32, %c0_i32_0 : i32, i32
  }
  func.func @transform_11(%arg0: i32) -> (i32, i32) {
    %c0_i32 = arith.constant 0 : i32
    %c0_i32_0 = arith.constant 0 : i32
    %c0_i32_1 = arith.constant 0 : i32
    return %c0_i32, %c0_i32_0 : i32, i32
  }
  func.func @transform_12(%arg0: i32) -> (i32, i32) {
    %c0_i32 = arith.constant 0 : i32
    %c0_i32_0 = arith.constant 0 : i32
    %c0_i32_1 = arith.constant 0 : i32
    return %c0_i32, %c0_i32_0 : i32, i32
  }
  func.func @transform_13(%arg0: i32) -> (i32, i32) {
    %c0_i32 = arith.constant 0 : i32
    %c0_i32_0 = arith.constant 0 : i32
    %c0_i32_1 = arith.constant 0 : i32
    return %c0_i32, %c0_i32_0 : i32, i32
  }
  func.func @transform_14(%arg0: i32) -> (i32, i32) {
    %c0_i32 = arith.constant 0 : i32
    %c0_i32_0 = arith.constant 0 : i32
    %c0_i32_1 = arith.constant 0 : i32
    return %c0_i32, %c0_i32_0 : i32, i32
  }
  func.func @transform_15(%arg0: i32) -> (i32, i32) {
    %c0_i32 = arith.constant 0 : i32
    %c0_i32_0 = arith.constant 0 : i32
    %c0_i32_1 = arith.constant 0 : i32
    return %c0_i32, %c0_i32_0 : i32, i32
  }
  func.func @transform_16(%arg0: i32) -> (i32, i32) {
    %c0_i32 = arith.constant 0 : i32
    %c0_i32_0 = arith.constant 0 : i32
    %c0_i32_1 = arith.constant 0 : i32
    return %c0_i32, %c0_i32_0 : i32, i32
  }
  func.func @transform_17(%arg0: i32) -> (i32, i32) {
    %c0_i32 = arith.constant 0 : i32
    %c0_i32_0 = arith.constant 0 : i32
    %c0_i32_1 = arith.constant 0 : i32
    return %c0_i32, %c0_i32_0 : i32, i32
  }
  func.func @transform_18(%arg0: i32) -> (i32, i32) {
    %c0_i32 = arith.constant 0 : i32
    %c0_i32_0 = arith.constant 0 : i32
    %c0_i32_1 = arith.constant 0 : i32
    return %c0_i32, %c0_i32_0 : i32, i32
  }
  func.func @transform_19(%arg0: i32) -> (i32, i32) {
    %c0_i32 = arith.constant 0 : i32
    %c0_i32_0 = arith.constant 0 : i32
    %c0_i32_1 = arith.constant 0 : i32
    return %c0_i32, %c0_i32_0 : i32, i32
  }
  func.func @transform_20(%arg0: i32) -> (i32, i32) {
    %c0_i32 = arith.constant 0 : i32
    %c0_i32_0 = arith.constant 0 : i32
    %c0_i32_1 = arith.constant 0 : i32
    return %c0_i32, %c0_i32_0 : i32, i32
  }
  func.func @transform_21(%arg0: i32) -> (i32, i32) {
    %c0_i32 = arith.constant 0 : i32
    %c0_i32_0 = arith.constant 0 : i32
    %c0_i32_1 = arith.constant 0 : i32
    return %c0_i32, %c0_i32_0 : i32, i32
  }
  func.func @transform_22(%arg0: i32) -> (i32, i32) {
    %c0_i32 = arith.constant 0 : i32
    %c0_i32_0 = arith.constant 0 : i32
    %c0_i32_1 = arith.constant 0 : i32
    return %c0_i32, %c0_i32_0 : i32, i32
  }
  func.func @transform_23(%arg0: i32) -> (i32, i32, i32) {
    %c0_i32 = arith.constant 0 : i32
    %c0_i32_0 = arith.constant 0 : i32
    %c0_i32_1 = arith.constant 0 : i32
    return %arg0, %c0_i32, %c0_i32_0 : i32, i32, i32
  }
  func.func @transform_24(%arg0: i32) -> (i32, i32, i32, i32) {
    %c0_i32 = arith.constant 0 : i32
    %c0_i32_0 = arith.constant 0 : i32
    %c0_i32_1 = arith.constant 0 : i32
    %c0_i32_2 = arith.constant 0 : i32
    return %arg0, %c0_i32, %c0_i32_0, %c0_i32_1 : i32, i32, i32, i32
  }
}

module attributes {stable_mosaic.version = 11 : i64} {
  func.func @_matmul_kernel(%arg0: i32, %arg1: i32, %arg2: memref<16x32xf32, #tpu.memory_space<vmem>>, %arg3: memref<32x128xbf16, #tpu.memory_space<vmem>>, %arg4: memref<16x128xf32, #tpu.memory_space<vmem>>) attributes {dimension_semantics = [#tpu.dimension_semantics<parallel>, #tpu.dimension_semantics<parallel>], iteration_bounds = array<i64: 1, 1>, scalar_prefetch = 0 : i64, scratch_operands = 0 : i64, tpu.core_type = #tpu.core_type<tc>, window_params = [{transform_indices = @transform_0, window_bounds = array<i64: 16, 32>}, {transform_indices = @transform_1, window_bounds = array<i64: 32, 128>}, {transform_indices = @transform_2, window_bounds = array<i64: 16, 128>}]} {
    %c0 = arith.constant 0 : index
    %c0_0 = arith.constant 0 : index
    %0 = vector.load %arg2[%c0, %c0_0] : memref<16x32xf32, #tpu.memory_space<vmem>>, vector<16x32xf32>
    %1 = arith.truncf %0 : vector<16x32xf32> to vector<16x32xbf16>
    %c0_1 = arith.constant 0 : index
    %c0_2 = arith.constant 0 : index
    %2 = vector.load %arg3[%c0_1, %c0_2] : memref<32x128xbf16, #tpu.memory_space<vmem>>, vector<32x128xbf16>
    %cst = arith.constant dense<0.000000e+00> : vector<16x128xf32>
    %3 = tpu.matmul %1, %2, %cst {dimension_numbers = #tpu.dot_dimension_numbers<[1], [0], [0], [1], [0, 0, 1, 1], [], []>} : vector<16x32xbf16>, vector<32x128xbf16>, vector<16x128xf32> -> vector<16x128xf32>
    %c0_3 = arith.constant 0 : index
    %c0_4 = arith.constant 0 : index
    %4 = vector.load %arg4[%c0_3, %c0_4] : memref<16x128xf32, #tpu.memory_space<vmem>>, vector<16x128xf32>
    tpu.vector_store %arg4[%c0_3, %c0_4], %3 {strides = array<i32>} : memref<16x128xf32, #tpu.memory_space<vmem>>, vector<16x128xf32>,
    return
  }
  func.func @transform_0(%arg0: i32, %arg1: i32) -> (i32, i32) {
    %c0_i32 = arith.constant 0 : i32
    %c0_i32_0 = arith.constant 0 : i32
    return %arg0, %c0_i32 : i32, i32
  }
  func.func @transform_1(%arg0: i32, %arg1: i32) -> (i32, i32) {
    %c0_i32 = arith.constant 0 : i32
    %c0_i32_0 = arith.constant 0 : i32
    return %c0_i32, %arg1 : i32, i32
  }
  func.func @transform_2(%arg0: i32, %arg1: i32) -> (i32, i32) {
    %c0_i32 = arith.constant 0 : i32
    return %arg0, %arg1 : i32, i32
  }
}

</mosaic_0001>

<bundles_post_ra>
// kernel: decoder_with_transformer_forward.7
= control target key start
LH: loop header
LB: loop body
LE: loop exit
PB: predicated region body
PF: predicated region fallthrough
CT: control target
= control target key end

     0   :  { %v100_v0 = vmov 0.0   ;;  %vm101_vm0 = vmmov 0   ;;  %vm31_vm1 = vcmask 261120   ;;  %s135_s1 = inlined_call_operand.vmem [shape: bf16[32,128], index: 1, kind: input, shape index: {}]   ;;  %s136_s0 = inlined_call_operand.vmem [shape: f32[16,32], index: 0, kind: input, shape index: {}]   ;;  %s137_s2 = inlined_call_operand.vmem [shape: f32[16,128], index: 2, kind: output, shape index: {}]  }
   0x1   :  { %88 = vmatprep.subr.bf16.mxu0 %v100_v0  ;;  %v98_v1 = vld [vmem:[%s135_s1] sm:$0xff]   ;;  %92 = vmatprep.mubr.msk.bf16.mxu0 %vm101_vm0, %v100_v0  ;;  %v99_v2 = vld [vmem:[%s135_s1 + $0x8] sm:$0xff]  }
   0x2   :  { %89 = vmatpush3.bf16.msra.mxu0 %v98_v1  ;;  %v12_v3 = vld [vmem:[%s136_s0] sm:$0xff]  ;;  %v13_v4 = vld [vmem:[%s136_s0 + $0x8] sm:$0xff] }
   0x3   :  { %90 = vmatprep.subr.bf16.mxu0 %v100_v0  ;;  %v14_v5 = vpack.c.bf16 %v13_v4, %v12_v3 }
   0x6   :  { %91 = vmatpush3.bf16.msra.mxu0 %v99_v2 }
   0x9   :  { %93 = vmatmul.mubr.msk.bf16.vlgmr.msra.gmra.mrb[0].mxu0 %vm31_vm1, %v14_v5 }
  0xdc   :  { %v69_v6 = vpop.f32.mrb[0].mxu0 }
  0xdd   :  { %76 = vst [vmem:[%s137_s2] sm:$0xff] %v69_v6  ;;  %v94_v7 = vpop.f32.mrb[1].mxu0 }
  0xde   :  { %v72_v8 = vpop.f32.mrb[2].mxu0 }
  0xdf   :  { %77 = vst [vmem:[%s137_s2 + $0x8] sm:$0xff] %v72_v8  ;;  %v95_v9 = vpop.f32.mrb[3].mxu0 }

// kernel: decoder_with_transformer_forward.5
= control target key start
LH: loop header
LB: loop body
LE: loop exit
PB: predicated region body
PF: predicated region fallthrough
CT: control target
= control target key end

     0   :  { %s5415_s0 = inlined_call_operand.hbm [shape: f32[2,8,32], index: 0, kind: input, shape index: {}]   ;;  %s5416_s1 = inlined_call_operand.hbm [shape: bf16[2,128,32], index: 1, kind: input, shape index: {}]   ;;  %s5417_s2 = inlined_call_operand.hbm [shape: f32[2,1,8], index: 2, kind: input, shape index: {}]   ;;  %s5418_s3 = inlined_call_operand.hbm [shape: bf16[32,96], index: 3, kind: input, shape index: {}]   ;;  %s5419_s4 = inlined_call_operand.hbm [shape: f32[1,96], index: 4, kind: input, shape index: {}]   ;;  %s5420_s5 = inlined_call_operand.hbm [shape: bf16[32,32], index: 5, kind: input, shape index: {}]   ;;  %s5421_s6 = inlined_call_operand.hbm [shape: f32[1,32], index: 6, kind: input, shape index: {}]   ;;  %s5422_s7 = inlined_call_operand.hbm [shape: f32[1,32], index: 7, kind: input, shape index: {}]   ;;  %s5423_s8 = inlined_call_operand.hbm [shape: f32[1,32], index: 8, kind: input, shape index: {}]   ;;  %s5424_s9 = inlined_call_operand.hbm [shape: bf16[32,32], index: 9, kind: input, shape index: {}]   ;;  %s5425_s10 = inlined_call_operand.hbm [shape: f32[1,32], index: 10, kind: input, shape index: {}]   ;;  %s5426_s11 = inlined_call_operand.hbm [shape: bf16[32,64], index: 11, kind: input, shape index: {}]   ;;  %s5427_s12 = inlined_call_operand.hbm [shape: f32[1,64], index: 12, kind: input, shape index: {}]   ;;  %s5428_s13 = inlined_call_operand.hbm [shape: bf16[32,32], index: 13, kind: input, shape index: {}]   ;;  %s5429_s14 = inlined_call_operand.hbm [shape: f32[1,32], index: 14, kind: input, shape index: {}]   ;;  %s5430_s15 = inlined_call_operand.hbm [shape: f32[1,32], index: 15, kind: input, shape index: {}]   ;;  %s5431_s16 = inlined_call_operand.hbm [shape: f32[1,32], index: 16, kind: input, shape index: {}]   ;;  %s5432_s17 = inlined_call_operand.hbm [shape: bf16[32,64], index: 17, kind: input, shape index: {}]   ;;  %s5433_s18 = inlined_call_operand.hbm [shape: f32[1,64], index: 18, kind: input, shape index: {}]   ;;  %s5434_s19 = inlined_call_operand.hbm [shape: bf16[64,32], index: 19, kind: input, shape index: {}]   ;;  %s5435_s20 = inlined_call_operand.hbm [shape: f32[1,32], index: 20, kind: input, shape index: {}]   ;;  %s5436_s21 = inlined_call_operand.hbm [shape: f32[1,32], index: 21, kind: input, shape index: {}]   ;;  %s5437_s22 = inlined_call_operand.hbm [shape: f32[1,32], index: 22, kind: input, shape index: {}]   ;;  %s5438_s23 = inlined_call_operand.hbm [shape: f32[2,8,32], index: 23, kind: output, shape index: {0}]   ;;  %s5439_s24 = inlined_call_operand.hbm [shape: f32[2,2,8,128], index: 24, kind: output, shape index: {1}]  }
   0x1   :  { %5486 = sst [smem:[#allocation57_spill]] %s5415_s0 }
   0x2   :  { %5487 = sst [smem:[#allocation58_spill]] %s5416_s1 }
   0x3   :  { %5488 = sst [smem:[#allocation59_spill]] %s5417_s2 }
   0x4   :  { %5489 = sst [smem:[#allocation60_spill]] %s5418_s3 }
   0x5   :  { %5490 = sst [smem:[#allocation61_spill]] %s5419_s4 }
   0x6   :  { %5491 = sst [smem:[#allocation62_spill]] %s5420_s5 }
   0x7   :  { %5492 = sst [smem:[#allocation63_spill]] %s5421_s6 }
   0x8   :  { %5493 = sst [smem:[#allocation64_spill]] %s5422_s7 }
   0x9   :  { %5494 = sst [smem:[#allocation65_spill]] %s5423_s8 }
   0xa   :  { %5495 = sst [smem:[#allocation66_spill]] %s5424_s9 }
   0xb   :  { %5496 = sst [smem:[#allocation67_spill]] %s5425_s10 }
   0xc   :  { %5497 = sst [smem:[#allocation68_spill]] %s5426_s11 }
   0xd   :  { %5498 = sst [smem:[#allocation69_spill]] %s5427_s12 }
   0xe   :  { %5499 = sst [smem:[#allocation70_spill]] %s5428_s13 }
   0xf   :  { %5500 = sst [smem:[#allocation71_spill]] %s5429_s14 }
  0x10   :  { %5501 = sst [smem:[#allocation72_spill]] %s5430_s15 }
  0x11   :  { %5502 = sst [smem:[#allocation73_spill]] %s5431_s16 }
  0x12   :  { %5503 = sst [smem:[#allocation74_spill]] %s5432_s17 }
  0x13   :  { %5504 = sst [smem:[#allocation75_spill]] %s5433_s18 }
  0x14   :  { %5505 = sst [smem:[#allocation76_spill]] %s5434_s19 }
  0x15   :  { %5506 = sst [smem:[#allocation77_spill]] %s5435_s20 }
  0x16   :  { %5507 = sst [smem:[#allocation78_spill]] %s5436_s21 }
  0x17   :  { %5508 = sst [smem:[#allocation79_spill]] %s5437_s22 }
  0x18   :  { %5509 = sst [smem:[#allocation80_spill]] %s5438_s23 }
  0x19   :  { %5510 = sst [smem:[#allocation81_spill]] %s5439_s24 }
  0x1a   :  { %30 = vsyncpa [#allocation3], 0 }
  0x1b   :  { %32 = vsyncpa [#allocation3 + $0x1], 0 }
  0x1c   :  { %33 = vsyncpa [#allocation6], 0 }
  0x1d   :  { %35 = vsyncpa [#allocation6 + $0x1], 0 }
  0x1e   :  { %36 = vsyncpa [#allocation9], 0 }
  0x1f   :  { %37 = vsyncpa [#allocation12], 0 }
  0x20   :  { %38 = vsyncpa [#allocation15], 0 }
  0x21   :  { %39 = vsyncpa [#allocation18], 0 }
  0x22   :  { %40 = vsyncpa [#allocation21], 0 }
  0x23   :  { %41 = vsyncpa [#allocation24], 0 }
  0x24   :  { %42 = vsyncpa [#allocation27], 0 }
  0x25   :  { %43 = vsyncpa [#allocation30], 0 }
  0x26   :  { %44 = vsyncpa [#allocation33], 0 }
  0x27   :  { %45 = vsyncpa [#allocation36], 0 }
  0x28   :  { %46 = vsyncpa [#allocation4], 0 }
  0x29   :  { %48 = vsyncpa [#allocation4 + $0x1], 0 }
  0x2a   :  { %49 = vsyncpa [#allocation40], 0 }
  0x2b   :  { %51 = vsyncpa [#allocation40 + $0x1], 0  ;;  %s4403_s5 = smov 0   ;;  %s4405_s26 = smov 0  }
  0x2c   :  { %s4407_s27 = smov 0   ;;  %s4409_s28 = smov 0  }
  0x2d LB: > { %s4239_s6 = smov [#allocation8]   ;;  %s4424_s29 = sadd.s32 4294967295, %s4237_s28   ;;  %s4237_s28 = sphi %s4409_s28, %s5583_s28   ;;  %s4233_s27 = sphi %s4407_s27, %s5582_s27   ;;  %s4229_s26 = sphi %s4405_s26, %s5581_s26   ;;  %s4225_s5 = sphi %s4403_s5, %s5580_s5  }
  0x2e   : > { %s624_s2 = sshll.u32 %s4239_s6, 4  ;;  %p2753_p0 = scmp.ge.s32.totalorder %s4237_s28, 1  ;;  %s4429_s2 = int_to_ptr.vmem [resolvable:$true] %s624_s2 }
  0x2f   : > { %p5462_p1 = scmp.eq.s32.totalorder %s4424_s29, 0  ;;  %p612_p2 = scmp.lt.s32.totalorder %s4237_s28, 3 }
  0x30   : > { %s4240_s7 = smov [#allocation11]   ;;  %s4241_s25 = smov [#allocation14]  }
  0x31   : > { %p4431_p3 = pnand %p2753_p0, %p612_p2  ;;  %s648_s30 = sshll.u32 %s4240_s7, 4  ;;  %s4444_s30 = int_to_ptr.vmem [resolvable:$true] %s648_s30 }
  0x32   : > { %s673_s8 = sshll.u32 %s4241_s25, 4  ;;  %s5514_s6 = sld [smem:[#allocation60_spill]]  ;;  %s4446_s8 = int_to_ptr.vmem [resolvable:$true] %s673_s8 }
  0x33   : > { %s5511_s0 = scalar_select %p4431_p3, 1, 0 }
  0x34   : > { %p3213_p5 = pneg %p4431_p3 }
  0x35   : > { %5512 = sst [smem:[#allocation55_spill]] %s5511_s0 }
  0x36   : > { %p4440_p6 = pnand %p3213_p5, %p5462_p1 }
  0x38   : > { %s5513_s3 = scalar_select %p4440_p6, 1, 0 }
  0x39   : > { %s3445_s23 = scalar_lea.hbm %s5514_s6, 256  ;;  %p4456_p8 = pneg %p4440_p6 }
  0x3a   : > { %p3446_p7 = scmp.ne.s32.totalorder %s5514_s6, %s3445_s23  ;;  %p3452_p11 = scmp.lt.u32.totalorder %s3445_s23, %s5514_s6 }
  0x3b   : > { %s5515_s7 = scalar_select %p4456_p8, 1, 0 }
  0x3c   : > { %p3448_p9 = pnand %p4456_p8, %p3446_p7 }
  0x3e   : > { %p3449_p10 = pneg %p3448_p9 }
  0x40   : > { %p3454_p12 = pnand %p3452_p11, %p3449_p10 }
  0x42   : > { %3457 = shalt.err (!%p3454_p12)
}
  0x43   : > { %s3458_s24 = scalar_lea.vmem %s4429_s2, 256  ;;  %p3466_p5 = scmp.lt.s32.totalorder %s4429_s2, %s4429_s2 }
  0x44   : > { %p3459_p13 = scmp.ne.s32.totalorder %s4429_s2, %s3458_s24  ;;  %p3467_p4 = scmp.lt.s32.totalorder %s3458_s24, %s3458_s24 }
  0x46   : > { %p3461_p0 = pnand %p3459_p13, %p4456_p8  ;;  %p3468_p7 = por %p3467_p4, %p3466_p5 }
  0x48   : > { %p3462_p2 = pneg %p3461_p0 }
  0x4a   : > { %p3469_p9 = pnand %p3468_p7, %p3462_p2 }
  0x4c   : > { %3472 = shalt.err (!%p3469_p9)
}
  0x4d   : > { %s5458_s0 = smov 64   ;;  %s5460_s22 = smov 4  }
  0x4e   : > { %3216 = dma.hbm_to_vmem [thread:$0]  (!%p4440_p6), %s5514_s6, 256, %s4429_s2, [#allocation9], %s5458_s0, %s5458_s0, %s5460_s22  }
  0x4f   : > { %s5516_s20 = sld [smem:[#allocation62_spill]] }
  0x55   : > { %s3473_s24 = scalar_lea.hbm %s5516_s20, 256 }
  0x56   : > { %p3474_p4 = scmp.ne.s32.totalorder %s5516_s20, %s3473_s24  ;;  %p3480_p12 = scmp.lt.u32.totalorder %s3473_s24, %s5516_s20 }
  0x58   : > { %p3476_p10 = pnand %p3474_p4, %p4456_p8 }
  0x5a   : > { %p3477_p11 = pneg %p3476_p10 }
  0x5c   : > { %p3482_p13 = pnand %p3480_p12, %p3477_p11 }
  0x5e   : > { %3485 = shalt.err (!%p3482_p13)
}
  0x5f   : > { %s3486_s2 = scalar_lea.vmem %s4444_s30, 256  ;;  %p3494_p7 = scmp.lt.s32.totalorder %s4444_s30, %s4444_s30 }
  0x60   : > { %p3487_p0 = scmp.ne.s32.totalorder %s4444_s30, %s3486_s2  ;;  %p3495_p9 = scmp.lt.s32.totalorder %s3486_s2, %s3486_s2 }
  0x62   : > { %p3489_p2 = pnand %p3487_p0, %p4456_p8  ;;  %p3496_p4 = por %p3495_p9, %p3494_p7 }
  0x64   : > { %p3490_p5 = pneg %p3489_p2 }
  0x66   : > { %p3497_p10 = pnand %p3496_p4, %p3490_p5 }
  0x68   : > { %3500 = shalt.err (!%p3497_p10)
}
  0x69   : > { %3222 = dma.hbm_to_vmem [thread:$0]  (!%p4440_p6), %s5516_s20, 256, %s4444_s30, [#allocation12], %s5458_s0, %s5458_s0, %s5460_s22  }
  0x6a   : > { %s5517_s23 = sld [smem:[#allocation64_spill]] }
  0x70   : > { %s3501_s4 = scalar_lea.hbm %s5517_s23, 16 }
  0x71   : > { %p3502_p11 = scmp.ne.s32.totalorder %s5517_s23, %s3501_s4  ;;  %p3508_p0 = scmp.lt.u32.totalorder %s3501_s4, %s5517_s23 }
  0x73   : > { %p3504_p12 = pnand %p3502_p11, %p4456_p8 }
  0x75   : > { %p3505_p13 = pneg %p3504_p12 }
  0x77   : > { %p3510_p2 = pnand %p3508_p0, %p3505_p13 }
  0x79   : > { %3513 = shalt.err (!%p3510_p2)
}
  0x7a   : > { %s3514_s30 = scalar_lea.vmem %s4446_s8, 16  ;;  %s3521_s12 = scalar_lea.vmem %s4446_s8, 32 }
  0x7b   : > { %p3515_p5 = scmp.ne.s32.totalorder %s4446_s8, %s3514_s30  ;;  %p3522_p4 = scmp.lt.s32.totalorder %s4446_s8, %s4446_s8 }
  0x7c   : > { %p3523_p10 = scmp.lt.s32.totalorder %s3521_s12, %s3514_s30 }
  0x7d   : > { %p3517_p7 = pnand %p3515_p5, %p4456_p8 }
  0x7e   : > { %p3524_p11 = por %p3523_p10, %p3522_p4 }
  0x7f   : > { %p3518_p9 = pneg %p3517_p7 }
  0x81   : > { %p3525_p12 = pnand %p3524_p11, %p3518_p9 }
  0x83   : > { %3528 = shalt.err (!%p3525_p12)
}
  0x84   : > { %3228 = dma.hbm_to_vmem [thread:$0]  (!%p4440_p6), %s5517_s23, 16, %s4446_s8, [#allocation15]  }
  0x85   : > { %s4244_s18 = smov [#allocation17]   ;;  %s4245_s1 = smov [#allocation20]  }
  0x86   : > { %s694_s4 = sshll.u32 %s4244_s18, 4  ;;  %s718_s25 = sshll.u32 %s4245_s1, 4  ;;  %s695_s4 = int_to_ptr.vmem [resolvable:$true] %s694_s4  ;;  %s719_s25 = int_to_ptr.vmem [resolvable:$true] %s718_s25 }
  0x87   : > { %s5518_s9 = sld [smem:[#allocation66_spill]] }
  0x8d   : > { %s3529_s30 = scalar_lea.hbm %s5518_s9, 256 }
  0x8e   : > { %p3530_p13 = scmp.ne.s32.totalorder %s5518_s9, %s3529_s30  ;;  %p3536_p5 = scmp.lt.u32.totalorder %s3529_s30, %s5518_s9 }
  0x90   : > { %p3532_p0 = pnand %p3530_p13, %p4456_p8 }
  0x92   : > { %p3533_p2 = pneg %p3532_p0 }
  0x94   : > { %p3538_p7 = pnand %p3536_p5, %p3533_p2 }
  0x96   : > { %3541 = shalt.err (!%p3538_p7)
}
  0x97   : > { %s3542_s8 = scalar_lea.vmem %s695_s4, 256  ;;  %p3550_p11 = scmp.lt.s32.totalorder %s695_s4, %s695_s4 }
  0x98   : > { %p3543_p9 = scmp.ne.s32.totalorder %s695_s4, %s3542_s8  ;;  %p3551_p12 = scmp.lt.s32.totalorder %s3542_s8, %s3542_s8 }
  0x9a   : > { %p3545_p4 = pnand %p3543_p9, %p4456_p8  ;;  %p3552_p1 = por %p3551_p12, %p3550_p11 }
  0x9c   : > { %p3546_p10 = pneg %p3545_p4 }
  0x9e   : > { %p3553_p3 = pnand %p3552_p1, %p3546_p10 }
  0xa0   : > { %3556 = shalt.err (!%p3553_p3)
}
  0xa1   : > { %s5519_s0 = smov 4   ;;  %s5520_s16 = smov 64  }
  0xa2   : > { %3234 = dma.hbm_to_vmem [thread:$0]  (!%p4440_p6), %s5518_s9, 256, %s695_s4, [#allocation18], %s5520_s16, %s5520_s16, %s5519_s0  }
  0xa3   : > { %s5521_s11 = sld [smem:[#allocation68_spill]] }
  0xa9   : > { %s3557_s2 = scalar_lea.hbm %s5521_s11, 256 }
  0xaa   : > { %p3558_p1 = scmp.ne.s32.totalorder %s5521_s11, %s3557_s2  ;;  %p3564_p0 = scmp.lt.u32.totalorder %s3557_s2, %s5521_s11 }
  0xac   : > { %p3560_p3 = pnand %p3558_p1, %p4456_p8 }
  0xae   : > { %p3561_p13 = pneg %p3560_p3 }
  0xb0   : > { %p3566_p2 = pnand %p3564_p0, %p3561_p13 }
  0xb2   : > { %3569 = shalt.err (!%p3566_p2)
}
  0xb3   : > { %s3570_s22 = scalar_lea.vmem %s719_s25, 256  ;;  %p3578_p4 = scmp.lt.s32.totalorder %s719_s25, %s719_s25 }
  0xb4   : > { %p3571_p5 = scmp.ne.s32.totalorder %s719_s25, %s3570_s22  ;;  %p3579_p10 = scmp.lt.s32.totalorder %s3570_s22, %s3570_s22 }
  0xb6   : > { %p3573_p7 = pnand %p3571_p5, %p4456_p8  ;;  %p3580_p11 = por %p3579_p10, %p3578_p4 }
  0xb8   : > { %p3574_p9 = pneg %p3573_p7 }
  0xba   : > { %p3581_p12 = pnand %p3580_p11, %p3574_p9 }
  0xbc   : > { %3584 = shalt.err (!%p3581_p12)
}
  0xbd   : > { %3240 = dma.hbm_to_vmem [thread:$0]  (!%p4440_p6), %s5521_s11, 256, %s719_s25, [#allocation21], %s5520_s16, %s5520_s16, %s5519_s0  }
  0xbe   : > { %s4246_s1 = smov [#allocation23]   ;;  %s4247_s2 = smov [#allocation26]  }
  0xbf   : > { %s742_s24 = sshll.u32 %s4246_s1, 4  ;;  %s767_s30 = sshll.u32 %s4247_s2, 4  ;;  %s743_s24 = int_to_ptr.vmem [resolvable:$true] %s742_s24  ;;  %s768_s30 = int_to_ptr.vmem [resolvable:$true] %s767_s30 }
  0xc0   : > { %s5522_s13 = sld [smem:[#allocation70_spill]] }
  0xc6   : > { %s3585_s8 = scalar_lea.hbm %s5522_s13, 256 }
  0xc7   : > { %p3586_p1 = scmp.ne.s32.totalorder %s5522_s13, %s3585_s8  ;;  %p3592_p0 = scmp.lt.u32.totalorder %s3585_s8, %s5522_s13 }
  0xc9   : > { %p3588_p3 = pnand %p3586_p1, %p4456_p8 }
  0xcb   : > { %p3589_p13 = pneg %p3588_p3 }
  0xcd   : > { %p3594_p2 = pnand %p3592_p0, %p3589_p13 }
  0xcf   : > { %3597 = shalt.err (!%p3594_p2)
}
  0xd0   : > { %s3598_s25 = scalar_lea.vmem %s743_s24, 256  ;;  %p3606_p4 = scmp.lt.s32.totalorder %s743_s24, %s743_s24 }
  0xd1   : > { %p3599_p5 = scmp.ne.s32.totalorder %s743_s24, %s3598_s25  ;;  %p3607_p10 = scmp.lt.s32.totalorder %s3598_s25, %s3598_s25 }
  0xd3   : > { %p3601_p7 = pnand %p3599_p5, %p4456_p8  ;;  %p3608_p11 = por %p3607_p10, %p3606_p4 }
  0xd5   : > { %p3602_p9 = pneg %p3601_p7 }
  0xd7   : > { %p3609_p12 = pnand %p3608_p11, %p3602_p9 }
  0xd9   : > { %3612 = shalt.err (!%p3609_p12)
}
  0xda   : > { %3246 = dma.hbm_to_vmem [thread:$0]  (!%p4440_p6), %s5522_s13, 256, %s743_s24, [#allocation24], %s5520_s16, %s5520_s16, %s5519_s0  }
  0xdb   : > { %s5523_s15 = sld [smem:[#allocation72_spill]] }
  0xe1   : > { %s3613_s2 = scalar_lea.hbm %s5523_s15, 16 }
  0xe2   : > { %p3614_p1 = scmp.ne.s32.totalorder %s5523_s15, %s3613_s2  ;;  %p3620_p0 = scmp.lt.u32.totalorder %s3613_s2, %s5523_s15 }
  0xe4   : > { %p3616_p3 = pnand %p3614_p1, %p4456_p8 }
  0xe6   : > { %p3617_p13 = pneg %p3616_p3 }
  0xe8   : > { %p3622_p2 = pnand %p3620_p0, %p3617_p13 }
  0xea   : > { %3625 = shalt.err (!%p3622_p2)
}
  0xeb   : > { %s3626_s4 = scalar_lea.vmem %s768_s30, 16  ;;  %s3633_s24 = scalar_lea.vmem %s768_s30, 32 }
  0xec   : > { %p3627_p5 = scmp.ne.s32.totalorder %s768_s30, %s3626_s4  ;;  %p3634_p4 = scmp.lt.s32.totalorder %s768_s30, %s768_s30 }
  0xed   : > { %p3635_p10 = scmp.lt.s32.totalorder %s3633_s24, %s3626_s4 }
  0xee   : > { %p3629_p7 = pnand %p3627_p5, %p4456_p8 }
  0xef   : > { %p3636_p11 = por %p3635_p10, %p3634_p4 }
  0xf0   : > { %p3630_p9 = pneg %p3629_p7 }
  0xf2   : > { %p3637_p12 = pnand %p3636_p11, %p3630_p9 }
  0xf4   : > { %3640 = shalt.err (!%p3637_p12)
}
  0xf5   : > { %3252 = dma.hbm_to_vmem [thread:$0]  (!%p4440_p6), %s5523_s15, 16, %s768_s30, [#allocation27]  }
  0xf6   : > { %s4248_s6 = smov [#allocation29]   ;;  %s4249_s1 = smov [#allocation32]  }
  0xf7   : > { %s788_s18 = sshll.u32 %s4248_s6, 4  ;;  %s812_s2 = sshll.u32 %s4249_s1, 4  ;;  %s789_s18 = int_to_ptr.vmem [resolvable:$true] %s788_s18  ;;  %s813_s2 = int_to_ptr.vmem [resolvable:$true] %s812_s2 }
  0xf8   : > { %s5524_s17 = sld [smem:[#allocation74_spill]] }
  0xfe   : > { %s3641_s8 = scalar_lea.hbm %s5524_s17, 256 }
  0xff   : > { %p3642_p1 = scmp.ne.s32.totalorder %s5524_s17, %s3641_s8  ;;  %p3648_p0 = scmp.lt.u32.totalorder %s3641_s8, %s5524_s17 }
 0x101   : > { %p3644_p3 = pnand %p3642_p1, %p4456_p8 }
 0x103   : > { %p3645_p13 = pneg %p3644_p3 }
 0x105   : > { %p3650_p2 = pnand %p3648_p0, %p3645_p13 }
 0x107   : > { %3653 = shalt.err (!%p3650_p2)
}
 0x108   : > { %s3654_s30 = scalar_lea.vmem %s789_s18, 256  ;;  %p3662_p4 = scmp.lt.s32.totalorder %s789_s18, %s789_s18 }
 0x109   : > { %p3655_p5 = scmp.ne.s32.totalorder %s789_s18, %s3654_s30  ;;  %p3663_p10 = scmp.lt.s32.totalorder %s3654_s30, %s3654_s30 }
 0x10b   : > { %p3657_p7 = pnand %p3655_p5, %p4456_p8  ;;  %p3664_p11 = por %p3663_p10, %p3662_p4 }
 0x10d   : > { %p3658_p9 = pneg %p3657_p7 }
 0x10f   : > { %p3665_p12 = pnand %p3664_p11, %p3658_p9 }
 0x111   : > { %3668 = shalt.err (!%p3665_p12)
}
 0x112   : > { %3258 = dma.hbm_to_vmem [thread:$0]  (!%p4440_p6), %s5524_s17, 256, %s789_s18, [#allocation30], %s5520_s16, %s5520_s16, %s5519_s0  }
 0x113   : > { %s5525_s19 = sld [smem:[#allocation76_spill]] }
 0x119   : > { %s3669_s14 = scalar_lea.hbm %s5525_s19, 512 }
 0x11a   : > { %p3670_p1 = scmp.ne.s32.totalorder %s5525_s19, %s3669_s14  ;;  %p3676_p0 = scmp.lt.u32.totalorder %s3669_s14, %s5525_s19 }
 0x11c   : > { %p3672_p3 = pnand %p3670_p1, %p4456_p8 }
 0x11e   : > { %p3673_p13 = pneg %p3672_p3 }
 0x120   : > { %p3678_p2 = pnand %p3676_p0, %p3673_p13 }
 0x122   : > { %3681 = shalt.err (!%p3678_p2)
}
 0x123   : > { %s3682_s25 = scalar_lea.vmem %s813_s2, 512  ;;  %p3690_p4 = scmp.lt.s32.totalorder %s813_s2, %s813_s2 }
 0x124   : > { %p3683_p5 = scmp.ne.s32.totalorder %s813_s2, %s3682_s25  ;;  %p3691_p10 = scmp.lt.s32.totalorder %s3682_s25, %s3682_s25 }
 0x126   : > { %p3685_p7 = pnand %p3683_p5, %p4456_p8  ;;  %p3692_p11 = por %p3691_p10, %p3690_p4 }
 0x128   : > { %p3686_p9 = pneg %p3685_p7 }
 0x12a   : > { %p3693_p12 = pnand %p3692_p11, %p3686_p9 }
 0x12c   : > { %3696 = shalt.err (!%p3693_p12)
}
 0x12d   : > { %3264 = dma.hbm_to_vmem [thread:$0]  (!%p4440_p6), %s5525_s19, 512, %s813_s2, [#allocation33], %s5520_s16, %s5520_s16, %s5519_s0  }
 0x12e   : > { %s4250_s9 = smov [#allocation35]   ;;  %s5526_s21 = sld [smem:[#allocation78_spill]] }
 0x12f   : > { %s837_s6 = sshll.u32 %s4250_s9, 4  ;;  %s838_s6 = int_to_ptr.vmem [resolvable:$true] %s837_s6 }
 0x134   : > { %s3697_s14 = scalar_lea.hbm %s5526_s21, 16 }
 0x135   : > { %p3698_p1 = scmp.ne.s32.totalorder %s5526_s21, %s3697_s14  ;;  %p3704_p0 = scmp.lt.u32.totalorder %s3697_s14, %s5526_s21 }
 0x137   : > { %p3700_p3 = pnand %p3698_p1, %p4456_p8 }
 0x139   : > { %p3701_p13 = pneg %p3700_p3 }
 0x13b   : > { %p3706_p2 = pnand %p3704_p0, %p3701_p13 }
 0x13d   : > { %3709 = shalt.err (!%p3706_p2)
}
 0x13e   : > { %s3710_s2 = scalar_lea.vmem %s838_s6, 16  ;;  %s3717_s25 = scalar_lea.vmem %s838_s6, 32 }
 0x13f   : > { %p3711_p5 = scmp.ne.s32.totalorder %s838_s6, %s3710_s2  ;;  %p3718_p4 = scmp.lt.s32.totalorder %s838_s6, %s838_s6 }
 0x140   : > { %p3719_p10 = scmp.lt.s32.totalorder %s3717_s25, %s3710_s2 }
 0x141   : > { %p3713_p7 = pnand %p3711_p5, %p4456_p8 }
 0x142   : > { %p3720_p11 = por %p3719_p10, %p3718_p4 }
 0x143   : > { %p3714_p9 = pneg %p3713_p7 }
 0x145   : > { %p3721_p12 = pnand %p3720_p11, %p3714_p9 }
 0x147   : > { %3724 = shalt.err (!%p3721_p12)
}
 0x148   : > { %3270 = dma.hbm_to_vmem [thread:$0]  (!%p4440_p6), %s5526_s21, 16, %s838_s6, [#allocation36]  }
 0x149   : > { %s2752_s9 = sadd.s32 4294967294, %s4237_s28   ;;  %s4673_s1 = sadd.s32 1, %s4237_s28  }
 0x14a   : > { %s61_s12 = ssub.s32 %s4237_s28, %s4673_s1  ;;  %s64_s14 = sadd.s32 1, %s4233_s27 }
 0x14b   : > { %p62_p1 = scmp.eq.s32.totalorder %s61_s12, 0  ;;  %p71_p3 = scmp.ne.s32.totalorder %s4233_s27, %s4229_s26 }
 0x14c   : > { %p72_p13 = scmp.eq.s32.totalorder %s4237_s28, 0  ;;  %p77_p0 = scmp.ne.s32.totalorder %s4229_s26, %s4225_s5 }
 0x14d   : > { %s4684_s8 = scalar_select %p62_p1, %s4233_s27, %s64_s14  }
 0x14e   : > { %p73_p2 = por %p72_p13, %p71_p3  ;;  %p5528_p5 = scmp.eq.s32.totalorder %s4424_s29, 0 }
 0x14f   : > { %5527 = sst [smem:[#allocation56_spill]] %s4684_s8  ;;  %p573_p9 = scmp.eq.s32.totalorder %s4424_s29, 1 }
 0x150   : > { %p4688_p7 = por %p5528_p5, %p77_p0  ;;  %p579_p4 = scmp.eq.s32.totalorder %s2752_s9, 1 }
 0x151   : > { %p3311_p10 = scmp.lt.s32.totalorder %s4237_s28, 2  ;;  %s4695_s6 = sand.u32 1, %s4233_s27  }
 0x152   : > { %s5529_s22 = scalar_select %p4688_p7, 1, 0 }
 0x153   : > { %p4697_p11 = por %p573_p9, %p71_p3  ;;  %p4701_p12 = por %p579_p4, %p77_p0 }
 0x154   : > { %p4705_p1 = pnand %p3311_p10, %p73_p2  ;;  %s877_s25 = sand.u32 1, %s4237_s28  }
 0x155   : > { %s5530_s4 = scalar_select %p4697_p11, 1, 0 }
 0x156   : > { %s5531_s24 = scalar_select %p4701_p12, 1, 0 }
 0x157   : > { %s5532_s2 = scalar_select %p4705_p1, 1, 0 }
 0x158   : > { %s2777_s18 = sshll.u32 %s4695_s6, 6  ;;  %s2871_s30 = sshll.u32 %s4237_s28, 10 }
 0x159   : > { %s881_s9 = scalar_lea.vmem [#allocation5], %s2777_s18  ;;  %s5533_s13 = sld [smem:[#allocation58_spill]] }
 0x15a   : > { %s888_s12 = sshll.u32 %s881_s9, 4  ;;  %s4719_s17 = scalar_lea.sflag [#allocation6], %s877_s25  ;;  %s4717_s12 = int_to_ptr.vmem [resolvable:$true] %s888_s12 }
 0x15b   : > { %p4725_p13 = pneg %p4705_p1 }
 0x15d   : > { %s5534_s20 = scalar_select %p4725_p13, 1, 0 }
 0x15f   : > { %s4715_s15 = scalar_lea.hbm %s5533_s13, %s2871_s30  ;;  %s3730_s30 = scalar_lea.hbm %s5533_s13, 2048 }
 0x160   : > { %s3725_s19 = scalar_lea.hbm %s4715_s15, 1024  ;;  %p3731_p5 = scmp.lt.u32.totalorder %s4715_s15, %s5533_s13 }
 0x161   : > { %p3726_p3 = scmp.ne.s32.totalorder %s4715_s15, %s3725_s19  ;;  %p3732_p9 = scmp.lt.u32.totalorder %s3730_s30, %s3725_s19 }
 0x162   : > { %p3734_p10 = scmp.lt.u32.totalorder %s3725_s19, %s4715_s15 }
 0x163   : > { %p3728_p0 = pnand %p4725_p13, %p3726_p3  ;;  %p3733_p4 = por %p3732_p9, %p3731_p5 }
 0x165   : > { %p3729_p2 = pneg %p3728_p0  ;;  %p3735_p12 = por %p3734_p10, %p3733_p4 }
 0x167   : > { %p3736_p11 = pnand %p3735_p12, %p3729_p2 }
 0x169   : > { %3739 = shalt.err (!%p3736_p11)
}
 0x16a   : > { %s3740_s25 = scalar_lea.vmem %s4717_s12, 1024  ;;  %s4251_s11 = smov [#allocation5]  }
 0x16b   : > { %p3741_p3 = scmp.ne.s32.totalorder %s4717_s12, %s3740_s25  ;;  %s3745_s18 = sshll.u32 %s4251_s11, 4  ;;  %s3746_s18 = int_to_ptr.vmem [resolvable:$false] %s3745_s18 }
 0x16c   : > { %s3747_s9 = scalar_lea.vmem %s3746_s18, 2048  ;;  %p3748_p6 = scmp.lt.s32.totalorder %s4717_s12, %s3746_s18 }
 0x16d   : > { %p3743_p0 = pnand %p3741_p3, %p4725_p13  ;;  %p3749_p8 = scmp.lt.s32.totalorder %s3747_s9, %s3740_s25 }
 0x16f   : > { %p3744_p7 = pneg %p3743_p0  ;;  %p3750_p5 = por %p3749_p8, %p3748_p6 }
 0x171   : > { %p3751_p9 = pnand %p3750_p5, %p3744_p7 }
 0x173   : > { %3754 = shalt.err (!%p3751_p9)
}
 0x174   : > { %3280 = dma.hbm_to_vmem [thread:$0]  (!%p4705_p1), %s4715_s15, 1024, %s4717_s12, %s4719_s17, %s5520_s16, %s5520_s16, %s5519_s0  }
 0x175   : > { %s4252_s19 = smov [#allocation10]   ;;  %s4253_s14 = smov [#allocation13]  }
 0x176   : > { %s638_s30 = sshll.u32 %s4252_s19, 4  ;;  %s662_s11 = sshll.u32 %s4253_s14, 4  ;;  %s639_s30 = int_to_ptr.vmem [resolvable:$true] %s638_s30  ;;  %s4752_s11 = int_to_ptr.vmem [resolvable:$true] %s662_s11 }
 0x177   : > { %s5535_s9 = sld [smem:[#allocation61_spill]]  ;;  %p5536_p8 = scmp.ne.s32.totalorder %s5515_s7, 0 }
 0x17d   : > { %s3755_s13 = scalar_lea.hbm %s5535_s9, 16 }
 0x17e   : > { %p3756_p6 = scmp.ne.s32.totalorder %s5535_s9, %s3755_s13  ;;  %p3762_p12 = scmp.lt.u32.totalorder %s3755_s13, %s5535_s9 }
 0x180   : > { %p3758_p7 = pnand %p3756_p6, %p5536_p8 }
 0x182   : > { %p3759_p11 = pneg %p3758_p7 }
 0x184   : > { %p3764_p2 = pnand %p3762_p12, %p3759_p11 }
 0x186   : > { %3767 = shalt.err (!%p3764_p2)
}
 0x187   : > { %s3768_s0 = scalar_lea.vmem %s639_s30, 16  ;;  %s3775_s16 = scalar_lea.vmem %s639_s30, 32 }
 0x188   : > { %p3769_p4 = scmp.ne.s32.totalorder %s639_s30, %s3768_s0  ;;  %p3776_p0 = scmp.lt.s32.totalorder %s639_s30, %s639_s30 }
 0x189   : > { %p3777_p5 = scmp.lt.s32.totalorder %s3775_s16, %s3768_s0 }
 0x18a   : > { %p3771_p10 = pnand %p3769_p4, %p5536_p8 }
 0x18b   : > { %p3778_p9 = por %p3777_p5, %p3776_p0 }
 0x18c   : > { %p3772_p3 = pneg %p3771_p10 }
 0x18e   : > { %p3779_p1 = pnand %p3778_p9, %p3772_p3 }
 0x190   : > { %3782 = shalt.err (!%p3779_p1)
}
 0x191   : > { %p5537_p6 = scmp.ne.s32.totalorder %s5513_s3, 0  ;;  %s5538_s12 = sld [smem:[#allocation63_spill]] }
 0x193   : > { %3219 = dma.hbm_to_vmem [thread:$0]  (!%p5537_p6), %s5535_s9, 16, %s639_s30, [#allocation9]  }
 0x197   : > { %s3783_s19 = scalar_lea.hbm %s5538_s12, 16 }
 0x198   : > { %p3784_p7 = scmp.ne.s32.totalorder %s5538_s12, %s3783_s19  ;;  %p3790_p1 = scmp.lt.u32.totalorder %s3783_s19, %s5538_s12 }
 0x19a   : > { %p3786_p11 = pnand %p3784_p7, %p5536_p8 }
 0x19c   : > { %p3787_p12 = pneg %p3786_p11 }
 0x19e   : > { %p3792_p2 = pnand %p3790_p1, %p3787_p12 }
 0x1a0   : > { %3795 = shalt.err (!%p3792_p2)
}
 0x1a1   : > { %s3796_s30 = scalar_lea.vmem %s4752_s11, 16  ;;  %s3803_s0 = scalar_lea.vmem %s4752_s11, 32 }
 0x1a2   : > { %p3797_p4 = scmp.ne.s32.totalorder %s4752_s11, %s3796_s30  ;;  %p3804_p0 = scmp.lt.s32.totalorder %s4752_s11, %s4752_s11 }
 0x1a3   : > { %p3805_p5 = scmp.lt.s32.totalorder %s3803_s0, %s3796_s30 }
 0x1a4   : > { %p3799_p10 = pnand %p3797_p4, %p5536_p8 }
 0x1a5   : > { %p3806_p9 = por %p3805_p5, %p3804_p0 }
 0x1a6   : > { %p3800_p3 = pneg %p3799_p10 }
 0x1a8   : > { %p3807_p7 = pnand %p3806_p9, %p3800_p3 }
 0x1aa   : > { %3810 = shalt.err (!%p3807_p7)
}
 0x1ab   : > { %3225 = dma.hbm_to_vmem [thread:$0]  (!%p5537_p6), %s5538_s12, 16, %s4752_s11, [#allocation12]  }
 0x1ac   : > { %s4254_s23 = smov [#allocation16]   ;;  %s4255_s8 = smov [#allocation19]  }
 0x1ad   : > { %s684_s13 = sshll.u32 %s4254_s23, 4  ;;  %s708_s19 = sshll.u32 %s4255_s8, 4  ;;  %s685_s13 = int_to_ptr.vmem [resolvable:$true] %s684_s13  ;;  %s4796_s19 = int_to_ptr.vmem [resolvable:$true] %s708_s19 }
 0x1ae   : > { %s5539_s18 = sld [smem:[#allocation65_spill]] }
 0x1b4   : > { %s3811_s15 = scalar_lea.hbm %s5539_s18, 16 }
 0x1b5   : > { %p3812_p11 = scmp.ne.s32.totalorder %s5539_s18, %s3811_s15  ;;  %p3818_p2 = scmp.lt.u32.totalorder %s3811_s15, %s5539_s18 }
 0x1b7   : > { %p3814_p12 = pnand %p3812_p11, %p5536_p8 }
 0x1b9   : > { %p3815_p1 = pneg %p3814_p12 }
 0x1bb   : > { %p3820_p4 = pnand %p3818_p2, %p3815_p1 }
 0x1bd   : > { %3823 = shalt.err (!%p3820_p4)
}
 0x1be   : > { %s3824_s21 = scalar_lea.vmem %s685_s13, 16  ;;  %s3831_s23 = scalar_lea.vmem %s685_s13, 32 }
 0x1bf   : > { %p3825_p10 = scmp.ne.s32.totalorder %s685_s13, %s3824_s21  ;;  %p3832_p5 = scmp.lt.s32.totalorder %s685_s13, %s685_s13 }
 0x1c0   : > { %p3833_p9 = scmp.lt.s32.totalorder %s3831_s23, %s3824_s21 }
 0x1c1   : > { %p3827_p3 = pnand %p3825_p10, %p5536_p8 }
 0x1c2   : > { %p3834_p7 = por %p3833_p9, %p3832_p5 }
 0x1c3   : > { %p3828_p0 = pneg %p3827_p3 }
 0x1c5   : > { %p3835_p13 = pnand %p3834_p7, %p3828_p0 }
 0x1c7   : > { %3838 = shalt.err (!%p3835_p13)
}
 0x1c8   : > { %3231 = dma.hbm_to_vmem [thread:$0]  (!%p5537_p6), %s5539_s18, 16, %s685_s13, [#allocation15]  }
 0x1c9   : > { %s5540_s10 = sld [smem:[#allocation67_spill]] }
 0x1cf   : > { %s3839_s30 = scalar_lea.hbm %s5540_s10, 16 }
 0x1d0   : > { %p3840_p11 = scmp.ne.s32.totalorder %s5540_s10, %s3839_s30  ;;  %p3846_p13 = scmp.lt.u32.totalorder %s3839_s30, %s5540_s10 }
 0x1d2   : > { %p3842_p12 = pnand %p3840_p11, %p5536_p8 }
 0x1d4   : > { %p3843_p1 = pneg %p3842_p12 }
 0x1d6   : > { %p3848_p2 = pnand %p3846_p13, %p3843_p1 }
 0x1d8   : > { %3851 = shalt.err (!%p3848_p2)
}
 0x1d9   : > { %s3852_s13 = scalar_lea.vmem %s4796_s19, 16  ;;  %s3859_s23 = scalar_lea.vmem %s4796_s19, 32 }
 0x1da   : > { %p3853_p4 = scmp.ne.s32.totalorder %s4796_s19, %s3852_s13  ;;  %p3860_p0 = scmp.lt.s32.totalorder %s4796_s19, %s4796_s19 }
 0x1db   : > { %p3861_p5 = scmp.lt.s32.totalorder %s3859_s23, %s3852_s13 }
 0x1dc   : > { %p3855_p10 = pnand %p3853_p4, %p5536_p8 }
 0x1dd   : > { %p3862_p9 = por %p3861_p5, %p3860_p0 }
 0x1de   : > { %p3856_p3 = pneg %p3855_p10 }
 0x1e0   : > { %p3863_p7 = pnand %p3862_p9, %p3856_p3 }
 0x1e2   : > { %3866 = shalt.err (!%p3863_p7)
}
 0x1e3   : > { %3237 = dma.hbm_to_vmem [thread:$0]  (!%p5537_p6), %s5540_s10, 16, %s4796_s19, [#allocation18]  }
 0x1e4   : > { %s4256_s25 = smov [#allocation22]   ;;  %s4257_s30 = smov [#allocation25]  }
 0x1e5   : > { %s732_s15 = sshll.u32 %s4256_s25, 4  ;;  %s756_s0 = sshll.u32 %s4257_s30, 4  ;;  %s733_s15 = int_to_ptr.vmem [resolvable:$true] %s732_s15  ;;  %s4840_s0 = int_to_ptr.vmem [resolvable:$true] %s756_s0 }
 0x1e6   : > { %s5541_s21 = sld [smem:[#allocation69_spill]] }
 0x1ec   : > { %s3867_s13 = scalar_lea.hbm %s5541_s21, 16 }
 0x1ed   : > { %p3868_p11 = scmp.ne.s32.totalorder %s5541_s21, %s3867_s13  ;;  %p3874_p13 = scmp.lt.u32.totalorder %s3867_s13, %s5541_s21 }
 0x1ef   : > { %p3870_p12 = pnand %p3868_p11, %p5536_p8 }
 0x1f1   : > { %p3871_p1 = pneg %p3870_p12 }
 0x1f3   : > { %p3876_p2 = pnand %p3874_p13, %p3871_p1 }
 0x1f5   : > { %3879 = shalt.err (!%p3876_p2)
}
 0x1f6   : > { %s3880_s14 = scalar_lea.vmem %s733_s15, 16  ;;  %s3887_s25 = scalar_lea.vmem %s733_s15, 32 }
 0x1f7   : > { %p3881_p4 = scmp.ne.s32.totalorder %s733_s15, %s3880_s14  ;;  %p3888_p0 = scmp.lt.s32.totalorder %s733_s15, %s733_s15 }
 0x1f8   : > { %p3889_p5 = scmp.lt.s32.totalorder %s3887_s25, %s3880_s14 }
 0x1f9   : > { %p3883_p10 = pnand %p3881_p4, %p5536_p8 }
 0x1fa   : > { %p3890_p9 = por %p3889_p5, %p3888_p0 }
 0x1fb   : > { %p3884_p3 = pneg %p3883_p10 }
 0x1fd   : > { %p3891_p7 = pnand %p3890_p9, %p3884_p3 }
 0x1ff   : > { %3894 = shalt.err (!%p3891_p7)
}
 0x200   : > { %3243 = dma.hbm_to_vmem [thread:$0]  (!%p5537_p6), %s5541_s21, 16, %s733_s15, [#allocation21]  }
 0x201   : > { %s5542_s13 = sld [smem:[#allocation71_spill]] }
 0x207   : > { %s3895_s23 = scalar_lea.hbm %s5542_s13, 16 }
 0x208   : > { %p3896_p11 = scmp.ne.s32.totalorder %s5542_s13, %s3895_s23  ;;  %p3902_p13 = scmp.lt.u32.totalorder %s3895_s23, %s5542_s13 }
 0x20a   : > { %p3898_p12 = pnand %p3896_p11, %p5536_p8 }
 0x20c   : > { %p3899_p1 = pneg %p3898_p12 }
 0x20e   : > { %p3904_p2 = pnand %p3902_p13, %p3899_p1 }
 0x210   : > { %3907 = shalt.err (!%p3904_p2)
}
 0x211   : > { %s3908_s15 = scalar_lea.vmem %s4840_s0, 16  ;;  %s3915_s9 = scalar_lea.vmem %s4840_s0, 32 }
 0x212   : > { %p3909_p4 = scmp.ne.s32.totalorder %s4840_s0, %s3908_s15  ;;  %p3916_p0 = scmp.lt.s32.totalorder %s4840_s0, %s4840_s0 }
 0x213   : > { %p3917_p5 = scmp.lt.s32.totalorder %s3915_s9, %s3908_s15 }
 0x214   : > { %p3911_p10 = pnand %p3909_p4, %p5536_p8 }
 0x215   : > { %p3918_p9 = por %p3917_p5, %p3916_p0 }
 0x216   : > { %p3912_p3 = pneg %p3911_p10 }
 0x218   : > { %p3919_p7 = pnand %p3918_p9, %p3912_p3 }
 0x21a   : > { %3922 = shalt.err (!%p3919_p7)
}
 0x21b   : > { %3249 = dma.hbm_to_vmem [thread:$0]  (!%p5537_p6), %s5542_s13, 16, %s4840_s0, [#allocation24]  }
 0x21c   : > { %s4258_s11 = smov [#allocation28]   ;;  %s4259_s8 = smov [#allocation31]  }
 0x21d   : > { %s778_s23 = sshll.u32 %s4258_s11, 4  ;;  %s802_s19 = sshll.u32 %s4259_s8, 4  ;;  %s779_s23 = int_to_ptr.vmem [resolvable:$true] %s778_s23  ;;  %s4884_s19 = int_to_ptr.vmem [resolvable:$true] %s802_s19 }
 0x21e   : > { %s5543_s15 = sld [smem:[#allocation73_spill]] }
 0x224   : > { %s3923_s9 = scalar_lea.hbm %s5543_s15, 16 }
 0x225   : > { %p3924_p11 = scmp.ne.s32.totalorder %s5543_s15, %s3923_s9  ;;  %p3930_p13 = scmp.lt.u32.totalorder %s3923_s9, %s5543_s15 }
 0x227   : > { %p3926_p12 = pnand %p3924_p11, %p5536_p8 }
 0x229   : > { %p3927_p1 = pneg %p3926_p12 }
 0x22b   : > { %p3932_p2 = pnand %p3930_p13, %p3927_p1 }
 0x22d   : > { %3935 = shalt.err (!%p3932_p2)
}
 0x22e   : > { %s3936_s16 = scalar_lea.vmem %s779_s23, 16  ;;  %s3943_s11 = scalar_lea.vmem %s779_s23, 32 }
 0x22f   : > { %p3937_p4 = scmp.ne.s32.totalorder %s779_s23, %s3936_s16  ;;  %p3944_p0 = scmp.lt.s32.totalorder %s779_s23, %s779_s23 }
 0x230   : > { %p3945_p5 = scmp.lt.s32.totalorder %s3943_s11, %s3936_s16 }
 0x231   : > { %p3939_p10 = pnand %p3937_p4, %p5536_p8 }
 0x232   : > { %p3946_p9 = por %p3945_p5, %p3944_p0 }
 0x233   : > { %p3940_p3 = pneg %p3939_p10 }
 0x235   : > { %p3947_p7 = pnand %p3946_p9, %p3940_p3 }
 0x237   : > { %3950 = shalt.err (!%p3947_p7)
}
 0x238   : > { %3255 = dma.hbm_to_vmem [thread:$0]  (!%p5537_p6), %s5543_s15, 16, %s779_s23, [#allocation27]  }
 0x239   : > { %s5544_s25 = sld [smem:[#allocation75_spill]] }
 0x23f   : > { %s3951_s9 = scalar_lea.hbm %s5544_s25, 16 }
 0x240   : > { %p3952_p11 = scmp.ne.s32.totalorder %s5544_s25, %s3951_s9  ;;  %p3958_p13 = scmp.lt.u32.totalorder %s3951_s9, %s5544_s25 }
 0x242   : > { %p3954_p12 = pnand %p3952_p11, %p5536_p8 }
 0x244   : > { %p3955_p1 = pneg %p3954_p12 }
 0x246   : > { %p3960_p2 = pnand %p3958_p13, %p3955_p1 }
 0x248   : > { %3963 = shalt.err (!%p3960_p2)
}
 0x249   : > { %s3964_s23 = scalar_lea.vmem %s4884_s19, 16  ;;  %s3971_s10 = scalar_lea.vmem %s4884_s19, 32 }
 0x24a   : > { %p3965_p4 = scmp.ne.s32.totalorder %s4884_s19, %s3964_s23  ;;  %p3972_p0 = scmp.lt.s32.totalorder %s4884_s19, %s4884_s19 }
 0x24b   : > { %p3973_p5 = scmp.lt.s32.totalorder %s3971_s10, %s3964_s23 }
 0x24c   : > { %p3967_p10 = pnand %p3965_p4, %p5536_p8 }
 0x24d   : > { %p3974_p9 = por %p3973_p5, %p3972_p0 }
 0x24e   : > { %p3968_p3 = pneg %p3967_p10 }
 0x250   : > { %p3975_p7 = pnand %p3974_p9, %p3968_p3 }
 0x252   : > { %3978 = shalt.err (!%p3975_p7)
}
 0x253   : > { %3261 = dma.hbm_to_vmem [thread:$0]  (!%p5537_p6), %s5544_s25, 16, %s4884_s19, [#allocation30]  }
 0x254   : > { %s4260_s14 = smov [#allocation34]   ;;  %s4261_s30 = smov [#allocation37]  }
 0x255   : > { %s826_s9 = sshll.u32 %s4260_s14, 4  ;;  %s848_s0 = sshll.u32 %s4261_s30, 4  ;;  %s827_s9 = int_to_ptr.vmem [resolvable:$true] %s826_s9  ;;  %s4928_s0 = int_to_ptr.vmem [resolvable:$true] %s848_s0 }
 0x256   : > { %s5545_s23 = sld [smem:[#allocation77_spill]] }
 0x25c   : > { %s3979_s10 = scalar_lea.hbm %s5545_s23, 16 }
 0x25d   : > { %p3980_p11 = scmp.ne.s32.totalorder %s5545_s23, %s3979_s10  ;;  %p3986_p13 = scmp.lt.u32.totalorder %s3979_s10, %s5545_s23 }
 0x25f   : > { %p3982_p12 = pnand %p3980_p11, %p5536_p8 }
 0x261   : > { %p3983_p1 = pneg %p3982_p12 }
 0x263   : > { %p3988_p2 = pnand %p3986_p13, %p3983_p1 }
 0x265   : > { %3991 = shalt.err (!%p3988_p2)
}
 0x266   : > { %s3992_s8 = scalar_lea.vmem %s827_s9, 16  ;;  %s3999_s14 = scalar_lea.vmem %s827_s9, 32 }
 0x267   : > { %p3993_p4 = scmp.ne.s32.totalorder %s827_s9, %s3992_s8  ;;  %p4000_p0 = scmp.lt.s32.totalorder %s827_s9, %s827_s9 }
 0x268   : > { %p4001_p5 = scmp.lt.s32.totalorder %s3999_s14, %s3992_s8 }
 0x269   : > { %p3995_p10 = pnand %p3993_p4, %p5536_p8 }
 0x26a   : > { %p4002_p9 = por %p4001_p5, %p4000_p0 }
 0x26b   : > { %p3996_p3 = pneg %p3995_p10 }
 0x26d   : > { %p4003_p7 = pnand %p4002_p9, %p3996_p3 }
 0x26f   : > { %4006 = shalt.err (!%p4003_p7)
}
 0x270   : > { %3267 = dma.hbm_to_vmem [thread:$0]  (!%p5537_p6), %s5545_s23, 16, %s827_s9, [#allocation33]  }
 0x271   : > { %s5546_s11 = sld [smem:[#allocation79_spill]] }
 0x277   : > { %s4007_s10 = scalar_lea.hbm %s5546_s11, 16 }
 0x278   : > { %p4008_p11 = scmp.ne.s32.totalorder %s5546_s11, %s4007_s10  ;;  %p4014_p13 = scmp.lt.u32.totalorder %s4007_s10, %s5546_s11 }
 0x27a   : > { %p4010_p12 = pnand %p4008_p11, %p5536_p8 }
 0x27c   : > { %p4011_p1 = pneg %p4010_p12 }
 0x27e   : > { %p4016_p2 = pnand %p4014_p13, %p4011_p1 }
 0x280   : > { %4019 = shalt.err (!%p4016_p2)
}
 0x281   : > { %s4020_s9 = scalar_lea.vmem %s4928_s0, 16  ;;  %s4027_s13 = scalar_lea.vmem %s4928_s0, 32 }
 0x282   : > { %p4021_p4 = scmp.ne.s32.totalorder %s4928_s0, %s4020_s9  ;;  %p4028_p0 = scmp.lt.s32.totalorder %s4928_s0, %s4928_s0 }
 0x283   : > { %p4029_p5 = scmp.lt.s32.totalorder %s4027_s13, %s4020_s9 }
 0x284   : > { %p4023_p10 = pnand %p4021_p4, %p5536_p8 }
 0x285   : > { %p4030_p9 = por %p4029_p5, %p4028_p0 }
 0x286   : > { %p4024_p3 = pneg %p4023_p10 }
 0x288   : > { %p4031_p7 = pnand %p4030_p9, %p4024_p3 }
 0x28a   : > { %4034 = shalt.err (!%p4031_p7)
}
 0x28b   : > { %3273 = dma.hbm_to_vmem [thread:$0]  (!%p5537_p6), %s5546_s11, 16, %s4928_s0, [#allocation36]  }
 0x28c   : > { %s2775_s7 = sshll.u32 %s4695_s6, 3  ;;  %s2776_s16 = sshll.u32 %s4237_s28, 7 }
 0x28d   : > { %s5547_s19 = sld [smem:[#allocation57_spill]]  ;;  %s863_s3 = scalar_lea.vmem [#allocation2], %s2775_s7 }
 0x28e   : > { %s870_s14 = sshll.u32 %s863_s3, 4  ;;  %s860_s9 = scalar_lea.sflag [#allocation3], %s4695_s6  ;;  %s871_s14 = int_to_ptr.vmem [resolvable:$true] %s870_s14 }
 0x28f   : > { %p5548_p11 = scmp.ne.s32.totalorder %s5534_s20, 0 }
 0x293   : > { %s4977_s8 = scalar_lea.hbm %s5547_s19, %s2776_s16  ;;  %s4040_s30 = scalar_lea.hbm %s5547_s19, 256 }
 0x294   : > { %s4035_s13 = scalar_lea.hbm %s4977_s8, 128  ;;  %p4041_p1 = scmp.lt.u32.totalorder %s4977_s8, %s5547_s19 }
 0x295   : > { %p4036_p8 = scmp.ne.s32.totalorder %s4977_s8, %s4035_s13  ;;  %p4042_p13 = scmp.lt.u32.totalorder %s4040_s30, %s4035_s13 }
 0x296   : > { %p4044_p4 = scmp.lt.u32.totalorder %s4035_s13, %s4977_s8 }
 0x297   : > { %p4038_p12 = pnand %p4036_p8, %p5548_p11  ;;  %p4043_p2 = por %p4042_p13, %p4041_p1 }
 0x299   : > { %p4039_p6 = pneg %p4038_p12  ;;  %p4045_p10 = por %p4044_p4, %p4043_p2 }
 0x29b   : > { %p4046_p3 = pnand %p4045_p10, %p4039_p6 }
 0x29d   : > { %4049 = shalt.err (!%p4046_p3)
}
 0x29e   : > { %s4050_s7 = scalar_lea.vmem %s871_s14, 128  ;;  %s4262_s12 = smov [#allocation2]  }
 0x29f   : > { %p4051_p0 = scmp.ne.s32.totalorder %s871_s14, %s4050_s7  ;;  %s4055_s3 = sshll.u32 %s4262_s12, 4  ;;  %s4056_s3 = int_to_ptr.vmem [resolvable:$false] %s4055_s3 }
 0x2a0   : > { %s4057_s0 = scalar_lea.vmem %s4056_s3, 256  ;;  %p4058_p7 = scmp.lt.s32.totalorder %s871_s14, %s4056_s3 }
 0x2a1   : > { %p4053_p5 = pnand %p4051_p0, %p5548_p11  ;;  %p4059_p8 = scmp.lt.s32.totalorder %s4057_s0, %s4050_s7 }
 0x2a3   : > { %p4054_p9 = pneg %p4053_p5  ;;  %p4060_p12 = por %p4059_p8, %p4058_p7 }
 0x2a5   : > { %p4061_p1 = pnand %p4060_p12, %p4054_p9 }
 0x2a7   : > { %4064 = shalt.err (!%p4061_p1)
}
 0x2a8   : > { %p5549_p13 = scmp.ne.s32.totalorder %s5532_s2, 0  ;;  %s2780_s13 = sshll.u32 %s4237_s28, 4 }
 0x2a9   : > { %s901_s15 = scalar_lea.vmem [#allocation7], %s4695_s6  ;;  %s5550_s12 = sld [smem:[#allocation59_spill]] }
 0x2aa   : > { %3277 = dma.hbm_to_vmem [thread:$0]  (!%p5549_p13), %s4977_s8, 128, %s871_s14, %s860_s9  }
 0x2ab   : > { %s908_s30 = sshll.u32 %s901_s15, 4  ;;  %s909_s30 = int_to_ptr.vmem [resolvable:$true] %s908_s30 }
 0x2af   : > { %s906_s11 = scalar_lea.hbm %s5550_s12, %s2780_s13  ;;  %s4070_s18 = scalar_lea.hbm %s5550_s12, 32 }
 0x2b0   : > { %s4065_s3 = scalar_lea.hbm %s906_s11, 16  ;;  %p4071_p10 = scmp.lt.u32.totalorder %s906_s11, %s5550_s12 }
 0x2b1   : > { %p4066_p6 = scmp.ne.s32.totalorder %s906_s11, %s4065_s3  ;;  %p4072_p3 = scmp.lt.u32.totalorder %s4070_s18, %s4065_s3 }
 0x2b2   : > { %p4074_p5 = scmp.lt.u32.totalorder %s4065_s3, %s906_s11 }
 0x2b3   : > { %p4068_p2 = pnand %p4066_p6, %p5548_p11  ;;  %p4073_p0 = por %p4072_p3, %p4071_p10 }
 0x2b5   : > { %p4069_p4 = pneg %p4068_p2  ;;  %p4075_p9 = por %p4074_p5, %p4073_p0 }
 0x2b7   : > { %p4076_p7 = pnand %p4075_p9, %p4069_p4 }
 0x2b9   : > { %4079 = shalt.err (!%p4076_p7)
}
 0x2ba   : > { %s4080_s6 = scalar_lea.vmem %s909_s30, 16  ;;  %s4263_s8 = smov [#allocation7]  }
 0x2bb   : > { %p4081_p8 = scmp.ne.s32.totalorder %s909_s30, %s4080_s6  ;;  %s4085_s14 = sshll.u32 %s4263_s8, 4  ;;  %s4086_s14 = int_to_ptr.vmem [resolvable:$false] %s4085_s14 }
 0x2bc   : > { %s4087_s9 = scalar_lea.vmem %s4086_s14, 32  ;;  %p4088_p6 = scmp.lt.s32.totalorder %s909_s30, %s4086_s14 }
 0x2bd   : > { %p4083_p12 = pnand %p4081_p8, %p5548_p11  ;;  %p4089_p2 = scmp.lt.s32.totalorder %s4087_s9, %s4080_s6 }
 0x2bf   : > { %p4084_p1 = pneg %p4083_p12  ;;  %p4090_p13 = por %p4089_p2, %p4088_p6 }
 0x2c1   : > { %p4091_p3 = pnand %p4090_p13, %p4084_p1 }
 0x2c3   : > { %4094 = shalt.err (!%p4091_p3)
}
 0x2c4   : > { %p5551_p10 = scmp.ne.s32.totalorder %s5532_s2, 0  ;;  %s5552_s18 = sld [smem:[#allocation55_spill]] }
 0x2c6   : > { %3283 = dma.hbm_to_vmem [thread:$0]  (!%p5551_p10), %s906_s11, 16, %s909_s30, %s4719_s17  }
 0x2ca   : > { %p5553_p4 = scmp.ne.s32.totalorder %s5552_s18, 0 }
 0x2cb   : > { %s5018_s20 = sand.u32 (!%p5553_p4), 1, %s4229_s26   ;;  %p5554_p11 = scmp.ne.s32.totalorder (!%p5553_p4), %s5529_s22, 0 }
 0x2cc   : > { %917 = sbr.rel (%p5553_p4) target bundleno = 5464 (0x1558), region = 112  ;;  %s2782_s21 = sshll.u32 (!%p5553_p4), %s5018_s20, 3 }
 0x2cd   : > { %s920_s19 = scalar_lea.sflag (!%p5553_p4), [#allocation3], %s5018_s20  ;;  %s5024_s13 = scalar_lea.vmem (!%p5553_p4), [#allocation2], %s2782_s21 }
 0x2d3   : > { %4168 = dma.done.wait (%p5554_p11), %s920_s19, 128  }
 0x2d4   : > { %4170 = vsyncadd (%p5554_p11), %s920_s19, 4294967168  ;;  %s928_s17 = sand.u32 1, %s4424_s29   ;;  %s2783_s2 = sshll.u32 %s5018_s20, 6 }
 0x2d5   : > { %s929_s11 = scalar_lea.sflag [#allocation6], %s928_s17  ;;  %s5032_s15 = scalar_lea.vmem [#allocation5], %s2783_s2 }
 0x2d6   : > { %4172 = dma.done.wait (%p5554_p11), %s929_s11, 1040  }
 0x2d7   : > { %4174 = vsyncadd (%p5554_p11), %s929_s11, 4294966256  ;;  %s940_s30 = scalar_lea.vmem [#allocation7], %s5018_s20  ;;  %p5555_p13 = scmp.eq.s32.totalorder %s4424_s29, 0 }
 0x2d9   : > { %4176 = dma.done.wait (%p5555_p13), [#allocation9], 272   ;;  %p5556_p0 = pmov %p5555_p13 }
 0x2db   : > { %4178 = vsyncadd (%p5556_p0), [#allocation9], 4294967024  ;;  %p5557_p5 = pmov %p5556_p0 }
 0x2dc   : > { %p5558_p9 = pmov %p5556_p0 }
 0x2dd   : > { %4180 = dma.done.wait (%p5557_p5), [#allocation12], 272  }
 0x2de   : > { %4182 = vsyncadd (%p5558_p9), [#allocation12], 4294967024  ;;  %p5559_p7 = pmov %p5556_p0 }
 0x2df   : > { %p5560_p8 = pmov %p5556_p0 }
 0x2e0   : > { %4184 = dma.done.wait (%p5559_p7), [#allocation15], 32  }
 0x2e1   : > { %4186 = vsyncadd (%p5560_p8), [#allocation15], 4294967264  ;;  %p5561_p12 = pmov %p5556_p0 }
 0x2e2   : > { %p5562_p1 = pmov %p5556_p0 }
 0x2e3   : > { %4188 = dma.done.wait (%p5561_p12), [#allocation18], 272  }
 0x2e4   : > { %4190 = vsyncadd (%p5562_p1), [#allocation18], 4294967024  ;;  %p5563_p6 = pmov %p5556_p0 }
 0x2e5   : > { %p5564_p2 = pmov %p5556_p0 }
 0x2e6   : > { %4192 = dma.done.wait (%p5563_p6), [#allocation21], 272  }
 0x2e7   : > { %4194 = vsyncadd (%p5564_p2), [#allocation21], 4294967024  ;;  %p5565_p3 = pmov %p5556_p0 }
 0x2e8   : > { %p5566_p10 = pmov %p5556_p0 }
 0x2e9   : > { %4196 = dma.done.wait (%p5565_p3), [#allocation24], 272  }
 0x2ea   : > { %4198 = vsyncadd (%p5566_p10), [#allocation24], 4294967024  ;;  %p5567_p4 = pmov %p5556_p0 }
 0x2eb   : > { %p5568_p11 = pmov %p5556_p0 }
 0x2ec   : > { %4200 = dma.done.wait (%p5567_p4), [#allocation27], 32  }
 0x2ed   : > { %4202 = vsyncadd (%p5568_p11), [#allocation27], 4294967264  ;;  %p5569_p13 = pmov %p5556_p0 }
 0x2ef   : > { %4204 = dma.done.wait (%p5569_p13), [#allocation30], 272  }
 0x2f0   : > { %4206 = vsyncadd (%p5556_p0), [#allocation30], 4294967024  ;;  %p5570_p5 = pmov %p5556_p0 }
 0x2f1   : > { %p5571_p9 = pmov %p5556_p0 }
 0x2f2   : > { %4208 = dma.done.wait (%p5570_p5), [#allocation33], 528  }
 0x2f3   : > { %4210 = vsyncadd (%p5571_p9), [#allocation33], 4294966768  ;;  %p5572_p7 = pmov %p5556_p0 }
 0x2f4   : > { %p5573_p8 = pmov %p5556_p0 }
 0x2f5   : > { %4212 = dma.done.wait (%p5572_p7), [#allocation36], 32  }
 0x2f6   : > { %4214 = vsyncadd (%p5573_p8), [#allocation36], 4294967264  ;;  %v4264_v0 = vmov 0.0   ;;  %vm4265_vm0 = vmmov 0   ;;  %v3399_v1 = vld [vmem:[#allocation8] sm:$0xff]   ;;  %v3400_v2 = vld [vmem:[#allocation8 + $0x8] sm:$0xff]   ;;  %v1117_v17 = vlaneseq }
 0x2f7   : > { %2947 = vmatprep.subr.bf16.mxu1 %v4264_v0  ;;  %2951 = vmatprep.mubr.msk.bf16.mxu1 %vm4265_vm0, %v4264_v0  ;;  %v5086_v3 = vld [vmem:[%s5024_s13] sm:$0xff]  ;;  %vm1158_vm1 = vcmask 261120   ;;  %s4266_s22 = smov 112   ;;  %s4267_s10 = smov 96   ;;  %vm1206_vm2 = vcmask 130048   ;;  %v4269_v21 = vmov 0  }
 0x2f8   : > { %2961 = vmatprep.subr.bf16.mxu0 %v4264_v0  ;;  %2963 = vmatprep.mubr.msk.bf16.mxu0 %vm4265_vm0, %v4264_v0  ;;  %v1134_v4 = vpack.c.bf16 %v5086_v3, %v5086_v3  ;;  %v2806_v5 = vld [vmem:[#allocation10] ss:$0 sm:$0xff]  ;;  %s4268_s16 = smov 80   ;;  %v1122_v18 = vld [vmem:[%s940_s30] sm:$0x1]  ;;  %v1118_v19 = vshrl.u32 %v1117_v17, 7 }
 0x2f9   : > { %2948 = vmatpush3.bf16.msra.mxu1 %v3399_v1  ;;  %vm1123_vm3 = vcmp.gt.f32.partialorder %v1122_v18, 0.5  ;;  %v5116_v23 = vand.u32 127, %v1117_v17  ;;  %v4270_v25 = vmov -1e+30   ;;  %vm1253_vm7 = vcmask 64512   ;;  %s4271_s3 = smov 64  }
 0x2fa   : > { %2949 = vmatprep.subr.bf16.mxu1 %v4264_v0  ;;  %v1127_v20 = vsub.s32 0, %v1118_v19  ;;  %v1124_v22 = vsel %vm1123_vm3, 1, %v4269_v21  ;;  %s4272_s7 = smov 48   ;;  %vm1271_vm8 = vcmask 1043456   ;;  %v3401_v61 = vld [vmem:[#allocation11] sm:$0xff]   ;;  %v3402_v62 = vld [vmem:[#allocation11 + $0x8] sm:$0xff]  }
 0x2fb   : > { %vm1121_vm4 = vcmp.ge.s32.totalorder %v1118_v19, %v5116_v23  ;;  %s4273_s0 = smov 16   ;;  %v3404_v21 = vld [vmem:[#allocation20 + $0x8] sm:$0xff]   ;;  %vm1132_vm9 = vcmp.lt.s32.totalorder %v5116_v23, 16  ;;  %s2805_s6 = sshll.u32 %s5018_s20, 4  ;;  %vm2310_vm10 = vcmask 523264  }
 0x2fc   : > { %v1128_v24 = vrot.slane %v1124_v22, %v1127_v20  ;;  %v3403_v20 = vld [vmem:[#allocation20] sm:$0xff]   ;;  %s5266_s8 = scalar_lea.vmem [#allocation39], %s2805_s6  ;;  %s2872_s14 = sshll.u32 %s4424_s29, 8 }
 0x2fd   : > { %2950 = vmatpush3.bf16.msra.mxu1 %v3400_v2  ;;  %v3405_v22 = vld [vmem:[%s5032_s15] sm:$0xff]   ;;  %s2417_s9 = sshll.u32 %s5266_s8, 4  ;;  %s5574_s13 = sld [smem:[#allocation81_spill]]  ;;  %s5338_s9 = int_to_ptr.vmem [resolvable:$true] %s2417_s9 }
 0x2fe   : > { %2955 = vmatprep.subr.bf16.mxu1 %v4264_v0  ;;  %vm1129_vm5 = vcmp.eq.s32.totalorder %v1128_v24, 1  ;;  %v3406_v24 = vld [vmem:[%s5032_s15 + $0x8] sm:$0xff]   ;;  %s2391_s2 = scalar_lea.sflag [#allocation40], %s5018_s20  ;;  %s4095_s11 = scalar_lea.vmem %s5338_s9, 256 }
 0x2ff   : > { %vm1130_vm6 = vmand %vm1121_vm4, %vm1129_vm5  ;;  %p4096_p12 = scmp.ne.s32.totalorder %s5338_s9, %s4095_s11  ;;  %p5575_p1 = scmp.ne.s32.totalorder %s5530_s4, 0 }
 0x300   : > { %2952 = vmatmul.mubr.msk.bf16.vlgmr.msra.gmra.mrb[0].mxu1 %vm1158_vm1, %v1134_v4  ;;  %v1131_v26 = vsel %vm1130_vm6, 0.0, %v4270_v25 }
 0x301   : > { %2957 = vmatprep.mubr.msk.bf16.mxu1 %vm4265_vm0, %v4264_v0  ;;  %p4097_p6 = pnand %p4096_p12, %p5575_p1 }
 0x303   : > { %s5336_s17 = scalar_lea.hbm %s5574_s13, %s2872_s14  ;;  %p4098_p2 = pneg %p4097_p6 }
 0x3d3   : > { %v1196_v6 = vpop.f32.mrb[0].mxu1 }
 0x3d4   : > { %v1197_v7 = vadd.f32 %v2806_v5, %v1196_v6  ;;  %v2953_v8 = vpop.f32.mrb[1].mxu1 }
 0x3d5   : > { %v1199_v9 = vpop.f32.mrb[2].mxu1 }
 0x3d6   : > { %v5095_v10 = vpack.c.bf16 %v1197_v7, %v1197_v7  ;;  %v2954_v11 = vpop.f32.mrb[3].mxu1 }
 0x3d8   : > { %1315 = vrot.lane.b32.xlu1 %v5095_v10, %s4266_s22  ;;  %1204 = vrot.lane.b32.xlu0 %v5095_v10, %s4267_s10 }
 0x3dc   : > { %1317 = vrot.lane.b32.xlu0 %v5095_v10, %s4268_s16 }
 0x44a   : > { %v1205_v12 = vpop.permute.xlu0 %1204  ;;  %v1316_v16 = vpop.permute.xlu1 %1315 }
 0x44b   : > { %v1211_v13 = vsel %vm1206_vm2, %v1205_v12, 0  ;;  %v2814_v12 = vld [vmem:[#allocation13] ss:$0 sm:$0xff] }
 0x44c   : > { %2956 = vmatpush3.bf16.xpose.msra.mxu1 %v1211_v13 }
 0x44d   : > { %2967 = vmatprep.subr.bf16.mxu1 %v4264_v0 }
 0x44e   : > { %v1318_v14 = vpop.permute.xlu0 %1317 }
 0x44f   : > { %v1323_v15 = vsel %vm1206_vm2, %v1318_v14, 0 }
 0x453   : > { %2958 = vmatmul.mubr.msk.bf16.vlgmr.msra.gmra.mrb[4].mxu1 %vm1206_vm2, %v5095_v10 }
 0x454   : > { %2968 = vmatpush3.bf16.xpose.msra.mxu1 %v1323_v15  ;;  %2969 = vmatprep.mubr.msk.bf16.mxu1 %vm4265_vm0, %v4264_v0 }
 0x455   : > { %2979 = vmatprep.subr.bf16.mxu1 %v4264_v0 }
 0x45b   : > { %2970 = vmatmul.mubr.msk.bf16.vlgmr.msra.gmra.mrb[8].mxu1 %vm1206_vm2, %v1316_v16 }
 0x45c   : > { %2983 = vmatprep.mubr.msk.bf16.mxu1 %vm4265_vm0, %v4264_v0  ;;  %2980 = vmatpush3.bf16.msra.mxu1 %v3401_v61 }
 0x45d   : > { %2981 = vmatprep.subr.bf16.mxu1 %v4264_v0 }
 0x460   : > { %2982 = vmatpush3.bf16.msra.mxu1 %v3402_v62 }
 0x461   : > { %2995 = vmatprep.subr.bf16.mxu1 %v3403_v20 }
 0x526   : > { %v1247_v27 = vpop.f32.mrb[4].mxu1 }
 0x527   : > { %v1248_v28 = vadd.f32 %v1247_v27, %v1131_v26  ;;  %v2959_v29 = vpop.f32.mrb[5].mxu1  ;;  %v3409_v27 = vld [vmem:[%s5032_s15 + $0x20] sm:$0xff]  }
 0x528   : > { %v1250_v30 = vpop.f32.mrb[6].mxu1  ;;  %v3411_v29 = vld [vmem:[%s5032_s15 + $0x30] sm:$0xff]  }
 0x529   : > { %v2960_v31 = vpop.f32.mrb[7].mxu1  ;;  %v1254_v32 = vsel %vm1253_vm7, %v1248_v28, -inf  ;;  %v3412_v30 = vld [vmem:[%s5032_s15 + $0x38] sm:$0xff]  }
 0x52a   : > { %1255 = vmax.xlane.f32.xlu1 %v1254_v32 }
 0x52e   : > { %v1359_v33 = vpop.f32.mrb[8].mxu1 }
 0x52f   : > { %v1360_v34 = vadd.f32 %v1359_v33, %v1131_v26  ;;  %v2971_v35 = vpop.f32.mrb[9].mxu1  ;;  %v3407_v26 = vld [vmem:[%s5032_s15 + $0x10] sm:$0xff]  }
 0x530   : > { %v1362_v36 = vpop.f32.mrb[10].mxu1 }
 0x531   : > { %v2972_v37 = vpop.f32.mrb[11].mxu1  ;;  %v1365_v38 = vsel %vm1253_vm7, %v1360_v34, -inf  ;;  %v3413_v36 = vld [vmem:[#allocation17] sm:$0xff]  }
 0x532   : > { %1366 = vmax.xlane.f32.xlu0 %v1365_v38  ;;  %v3414_v37 = vld [vmem:[#allocation17 + $0x8] sm:$0xff]   ;;  %v2824_v38 = vld [vmem:[#allocation22] ss:$0 sm:$0xff] }
 0x5b7   : > { %v1256_v39 = vpop.xlane.xlu1 %1255 }
 0x5b8   : > { %v1257_v40 = vsub.f32 %v1248_v28, %v1256_v39  ;;  %v3410_v28 = vld [vmem:[%s5032_s15 + $0x28] sm:$0xff]  }
 0x5ba   : > { %v1258_v41 = vmul.f32 1.442695, %v1257_v40 }
 0x5bc   : > { %3423 = vpow2.f32 %v1258_v41 }
 0x5bf   : > { %v1367_v42 = vpop.xlane.xlu0 %1366 }
 0x5c0   : > { %v1368_v43 = vsub.f32 %v1360_v34, %v1367_v42 }
 0x5c2   : > { %v1369_v44 = vmul.f32 1.442695, %v1368_v43 }
 0x5c4   : > { %3425 = vpow2.f32 %v1369_v44 }
 0x5c6   : > { %v3424_v45 = vpop.eup %3423 }
 0x5c7   : > { %v1260_v46 = vsel %vm1253_vm7, %v3424_v45, 0.0 }
 0x5c8   : > { %1261 = vadd.xlane.f32.xlu0 %v1260_v46 }
 0x5ce   : > { %v3426_v47 = vpop.eup %3425 }
 0x5cf   : > { %v1371_v48 = vsel %vm1253_vm7, %v3426_v47, 0.0 }
 0x5d0   : > { %1372 = vadd.xlane.f32.xlu1 %v1371_v48 }
 0x5de   : > { %1266 = vrot.lane.b32.xlu0 %v5095_v10, %s4271_s3 }
 0x5e1   : > { %1377 = vrot.lane.b32.xlu1 %v5095_v10, %s4272_s7 }
 0x655   : > { %v1262_v49 = vpop.xlane.xlu0 %1261 }
 0x656   : > { %3427 = vrcp.f32 %v1262_v49 }
 0x659   : > { %v1267_v50 = vpop.permute.xlu0 %1266 }
 0x65a   : > { %v1273_v51 = vsel %vm1271_vm8, %v1267_v50, 0 }
 0x65b   : > { %2962 = vmatpush3.bf16.msra.mxu0 %v1273_v51 }
 0x65c   : > { %2973 = vmatprep.subr.bf16.mxu0 %v4264_v0 }
 0x65d   : > { %v1373_v52 = vpop.xlane.xlu1 %1372 }
 0x65e   : > { %3429 = vrcp.f32 %v1373_v52 }
 0x660   : > { %v3428_v53 = vpop.eup %3427 }
 0x661   : > { %v1264_v54 = vmul.f32 %v3428_v53, %v3424_v45  ;;  %v1378_v55 = vpop.permute.xlu1 %1377 }
 0x662   : > { %v1383_v57 = vsel %vm1271_vm8, %v1378_v55, 0 }
 0x663   : > { %v1265_v56 = vpack.c.bf16 %v1264_v54, %v1264_v54 }
 0x665   : > { %2964 = vmatmul.mubr.msk.bf16.vlgmr.msra.gmra.mrb[0].mxu0 %vm1253_vm7, %v1265_v56 }
 0x666   : > { %2974 = vmatpush3.bf16.msra.mxu0 %v1383_v57  ;;  %2975 = vmatprep.mubr.msk.bf16.mxu0 %vm4265_vm0, %v4264_v0 }
 0x667   : > { %2987 = vmatprep.subr.bf16.mxu0 %v4264_v0 }
 0x668   : > { %v3430_v58 = vpop.eup %3429 }
 0x669   : > { %v1375_v59 = vmul.f32 %v3430_v58, %v3426_v47 }
 0x66b   : > { %v1376_v60 = vpack.c.bf16 %v1375_v59, %v1375_v59 }
 0x66d   : > { %2976 = vmatmul.mubr.msk.bf16.vlgmr.msra.gmra.mrb[4].mxu0 %vm1253_vm7, %v1376_v60 }
 0x66e   : > { %2991 = vmatprep.mubr.msk.bf16.mxu0 %vm4265_vm0, %v4264_v0  ;;  %2988 = vmatpush3.bf16.msra.mxu0 %v3413_v36  ;;  %v2820_v36 = vld [vmem:[#allocation19] ss:$0 sm:$0xff] }
 0x66f   : > { %2989 = vmatprep.subr.bf16.mxu0 %v4264_v0 }
 0x672   : > { %2990 = vmatpush3.bf16.msra.mxu0 %v3414_v37 }
 0x673   : > { %3015 = vmatprep.subr.bf16.mxu0 %v4264_v0 }
 0x738   : > { %v1309_v63 = vpop.f32.mrb[0].mxu0 }
 0x739   : > { %v2965_v1 = vpop.f32.mrb[1].mxu0 }
 0x73a   : > { %v1312_v2 = vpop.f32.mrb[2].mxu0 }
 0x73b   : > { %v2966_v4 = vpop.f32.mrb[3].mxu0 }
 0x740   : > { %v1419_v5 = vpop.f32.mrb[4].mxu0 }
 0x741   : > { %1426 = vrot.lane.b32.xlu1 %v1419_v5, %s4273_s0  ;;  %v2977_v6 = vpop.f32.mrb[5].mxu0 }
 0x742   : > { %v1422_v7 = vpop.f32.mrb[6].mxu0 }
 0x743   : > { %v2978_v8 = vpop.f32.mrb[7].mxu0 }
 0x7b3   : > { %v1427_v9 = vpop.permute.xlu1 %1426 }
 0x7b4   : > { %v1429_v10 = vsel %vm1206_vm2, %v1309_v63, %v1427_v9 }
 0x7b5   : > { %v1430_v11 = vpack.c.bf16 %v1429_v10, %v1429_v10 }
 0x7b7   : > { %2984 = vmatmul.mubr.msk.bf16.vlgmr.msra.gmra.mrb[12].mxu1 %vm1158_vm1, %v1430_v11 }
 0x7b8   : > { %2999 = vmatprep.mubr.msk.bf16.mxu1 %vm1158_vm1, %v3405_v22  ;;  %2996 = vmatpush3.bf16.msra.mxu1 %v3403_v20 }
 0x7b9   : > { %2997 = vmatprep.subr.bf16.mxu1 %v3404_v21 }
 0x7bc   : > { %2998 = vmatpush3.bf16.msra.mxu1 %v3404_v21  ;;  %v2818_v21 = vld [vmem:[#allocation14] ss:$0 sm:$0xff] }
 0x7bd   : > { %3035 = vmatprep.subr.bf16.mxu1 %v4264_v0 }
 0x7bf   : > { %3000 = vmatmul.mubr.msk.bf16.vlgmr.msra.gmra.mrb[16].mxu1 %vm1158_vm1, %v3406_v24  ;;  %v2819_v24 = vld [vmem:[#allocation16] ss:$0 sm:$0xff] }
 0x7c0   : > { %3003 = vmatprep.mubr.msk.bf16.mxu1 %vm1158_vm1, %v3407_v26 }
 0x88a   : > { %v1491_v13 = vpop.f32.mrb[12].mxu1 }
 0x88b   : > { %v1492_v14 = vadd.f32 %v2814_v12, %v1491_v13  ;;  %v2985_v15 = vpop.f32.mrb[13].mxu1 }
 0x88c   : > { %v1494_v16 = vpop.f32.mrb[14].mxu1 }
 0x88d   : > { %v2986_v17 = vpop.f32.mrb[15].mxu1  ;;  %v1497_v18 = vadd.f32 %v1492_v14, %v5086_v3  ;;  %v3408_v3 = vld [vmem:[%s5032_s15 + $0x18] sm:$0xff]   ;;  %s4274_s15 = smov [#allocation39]  }
 0x88e   : > { %3004 = vmatmul.mubr.msk.bf16.gmra.mrb[20].mxu1 %vm1158_vm1, %v3408_v3  ;;  %s4099_s30 = sshll.u32 %s4274_s15, 4  ;;  %s4100_s30 = int_to_ptr.vmem [resolvable:$false] %s4099_s30 }
 0x88f   : > { %v1498_v19 = vsel %vm1158_vm1, %v1497_v18, 0.0  ;;  %3007 = vmatprep.mubr.msk.bf16.mxu1 %vm1158_vm1, %v3409_v27  ;;  %p4102_p3 = scmp.lt.s32.totalorder %s5338_s9, %s4100_s30 }
 0x890   : > { %1499 = vadd.xlane.f32.xlu0 %v1498_v19 }
 0x892   : > { %v3001_v39 = vpop.f32.mrb[16].mxu1 }
 0x893   : > { %v1725_v40 = vadd.f32 %v3001_v39, %v2824_v38  ;;  %v1716_v41 = vpop.f32.mrb[17].mxu1 }
 0x894   : > { %v1717_v42 = vadd.f32 %v2824_v38, %v1716_v41  ;;  %v3002_v43 = vpop.f32.mrb[18].mxu1 }
 0x895   : > { %v1728_v44 = vadd.f32 %v3002_v43, %v2824_v38  ;;  %v1719_v45 = vpop.f32.mrb[19].mxu1  ;;  %v5216_v43 = vsel %vm1132_vm9, 0.0, %v4270_v25 }
 0x896   : > { %3008 = vmatmul.mubr.msk.bf16.gmra.mrb[24].mxu1 %vm1158_vm1, %v3410_v28  ;;  %v1720_v46 = vadd.f32 %v2824_v38, %v1719_v45 }
 0x897   : > { %3011 = vmatprep.mubr.msk.bf16.mxu1 %vm1158_vm1, %v3411_v29  ;;  %v5162_v47 = vpack.c.bf16 %v1728_v44, %v1725_v40 }
 0x898   : > { %v5164_v48 = vpack.c.bf16 %v1720_v46, %v1717_v42 }
 0x899   : > { %v1795_v29 = vsel %vm1206_vm2, %v5162_v47, 0 }
 0x89a   : > { %v1792_v28 = vsel %vm1206_vm2, %v5164_v48, 0 }
 0x89e   : > { %3012 = vmatmul.mubr.msk.bf16.gmra.mrb[28].mxu1 %vm1158_vm1, %v3412_v30 }
 0x89f   : > { %3051 = vmatprep.mubr.msk.bf16.mxu1 %vm4265_vm0, %v4264_v0 }
 0x91d   : > { %v1500_v31 = vpop.xlane.xlu0 %1499 }
 0x91e   : > { %v1502_v32 = vmul.f32 0.03125, %v1500_v31 }
 0x920   : > { %v1503_v33 = vsub.f32 %v1497_v18, %v1502_v32 }
 0x922   : > { %v1504_v34 = vmul.f32 %v1503_v33, %v1503_v33 }
 0x924   : > { %v1505_v35 = vsel %vm1158_vm1, %v1504_v34, 0.0 }
 0x925   : > { %1506 = vadd.xlane.f32.xlu1 %v1505_v35 }
 0x936   : > { %1876 = vrot.lane.b32.xlu1 %v5162_v47, %s4267_s10 }
 0x961   : > { %v3005_v49 = vpop.f32.mrb[20].mxu1 }
 0x962   : > { %v1741_v50 = vadd.f32 %v3005_v49, %v2824_v38  ;;  %v1732_v51 = vpop.f32.mrb[21].mxu1 }
 0x963   : > { %v1733_v52 = vadd.f32 %v2824_v38, %v1732_v51  ;;  %v3006_v53 = vpop.f32.mrb[22].mxu1 }
 0x964   : > { %v1744_v54 = vadd.f32 %v3006_v53, %v2824_v38  ;;  %v1735_v55 = vpop.f32.mrb[23].mxu1 }
 0x965   : > { %v1736_v56 = vadd.f32 %v2824_v38, %v1735_v55 }
 0x966   : > { %v5168_v57 = vpack.c.bf16 %v1744_v54, %v1741_v50 }
 0x967   : > { %v5170_v58 = vpack.c.bf16 %v1736_v56, %v1733_v52 }
 0x968   : > { %v1801_v31 = vsel %vm1206_vm2, %v5168_v57, 0 }
 0x969   : > { %v3009_v59 = vpop.f32.mrb[24].mxu1  ;;  %v1798_v30 = vsel %vm1206_vm2, %v5170_v58, 0 }
 0x96a   : > { %v1757_v60 = vadd.f32 %v3009_v59, %v2824_v38  ;;  %v1748_v61 = vpop.f32.mrb[25].mxu1 }
 0x96b   : > { %v1749_v62 = vadd.f32 %v2824_v38, %v1748_v61  ;;  %v3010_v63 = vpop.f32.mrb[26].mxu1 }
 0x96c   : > { %v1760_v1 = vadd.f32 %v3010_v63, %v2824_v38  ;;  %v1751_v2 = vpop.f32.mrb[27].mxu1 }
 0x96d   : > { %v1752_v4 = vadd.f32 %v2824_v38, %v1751_v2 }
 0x96e   : > { %v5172_v5 = vpack.c.bf16 %v1760_v1, %v1757_v60 }
 0x96f   : > { %v5174_v6 = vpack.c.bf16 %v1752_v4, %v1749_v62 }
 0x971   : > { %v3013_v7 = vpop.f32.mrb[28].mxu1  ;;  %v1804_v32 = vsel %vm1206_vm2, %v5174_v6, 0 }
 0x972   : > { %v1773_v8 = vadd.f32 %v3013_v7, %v2824_v38  ;;  %v1764_v9 = vpop.f32.mrb[29].mxu1 }
 0x973   : > { %v1765_v10 = vadd.f32 %v2824_v38, %v1764_v9  ;;  %v3014_v11 = vpop.f32.mrb[30].mxu1 }
 0x974   : > { %v1776_v12 = vadd.f32 %v3014_v11, %v2824_v38  ;;  %v1767_v13 = vpop.f32.mrb[31].mxu1 }
 0x975   : > { %v1768_v14 = vadd.f32 %v2824_v38, %v1767_v13 }
 0x976   : > { %v5176_v15 = vpack.c.bf16 %v1776_v12, %v1773_v8 }
 0x977   : > { %v5178_v16 = vpack.c.bf16 %v1768_v14, %v1765_v10 }
 0x978   : > { %v1813_v35 = vsel %vm1206_vm2, %v5176_v15, 0 }
 0x979   : > { %v1810_v34 = vsel %vm1206_vm2, %v5178_v16, 0 }
 0x9b2   : > { %v1507_v17 = vpop.xlane.xlu1 %1506 }
 0x9b3   : > { %v1508_v18 = vmul.f32 0.03125, %v1507_v17 }
 0x9b5   : > { %v1509_v19 = vadd.f32 1e-05, %v1508_v18 }
 0x9b6   : > { %v1877_v53 = vpop.permute.xlu1 %1876 }
 0x9b7   : > { %3431 = vrsqrt.f32 %v1509_v19 }
 0x9c1   : > { %v3432_v20 = vpop.eup %3431 }
 0x9c2   : > { %v1511_v22 = vmul.f32 %v3432_v20, %v1503_v33  ;;  %v1807_v33 = vsel %vm1206_vm2, %v5172_v5, 0 }
 0x9c4   : > { %v1519_v26 = vmul.f32 %v2818_v21, %v1511_v22 }
 0x9c6   : > { %v5180_v3 = vadd.f32 %v2819_v24, %v1519_v26 }
 0x9c8   : > { %v1528_v27 = vpack.c.bf16 %v5180_v3, %v5180_v3 }
 0x9ca   : > { %2992 = vmatmul.mubr.msk.bf16.vlgmr.msra.gmra.mrb[8].mxu0 %vm1158_vm1, %v1528_v27 }
 0x9cb   : > { %3016 = vmatpush3.bf16.xpose.msra.mxu0 %v1792_v28  ;;  %3031 = vmatprep.mubr.msk.bf16.mxu0 %vm4265_vm0, %v4264_v0 }
 0x9cc   : > { %3017 = vmatprep.subr.bf16.mxu0 %v4264_v0 }
 0x9d3   : > { %3018 = vmatpush3.bf16.xpose.msra.mxu0 %v1795_v29 }
 0x9d4   : > { %3019 = vmatprep.subr.bf16.mxu0 %v4264_v0 }
 0x9db   : > { %3020 = vmatpush3.bf16.xpose.msra.mxu0 %v1798_v30 }
 0x9dc   : > { %3021 = vmatprep.subr.bf16.mxu0 %v4264_v0 }
 0x9e3   : > { %3022 = vmatpush3.bf16.xpose.msra.mxu0 %v1801_v31 }
 0x9e4   : > { %3023 = vmatprep.subr.bf16.mxu0 %v4264_v0 }
 0x9eb   : > { %3024 = vmatpush3.bf16.xpose.msra.mxu0 %v1804_v32 }
 0x9ec   : > { %3025 = vmatprep.subr.bf16.mxu0 %v4264_v0 }
 0x9f3   : > { %3026 = vmatpush3.bf16.xpose.msra.mxu0 %v1807_v33 }
 0x9f4   : > { %3027 = vmatprep.subr.bf16.mxu0 %v4264_v0 }
 0x9fb   : > { %3028 = vmatpush3.bf16.xpose.msra.mxu0 %v1810_v34 }
 0x9fc   : > { %3029 = vmatprep.subr.bf16.mxu0 %v4264_v0 }
 0xa03   : > { %3030 = vmatpush3.bf16.xpose.msra.mxu0 %v1813_v35 }
 0xa04   : > { %3075 = vmatprep.subr.bf16.mxu0 %v4264_v0 }
 0xa9d   : > { %v1589_v37 = vpop.f32.mrb[8].mxu0 }
 0xa9e   : > { %v1590_v38 = vadd.f32 %v2820_v36, %v1589_v37  ;;  %v2993_v39 = vpop.f32.mrb[9].mxu0 }
 0xa9f   : > { %v1592_v40 = vpop.f32.mrb[10].mxu0 }
 0xaa0   : > { %v1779_v41 = vpack.c.bf16 %v1590_v38, %v1590_v38  ;;  %v2994_v42 = vpop.f32.mrb[11].mxu0 }
 0xaa2   : > { %3032 = vmatmul.mubr.msk.bf16.vlgmr.msra.gmra.mrb[12].mxu0 %vm1206_vm2, %v1779_v41 }
 0xaa3   : > { %3091 = vmatprep.mubr.msk.bf16.mxu0 %vm4265_vm0, %v4264_v0 }
 0xb75   : > { %v1849_v44 = vpop.f32.mrb[12].mxu0 }
 0xb76   : > { %v1850_v45 = vadd.f32 %v1849_v44, %v5216_v43  ;;  %v3033_v46 = vpop.f32.mrb[13].mxu0 }
 0xb77   : > { %v1852_v49 = vpop.f32.mrb[14].mxu0  ;;  %v3415_v46 = vld [vmem:[#allocation23] sm:$0xff]  }
 0xb78   : > { %1855 = vmax.xlane.f32.xlu0 %v1850_v45  ;;  %v3034_v50 = vpop.f32.mrb[15].mxu0  ;;  %v3416_v49 = vld [vmem:[#allocation23 + $0x8] sm:$0xff]  }
 0xb8e   : > { %1874 = vrot.lane.b32.xlu0 %v5164_v48, %s4267_s10 }
 0xb92   : > { %1878 = vrot.lane.b32.xlu0 %v5170_v58, %s4267_s10 }
 0xb96   : > { %1880 = vrot.lane.b32.xlu0 %v5168_v57, %s4267_s10 }
 0xb9a   : > { %1882 = vrot.lane.b32.xlu0 %v5174_v6, %s4267_s10 }
 0xb9e   : > { %1884 = vrot.lane.b32.xlu0 %v5172_v5, %s4267_s10 }
 0xba2   : > { %1886 = vrot.lane.b32.xlu0 %v5178_v16, %s4267_s10 }
 0xba6   : > { %1888 = vrot.lane.b32.xlu0 %v5176_v15, %s4267_s10 }
 0xbaa   : > { %1941 = vrot.lane.b32.xlu0 %v5164_v48, %s4266_s22 }
 0xbae   : > { %1943 = vrot.lane.b32.xlu0 %v5162_v47, %s4266_s22 }
 0xbb2   : > { %1945 = vrot.lane.b32.xlu0 %v5170_v58, %s4266_s22 }
 0xbb6   : > { %1949 = vrot.lane.b32.xlu0 %v5174_v6, %s4266_s22 }
 0xbba   : > { %1951 = vrot.lane.b32.xlu0 %v5172_v5, %s4266_s22 }
 0xbbe   : > { %1953 = vrot.lane.b32.xlu0 %v5178_v16, %s4266_s22 }
 0xbc2   : > { %1955 = vrot.lane.b32.xlu0 %v5176_v15, %s4266_s22 }
 0xc05   : > { %v1856_v23 = vpop.xlane.xlu0 %1855 }
 0xc06   : > { %v1857_v25 = vsub.f32 %v1850_v45, %v1856_v23 }
 0xc08   : > { %v1858_v51 = vmul.f32 1.442695, %v1857_v25 }
 0xc09   : > { %v1875_v52 = vpop.permute.xlu0 %1874 }
 0xc0a   : > { %3433 = vpow2.f32 %v1858_v51  ;;  %3036 = vmatpush3.bf16.msra.mxu1 %v1875_v52 }
 0xc0b   : > { %3037 = vmatprep.subr.bf16.mxu1 %v4264_v0 }
 0xc0d   : > { %v1879_v54 = vpop.permute.xlu0 %1878 }
 0xc0e   : > { %3038 = vmatpush3.bf16.msra.mxu1 %v1877_v53 }
 0xc0f   : > { %3039 = vmatprep.subr.bf16.mxu1 %v4264_v0 }
 0xc11   : > { %v1881_v55 = vpop.permute.xlu0 %1880 }
 0xc12   : > { %3040 = vmatpush3.bf16.msra.mxu1 %v1879_v54  ;;  %v2846_v54 = vld [vmem:[#allocation25] ss:$0 sm:$0xff] }
 0xc13   : > { %3041 = vmatprep.subr.bf16.mxu1 %v4264_v0 }
 0xc14   : > { %v3434_v56 = vpop.eup %3433 }
 0xc15   : > { %1860 = vadd.xlane.f32.xlu1 %v3434_v56  ;;  %v1883_v59 = vpop.permute.xlu0 %1882 }
 0xc16   : > { %3042 = vmatpush3.bf16.msra.mxu1 %v1881_v55 }
 0xc17   : > { %3043 = vmatprep.subr.bf16.mxu1 %v4264_v0 }
 0xc19   : > { %v1885_v60 = vpop.permute.xlu0 %1884 }
 0xc1a   : > { %3044 = vmatpush3.bf16.msra.mxu1 %v1883_v59 }
 0xc1b   : > { %3045 = vmatprep.subr.bf16.mxu1 %v4264_v0 }
 0xc1d   : > { %v1887_v61 = vpop.permute.xlu0 %1886 }
 0xc1e   : > { %3046 = vmatpush3.bf16.msra.mxu1 %v1885_v60 }
 0xc1f   : > { %3047 = vmatprep.subr.bf16.mxu1 %v4264_v0 }
 0xc21   : > { %v1889_v62 = vpop.permute.xlu0 %1888 }
 0xc22   : > { %3048 = vmatpush3.bf16.msra.mxu1 %v1887_v61 }
 0xc23   : > { %3049 = vmatprep.subr.bf16.mxu1 %v4264_v0 }
 0xc25   : > { %v1942_v9 = vpop.permute.xlu0 %1941 }
 0xc26   : > { %1947 = vrot.lane.b32.xlu1 %v5168_v57, %s4266_s22  ;;  %3050 = vmatpush3.bf16.msra.mxu1 %v1889_v62 }
 0xc27   : > { %3055 = vmatprep.subr.bf16.mxu1 %v4264_v0 }
 0xc2a   : > { %1939 = vrot.lane.b32.xlu1 %v1779_v41, %s4266_s22  ;;  %s4101_s22 = scalar_lea.vmem %s4100_s30, 512 }
 0xc2b   : > { %p4103_p10 = scmp.lt.s32.totalorder %s4101_s22, %s4095_s11 }
 0xc2d   : > { %p4104_p4 = por %p4103_p10, %p4102_p3 }
 0xc2e   : > { %2036 = vrot.lane.b32.xlu1 %v5164_v48, %s4268_s16  ;;  %v1961_v48 = vsel %vm1206_vm2, %v1942_v9, 0  ;;  %v3417_v9 = vld [vmem:[#allocation29] sm:$0xff]  }
 0xc2f   : > { %p4105_p11 = pnand %p4104_p4, %p4098_p2 }
 0xc32   : > { %2040 = vrot.lane.b32.xlu1 %v5170_v58, %s4268_s16  ;;  %v1944_v58 = vpop.permute.xlu0 %1943 }
 0xc36   : > { %2046 = vrot.lane.b32.xlu1 %v5172_v5, %s4268_s16  ;;  %v1964_v5 = vsel %vm1206_vm2, %v1944_v58, 0  ;;  %v1946_v11 = vpop.permute.xlu0 %1945  ;;  %v3420_v58 = vld [vmem:[#allocation32 + $0x8] sm:$0xff]  }
 0xc37   : > { %v1967_v12 = vsel %vm1206_vm2, %v1946_v11, 0 }
 0xc3a   : > { %v1950_v14 = vpop.permute.xlu0 %1949 }
 0xc3b   : > { %v1973_v17 = vsel %vm1206_vm2, %v1950_v14, 0 }
 0xc3e   : > { %v1952_v18 = vpop.permute.xlu0 %1951 }
 0xc3f   : > { %v1976_v19 = vsel %vm1206_vm2, %v1952_v18, 0 }
 0xc42   : > { %v1954_v20 = vpop.permute.xlu0 %1953 }
 0xc43   : > { %v1979_v21 = vsel %vm1206_vm2, %v1954_v20, 0 }
 0xc46   : > { %v1956_v22 = vpop.permute.xlu0 %1955 }
 0xc47   : > { %v1982_v24 = vsel %vm1206_vm2, %v1956_v22, 0  ;;  %v3422_v22 = vld [vmem:[#allocation32 + $0x18] sm:$0xff]  }
 0xca2   : > { %v1861_v63 = vpop.xlane.xlu1 %1860 }
 0xca3   : > { %3435 = vrcp.f32 %v1861_v63 }
 0xca6   : > { %v1948_v1 = vpop.permute.xlu1 %1947 }
 0xca7   : > { %v1970_v13 = vsel %vm1206_vm2, %v1948_v1, 0 }
 0xcaa   : > { %v1940_v2 = vpop.permute.xlu1 %1939 }
 0xcad   : > { %v3436_v4 = vpop.eup %3435 }
 0xcae   : > { %v1863_v7 = vmul.f32 %v3436_v4, %v3434_v56  ;;  %v2037_v8 = vpop.permute.xlu1 %2036 }
 0xcaf   : > { %3076 = vmatpush3.bf16.msra.mxu0 %v2037_v8 }
 0xcb0   : > { %v1865_v10 = vpack.c.bf16 %v1863_v7, %v1863_v7  ;;  %3077 = vmatprep.subr.bf16.mxu0 %v4264_v0  ;;  %1864 = vst [vmem:[%s5266_s8] sm:$0xff] %v1863_v7 }
 0xcb2   : > { %3052 = vmatmul.mubr.bf16.vlgmr.msra.gmra.mrb[32].mxu1 %v1865_v10  ;;  %v2041_v39 = vpop.permute.xlu1 %2040  ;;  %v3418_v10 = vld [vmem:[#allocation29 + $0x8] sm:$0xff]  }
 0xcb3   : > { %3056 = vmatpush3.bf16.xpose.msra.mxu1 %v1961_v48  ;;  %3071 = vmatprep.mubr.msk.bf16.mxu1 %vm4265_vm0, %v4264_v0  ;;  %v3419_v48 = vld [vmem:[#allocation32] sm:$0xff]  }
 0xcb4   : > { %3057 = vmatprep.subr.bf16.mxu1 %v4264_v0 }
 0xcbb   : > { %3058 = vmatpush3.bf16.xpose.msra.mxu1 %v1964_v5 }
 0xcbc   : > { %3059 = vmatprep.subr.bf16.mxu1 %v4264_v0 }
 0xcc3   : > { %3060 = vmatpush3.bf16.xpose.msra.mxu1 %v1967_v12 }
 0xcc4   : > { %3061 = vmatprep.subr.bf16.mxu1 %v4264_v0 }
 0xccb   : > { %3062 = vmatpush3.bf16.xpose.msra.mxu1 %v1970_v13  ;;  %v2850_v13 = vld [vmem:[#allocation26] ss:$0 sm:$0xff] }
 0xccc   : > { %3063 = vmatprep.subr.bf16.mxu1 %v4264_v0 }
 0xcd3   : > { %3064 = vmatpush3.bf16.xpose.msra.mxu1 %v1973_v17  ;;  %v2851_v17 = vld [vmem:[#allocation28] ss:$0 sm:$0xff] }
 0xcd4   : > { %3065 = vmatprep.subr.bf16.mxu1 %v4264_v0 }
 0xcdb   : > { %3066 = vmatpush3.bf16.xpose.msra.mxu1 %v1976_v19 }
 0xcdc   : > { %3067 = vmatprep.subr.bf16.mxu1 %v4264_v0 }
 0xce3   : > { %3068 = vmatpush3.bf16.xpose.msra.mxu1 %v1979_v21  ;;  %v3421_v21 = vld [vmem:[#allocation32 + $0x10] sm:$0xff]  }
 0xce4   : > { %3069 = vmatprep.subr.bf16.mxu1 %v4264_v0 }
 0xceb   : > { %3070 = vmatpush3.bf16.xpose.msra.mxu1 %v1982_v24  ;;  %v2852_v24 = vld [vmem:[#allocation31] ss:$0 sm:$0xff] }
 0xcec   : > { %3103 = vmatprep.subr.bf16.mxu1 %v4264_v0 }
 0xcf2   : > { %3072 = vmatmul.mubr.msk.bf16.vlgmr.msra.gmra.mrb[36].mxu1 %vm1206_vm2, %v1940_v2 }
 0xcf3   : > { %3107 = vmatprep.mubr.msk.bf16.mxu1 %vm4265_vm0, %v4264_v0  ;;  %3104 = vmatpush3.bf16.msra.mxu1 %v3417_v9 }
 0xcf4   : > { %3105 = vmatprep.subr.bf16.mxu1 %v4264_v0 }
 0xcf7   : > { %3106 = vmatpush3.bf16.msra.mxu1 %v3418_v10 }
 0xd85   : > { %v5290_v26 = vpop.f32.mrb[32].mxu1 }
 0xd86   : > { %v3053_v27 = vpop.f32.mrb[33].mxu1 }
 0xd87   : > { %v1935_v28 = vpop.f32.mrb[34].mxu1 }
 0xd88   : > { %v3054_v29 = vpop.f32.mrb[35].mxu1 }
 0xdc5   : > { %v2018_v30 = vpop.f32.mrb[36].mxu1 }
 0xdc6   : > { %v2019_v31 = vadd.f32 %v2018_v30, %v5216_v43  ;;  %v3073_v32 = vpop.f32.mrb[37].mxu1 }
 0xdc7   : > { %v2021_v33 = vpop.f32.mrb[38].mxu1 }
 0xdc8   : > { %2024 = vmax.xlane.f32.xlu0 %v2019_v31  ;;  %v3074_v34 = vpop.f32.mrb[39].mxu1  ;;  %v2856_v33 = vld [vmem:[#allocation34] ss:$0 sm:$0xff] }
 0xdde   : > { %2038 = vrot.lane.b32.xlu0 %v5162_v47, %s4268_s16 }
 0xde2   : > { %2042 = vrot.lane.b32.xlu0 %v5168_v57, %s4268_s16 }
 0xde6   : > { %2044 = vrot.lane.b32.xlu0 %v5174_v6, %s4268_s16 }
 0xdea   : > { %2048 = vrot.lane.b32.xlu0 %v5178_v16, %s4268_s16  ;;  %v2047_v16 = vpop.permute.xlu1 %2046 }
 0xe55   : > { %v2025_v35 = vpop.xlane.xlu0 %2024 }
 0xe56   : > { %v2026_v36 = vsub.f32 %v2019_v31, %v2025_v35 }
 0xe58   : > { %v2027_v37 = vmul.f32 1.442695, %v2026_v36 }
 0xe59   : > { %v2039_v38 = vpop.permute.xlu0 %2038 }
 0xe5a   : > { %3437 = vpow2.f32 %v2027_v37  ;;  %3078 = vmatpush3.bf16.msra.mxu0 %v2039_v38 }
 0xe5b   : > { %3079 = vmatprep.subr.bf16.mxu0 %v4264_v0 }
 0xe5d   : > { %v2043_v47 = vpop.permute.xlu0 %2042 }
 0xe5e   : > { %3080 = vmatpush3.bf16.msra.mxu0 %v2041_v39 }
 0xe5f   : > { %3081 = vmatprep.subr.bf16.mxu0 %v4264_v0 }
 0xe61   : > { %v2045_v6 = vpop.permute.xlu0 %2044 }
 0xe62   : > { %3082 = vmatpush3.bf16.msra.mxu0 %v2043_v47 }
 0xe63   : > { %3083 = vmatprep.subr.bf16.mxu0 %v4264_v0 }
 0xe64   : > { %v3438_v57 = vpop.eup %3437 }
 0xe65   : > { %2029 = vadd.xlane.f32.xlu1 %v3438_v57  ;;  %v2049_v40 = vpop.permute.xlu0 %2048 }
 0xe66   : > { %3084 = vmatpush3.bf16.msra.mxu0 %v2045_v6 }
 0xe67   : > { %3085 = vmatprep.subr.bf16.mxu0 %v4264_v0 }
 0xe6a   : > { %3086 = vmatpush3.bf16.msra.mxu0 %v2047_v16 }
 0xe6b   : > { %3087 = vmatprep.subr.bf16.mxu0 %v4264_v0 }
 0xe6e   : > { %3088 = vmatpush3.bf16.msra.mxu0 %v2049_v40 }
 0xe6f   : > { %3089 = vmatprep.subr.bf16.mxu0 %v4264_v0 }
 0xe76   : > { %2050 = vrot.lane.b32.xlu1 %v5176_v15, %s4268_s16 }
 0xef2   : > { %v2030_v41 = vpop.xlane.xlu1 %2029 }
 0xef3   : > { %3439 = vrcp.f32 %v2030_v41 }
 0xef6   : > { %v2051_v42 = vpop.permute.xlu1 %2050 }
 0xef7   : > { %3090 = vmatpush3.bf16.msra.mxu0 %v2051_v42 }
 0xef8   : > { %3095 = vmatprep.subr.bf16.mxu0 %v4264_v0 }
 0xefd   : > { %v3440_v43 = vpop.eup %3439 }
 0xefe   : > { %v2032_v44 = vmul.f32 %v3440_v43, %v3438_v57 }
 0xf00   : > { %2845 = vst [vmem:[%s5266_s8 + $0x8] sm:$0xff] %v2032_v44  ;;  %v2035_v45 = vpack.c.bf16 %v2032_v44, %v2032_v44 }
 0xf02   : > { %3092 = vmatmul.mubr.bf16.vlgmr.msra.gmra.mrb[16].mxu0 %v2035_v45 }
 0xf03   : > { %3099 = vmatprep.mubr.msk.bf16.mxu0 %vm4265_vm0, %v4264_v0  ;;  %3096 = vmatpush3.bf16.msra.mxu0 %v3415_v46 }
 0xf04   : > { %3097 = vmatprep.subr.bf16.mxu0 %v4264_v0 }
 0xf07   : > { %3098 = vmatpush3.bf16.msra.mxu0 %v3416_v49 }
 0xf08   : > { %3111 = vmatprep.subr.bf16.mxu0 %v4264_v0 }
 0xfd5   : > { %v2094_v15 = vpop.f32.mrb[16].mxu0 }
 0xfd6   : > { %2101 = vrot.lane.b32.xlu0 %v2094_v15, %s4273_s0  ;;  %v3093_v50 = vpop.f32.mrb[17].mxu0 }
 0xfd7   : > { %v2097_v23 = vpop.f32.mrb[18].mxu0 }
 0xfd8   : > { %v3094_v25 = vpop.f32.mrb[19].mxu0 }
0x1048   : > { %v2102_v51 = vpop.permute.xlu0 %2101 }
0x1049   : > { %v2104_v52 = vsel %vm1206_vm2, %v5290_v26, %v2102_v51 }
0x104a   : > { %v2105_v53 = vpack.c.bf16 %v2104_v52, %v2104_v52 }
0x104c   : > { %3100 = vmatmul.mubr.msk.bf16.vlgmr.msra.gmra.mrb[20].mxu0 %vm1158_vm1, %v2105_v53 }
0x104d   : > { %3119 = vmatprep.mubr.msk.bf16.mxu0 %vm4265_vm0, %v4264_v0  ;;  %3112 = vmatpush3.bf16.msra.mxu0 %v3419_v48 }
0x104e   : > { %3113 = vmatprep.subr.bf16.mxu0 %v4264_v0 }
0x1051   : > { %3114 = vmatpush3.bf16.msra.mxu0 %v3420_v58 }
0x1052   : > { %3115 = vmatprep.subr.bf16.mxu0 %v4264_v0 }
0x1055   : > { %3116 = vmatpush3.bf16.msra.mxu0 %v3421_v21 }
0x1056   : > { %3117 = vmatprep.subr.bf16.mxu0 %v4264_v0 }
0x1059   : > { %3118 = vmatpush3.bf16.msra.mxu0 %v3422_v22 }
0x111f   : > { %v2166_v55 = vpop.f32.mrb[20].mxu0 }
0x1120   : > { %v2167_v56 = vadd.f32 %v2846_v54, %v2166_v55  ;;  %v3101_v59 = vpop.f32.mrb[21].mxu0 }
0x1121   : > { %v2169_v60 = vpop.f32.mrb[22].mxu0 }
0x1122   : > { %v3102_v61 = vpop.f32.mrb[23].mxu0  ;;  %v2172_v62 = vadd.f32 %v2167_v56, %v5180_v3 }
0x1124   : > { %v2173_v63 = vsel %vm1158_vm1, %v2172_v62, 0.0 }
0x1125   : > { %2174 = vadd.xlane.f32.xlu1 %v2173_v63 }
0x11b2   : > { %v2175_v1 = vpop.xlane.xlu1 %2174 }
0x11b3   : > { %v2176_v2 = vmul.f32 0.03125, %v2175_v1 }
0x11b5   : > { %v2177_v4 = vsub.f32 %v2172_v62, %v2176_v2 }
0x11b7   : > { %v2178_v7 = vmul.f32 %v2177_v4, %v2177_v4 }
0x11b9   : > { %v2179_v8 = vsel %vm1158_vm1, %v2178_v7, 0.0 }
0x11ba   : > { %2180 = vadd.xlane.f32.xlu0 %v2179_v8 }
0x1247   : > { %v2181_v3 = vpop.xlane.xlu0 %2180 }
0x1248   : > { %v2182_v5 = vmul.f32 0.03125, %v2181_v3 }
0x124a   : > { %v2183_v11 = vadd.f32 1e-05, %v2182_v5 }
0x124c   : > { %3441 = vrsqrt.f32 %v2183_v11 }
0x1256   : > { %v3442_v12 = vpop.eup %3441 }
0x1257   : > { %v2185_v14 = vmul.f32 %v3442_v12, %v2177_v4 }
0x1259   : > { %v2193_v18 = vmul.f32 %v2850_v13, %v2185_v14 }
0x125b   : > { %v2201_v19 = vadd.f32 %v2851_v17, %v2193_v18 }
0x125d   : > { %v2202_v20 = vpack.c.bf16 %v2201_v19, %v2201_v19 }
0x125f   : > { %3108 = vmatmul.mubr.msk.bf16.vlgmr.msra.gmra.mrb[40].mxu1 %vm1158_vm1, %v2202_v20 }
0x1332   : > { %v2263_v26 = vpop.f32.mrb[40].mxu1 }
0x1333   : > { %v2264_v27 = vadd.f32 %v2852_v24, %v2263_v26  ;;  %v3109_v28 = vpop.f32.mrb[41].mxu1 }
0x1334   : > { %v2266_v29 = vpop.f32.mrb[42].mxu1 }
0x1335   : > { %v2269_v30 = vmax.f32 %v2264_v27, 0.0  ;;  %v3110_v31 = vpop.f32.mrb[43].mxu1 }
0x1337   : > { %v2270_v32 = vpack.c.bf16 %v2269_v30, %v2269_v30 }
0x1339   : > { %3120 = vmatmul.mubr.msk.bf16.vlgmr.msra.gmra.mrb[24].mxu0 %vm2310_vm10, %v2270_v32 }
0x140c   : > { %v2348_v34 = vpop.f32.mrb[24].mxu0 }
0x140d   : > { %v2349_v35 = vadd.f32 %v2856_v33, %v2348_v34  ;;  %v3121_v36 = vpop.f32.mrb[25].mxu0 }
0x140e   : > { %v2351_v0 = vpop.f32.mrb[26].mxu0 }
0x140f   : > { %v3122_v37 = vpop.f32.mrb[27].mxu0  ;;  %v2354_v38 = vadd.f32 %v2349_v35, %v2201_v19 }
0x1411   : > { %v2355_v39 = vsel %vm1158_vm1, %v2354_v38, 0.0 }
0x1412   : > { %2356 = vadd.xlane.f32.xlu0 %v2355_v39 }
0x149f   : > { %v2357_v47 = vpop.xlane.xlu0 %2356 }
0x14a0   : > { %v2358_v57 = vmul.f32 0.03125, %v2357_v47 }
0x14a2   : > { %v2359_v6 = vsub.f32 %v2354_v38, %v2358_v57 }
0x14a4   : > { %v2360_v16 = vmul.f32 %v2359_v6, %v2359_v6 }
0x14a6   : > { %v2361_v40 = vsel %vm1158_vm1, %v2360_v16, 0.0 }
0x14a7   : > { %2362 = vadd.xlane.f32.xlu1 %v2361_v40 }
0x14a8   : > { %4108 = shalt.err (!%p4105_p11)
}
0x14a9   : > { %s4109_s10 = scalar_lea.hbm %s5336_s17, 256  ;;  %s4113_s7 = scalar_lea.hbm %s5574_s13, 512 }
0x14aa   : > { %p4110_p13 = scmp.ne.s32.totalorder %s5336_s17, %s4109_s10  ;;  %p4114_p9 = scmp.lt.u32.totalorder %s5336_s17, %s5574_s13 }
0x14ab   : > { %p4115_p7 = scmp.lt.u32.totalorder %s4113_s7, %s4109_s10  ;;  %p4117_p12 = scmp.lt.u32.totalorder %s4109_s10, %s5336_s17 }
0x14ac   : > { %p4111_p0 = pnand %p4110_p13, %p5575_p1 }
0x14ad   : > { %p4116_p8 = por %p4115_p7, %p4114_p9 }
0x14ae   : > { %p4112_p5 = pneg %p4111_p0 }
0x14af   : > { %p4118_p6 = por %p4117_p12, %p4116_p8 }
0x14b1   : > { %p4119_p2 = pnand %p4118_p6, %p4112_p5 }
0x14b3   : > { %4122 = shalt.err (!%p4119_p2)
}
0x14b4   : > { %s4275_s8 = smov 128   ;;  %s4276_s14 = smov 8   ;;  %v2862_v45 = vld [vmem:[#allocation35] ss:$0 sm:$0xff]  ;;  %v2863_v49 = vld [vmem:[#allocation37] ss:$0 sm:$0xff] }
0x14b5   : > { %3210 = dma.vmem_to_hbm [thread:$0]  (%p5575_p1), %s5338_s9, 256, %s5336_s17, %s2391_s2, %s4275_s8, %s4275_s8, %s4276_s14  }
0x14b6   : > { %s2866_s18 = sshll.u32 %s4424_s29, 7  ;;  %s1091_s19 = scalar_lea.vmem [#allocation38], %s2782_s21 }
0x14b7   : > { %s2404_s11 = sshll.u32 %s1091_s19, 4  ;;  %s5576_s22 = sld [smem:[#allocation80_spill]]  ;;  %s5372_s11 = int_to_ptr.vmem [resolvable:$true] %s2404_s11 }
0x14b8   : > { %s2386_s17 = scalar_lea.sflag [#allocation4], %s5018_s20  ;;  %s4123_s2 = scalar_lea.vmem %s5372_s11, 128 }
0x14b9   : > { %p4124_p3 = scmp.ne.s32.totalorder %s5372_s11, %s4123_s2  ;;  %s4277_s29 = smov [#allocation38]  }
0x14ba   : > { %s4127_s21 = sshll.u32 %s4277_s29, 4  ;;  %s4128_s21 = int_to_ptr.vmem [resolvable:$false] %s4127_s21 }
0x14bb   : > { %p4125_p10 = pnand %p4124_p3, %p5575_p1  ;;  %s4129_s10 = scalar_lea.vmem %s4128_s21, 256 }
0x14bc   : > { %p4130_p11 = scmp.lt.s32.totalorder %s5372_s11, %s4128_s21  ;;  %p4131_p13 = scmp.lt.s32.totalorder %s4129_s10, %s4123_s2 }
0x14bd   : > { %s5370_s9 = scalar_lea.hbm %s5576_s22, %s2866_s18  ;;  %p4126_p4 = pneg %p4125_p10 }
0x14be   : > { %p4132_p0 = por %p4131_p13, %p4130_p11 }
0x14c0   : > { %p4133_p5 = pnand %p4132_p0, %p4126_p4 }
0x1534   : > { %v2363_v41 = vpop.xlane.xlu1 %2362 }
0x1535   : > { %v2364_v42 = vmul.f32 0.03125, %v2363_v41 }
0x1537   : > { %v2365_v43 = vadd.f32 1e-05, %v2364_v42 }
0x1539   : > { %3443 = vrsqrt.f32 %v2365_v43 }
0x1543   : > { %v3444_v44 = vpop.eup %3443 }
0x1544   : > { %v2367_v46 = vmul.f32 %v3444_v44, %v2359_v6 }
0x1546   : > { %v2375_v15 = vmul.f32 %v2862_v45, %v2367_v46 }
0x1548   : > { %v2383_v50 = vadd.f32 %v2863_v49, %v2375_v15 }
0x154a   : > { %2384 = vst.msk [vmem:[%s1091_s19] sm:$0xff] %vm1158_vm1, %v2383_v50 }
0x154b   : > { %4136 = shalt.err (!%p4133_p5)
}
0x154c   : > { %s4137_s20 = scalar_lea.hbm %s5370_s9, 128  ;;  %s4141_s7 = scalar_lea.hbm %s5576_s22, 256 }
0x154d   : > { %p4138_p9 = scmp.ne.s32.totalorder %s5370_s9, %s4137_s20  ;;  %p4142_p12 = scmp.lt.u32.totalorder %s5370_s9, %s5576_s22 }
0x154e   : > { %p4143_p6 = scmp.lt.u32.totalorder %s4141_s7, %s4137_s20  ;;  %p4145_p3 = scmp.lt.u32.totalorder %s4137_s20, %s5370_s9 }
0x154f   : > { %p4139_p7 = pnand %p4138_p9, %p5575_p1 }
0x1550   : > { %p4144_p2 = por %p4143_p6, %p4142_p12 }
0x1551   : > { %p4140_p8 = pneg %p4139_p7 }
0x1552   : > { %p4146_p10 = por %p4145_p3, %p4144_p2 }
0x1554   : > { %p4147_p4 = pnand %p4146_p10, %p4140_p8 }
0x1556   : > { %4150 = shalt.err (!%p4147_p4)
}
0x1557   : > { %3209 = dma.vmem_to_hbm [thread:$0]  (%p5575_p1), %s5372_s11, 128, %s5370_s9, %s2386_s17  }
0x1558 PF: > { %s2432_s8 = sand.u32 1, %s4225_s5   ;;  %p5577_p11 = scmp.ne.s32.totalorder %s5531_s24, 0 }
0x1559   : > { %p5578_p13 = scmp.ge.s32.totalorder %s4237_s28, 2  ;;  %s2433_s14 = scalar_lea.sflag [#allocation4], %s2432_s8 }
0x155b   : > { %p3285_p0 = pnand %p5578_p13, %p5577_p11 }
0x155d   : > { %4216 = dma.done.wait (!%p3285_p0), %s2433_s14, 128  }
0x155e   : > { %4218 = vsyncadd (!%p3285_p0), %s2433_s14, 4294967168  ;;  %s2442_s18 = scalar_lea.sflag [#allocation40], %s2432_s8 }
0x155f   : > { %4220 = dma.done.wait (!%p3285_p0), %s2442_s18, 256  }
0x1560   : > { %4222 = vsyncadd (!%p3285_p0), %s2442_s18, 4294967040  ;;  %s5579_s4 = sld [smem:[#allocation56_spill]]  ;;  %p54_p1 = scmp.ge.s32.totalorder %s4673_s1, 4  }
0x1561   : > { %s5580_s5 = smov %s4229_s26  ;;  %s5581_s26 = smov %s4233_s27 }
0x1562   : > { %s5583_s28 = smov %s4673_s1  ;;  %56 = sbr.rel (!%p54_p1) target bundleno = 45 (0x2d), region = 279 }
0x1566   : > { %s5582_s27 = smov %s5579_s4 }
0x1569   :  { %2447 = vsyncpa [#allocation3], 1 }
0x156a   :  { %2449 = vsyncpa [#allocation3 + $0x1], 1 }
0x156b   :  { %2450 = vsyncpa [#allocation6], 1 }
0x156c   :  { %2452 = vsyncpa [#allocation6 + $0x1], 1 }
0x156d   :  { %2453 = vsyncpa [#allocation9], 1 }
0x156e   :  { %2454 = vsyncpa [#allocation12], 1 }
0x156f   :  { %2455 = vsyncpa [#allocation15], 1 }
0x1570   :  { %2456 = vsyncpa [#allocation18], 1 }
0x1571   :  { %2457 = vsyncpa [#allocation21], 1 }
0x1572   :  { %2458 = vsyncpa [#allocation24], 1 }
0x1573   :  { %2459 = vsyncpa [#allocation27], 1 }
0x1574   :  { %2460 = vsyncpa [#allocation30], 1 }
0x1575   :  { %2461 = vsyncpa [#allocation33], 1 }
0x1576   :  { %2462 = vsyncpa [#allocation36], 1 }
0x1577   :  { %2463 = vsyncpa [#allocation4], 1 }
0x1578   :  { %2465 = vsyncpa [#allocation4 + $0x1], 1 }
0x1579   :  { %2466 = vsyncpa [#allocation40], 1 }
0x157a   :  { %2468 = vsyncpa [#allocation40 + $0x1], 1 }

// kernel: decoder_with_transformer_forward.4
= control target key start
LH: loop header
LB: loop body
LE: loop exit
PB: predicated region body
PF: predicated region fallthrough
CT: control target
= control target key end

     0   :  { %vm1572_vm0 = vcmask 257024   ;;  %s2694_s1 = inlined_call_operand.vmem [shape: bf16[2048,32], index: 1, kind: input, shape index: {}]   ;;  %s2695_s0 = inlined_call_operand.vmem [shape: f32[32,2048], index: 0, kind: input, shape index: {}]   ;;  %s2696_s2 = inlined_call_operand.vmem [shape: f32[1,32], index: 2, kind: input, shape index: {}]   ;;  %s2697_s3 = inlined_call_operand.vmem [shape: f32[1,32], index: 3, kind: input, shape index: {}]   ;;  %s2698_s4 = inlined_call_operand.vmem [shape: bf16[32,32], index: 4, kind: output, shape index: {}]  }
   0x1   :  { %v1943_v0 = vld [vmem:[%s2694_s1 + $0x40] sm:$0xff]   ;;  %v1947_v4 = vld [vmem:[%s2694_s1 + $0x48] sm:$0xff]   ;;  %v1951_v8 = vld [vmem:[%s2694_s1 + $0x50] sm:$0xff]  }
   0x2   :  { %v1944_v1 = vld [vmem:[%s2694_s1 + $0xc0] sm:$0xff]   ;;  %1719 = vmatprep.subr.bf16.mxu0 %v1943_v0  ;;  %v1948_v5 = vld [vmem:[%s2694_s1 + $0xc8] sm:$0xff]   ;;  %v1952_v9 = vld [vmem:[%s2694_s1 + $0xd0] sm:$0xff]  }
   0x3   :  { %v1945_v2 = vld [vmem:[%s2694_s1] sm:$0xff]   ;;  %1747 = vmatprep.subr.bf16.mxu1 %v1944_v1  ;;  %v1949_v6 = vld [vmem:[%s2694_s1 + $0x8] sm:$0xff]   ;;  %v1953_v10 = vld [vmem:[%s2694_s1 + $0x10] sm:$0xff]  }
   0x4   :  { %v1946_v3 = vld [vmem:[%s2694_s1 + $0x80] sm:$0xff]   ;;  %1720 = vmatpush3.bf16.msra.mxu0 %v1945_v2  ;;  %v1950_v7 = vld [vmem:[%s2694_s1 + $0x88] sm:$0xff]   ;;  %v1954_v11 = vld [vmem:[%s2694_s1 + $0x90] sm:$0xff]  }
   0x5   :  { %1748 = vmatpush3.bf16.msra.mxu1 %v1946_v3  ;;  %1721 = vmatprep.subr.bf16.mxu0 %v1947_v4  ;;  %v1955_v12 = vld [vmem:[%s2694_s1 + $0x58] sm:$0xff]   ;;  %v1959_v16 = vld [vmem:[%s2694_s1 + $0x60] sm:$0xff]   ;;  %v1963_v20 = vld [vmem:[%s2694_s1 + $0x68] sm:$0xff]  }
   0x6   :  { %1749 = vmatprep.subr.bf16.mxu1 %v1948_v5  ;;  %v1956_v13 = vld [vmem:[%s2694_s1 + $0xd8] sm:$0xff]   ;;  %v1960_v17 = vld [vmem:[%s2694_s1 + $0xe0] sm:$0xff]   ;;  %v1964_v21 = vld [vmem:[%s2694_s1 + $0xe8] sm:$0xff]  }
   0x7   :  { %v1957_v14 = vld [vmem:[%s2694_s1 + $0x18] sm:$0xff]   ;;  %v1961_v18 = vld [vmem:[%s2694_s1 + $0x20] sm:$0xff]   ;;  %v1965_v22 = vld [vmem:[%s2694_s1 + $0x28] sm:$0xff]  }
   0x8   :  { %1722 = vmatpush3.bf16.msra.mxu0 %v1949_v6  ;;  %v1958_v15 = vld [vmem:[%s2694_s1 + $0x98] sm:$0xff]   ;;  %v1962_v19 = vld [vmem:[%s2694_s1 + $0xa0] sm:$0xff]   ;;  %v1966_v23 = vld [vmem:[%s2694_s1 + $0xa8] sm:$0xff]  }
   0x9   :  { %1750 = vmatpush3.bf16.msra.mxu1 %v1950_v7  ;;  %1723 = vmatprep.subr.bf16.mxu0 %v1951_v8  ;;  %v1967_v24 = vld [vmem:[%s2694_s1 + $0x70] sm:$0xff]   ;;  %v1971_v28 = vld [vmem:[%s2694_s1 + $0x78] sm:$0xff]   ;;  %v19_v32 = vld [vmem:[%s2695_s0 + $0x8] sm:$0xff] }
   0xa   :  { %1751 = vmatprep.subr.bf16.mxu1 %v1952_v9  ;;  %v1968_v25 = vld [vmem:[%s2694_s1 + $0xf0] sm:$0xff]   ;;  %v1972_v29 = vld [vmem:[%s2694_s1 + $0xf8] sm:$0xff]   ;;  %v35_v33 = vld [vmem:[%s2695_s0 + $0x88] sm:$0xff] }
   0xb   :  { %v1969_v26 = vld [vmem:[%s2694_s1 + $0x30] sm:$0xff]   ;;  %v1973_v30 = vld [vmem:[%s2694_s1 + $0x38] sm:$0xff]   ;;  %v83_v35 = vpack.c.bf16 %v35_v33, %v19_v32  ;;  %v18_v37 = vld [vmem:[%s2695_s0] sm:$0xff] }
   0xc   :  { %1724 = vmatpush3.bf16.msra.mxu0 %v1953_v10  ;;  %v1970_v27 = vld [vmem:[%s2694_s1 + $0xb0] sm:$0xff]   ;;  %v1974_v31 = vld [vmem:[%s2694_s1 + $0xb8] sm:$0xff]   ;;  %v34_v38 = vld [vmem:[%s2695_s0 + $0x80] sm:$0xff] }
   0xd   :  { %1752 = vmatpush3.bf16.msra.mxu1 %v1954_v11  ;;  %1725 = vmatprep.subr.bf16.mxu0 %v1955_v12  ;;  %v21_v34 = vld [vmem:[%s2695_s0 + $0x18] sm:$0xff]  ;;  %v82_v40 = vpack.c.bf16 %v34_v38, %v18_v37  ;;  %v20_v41 = vld [vmem:[%s2695_s0 + $0x10] sm:$0xff]  ;;  %v1975_v44 = vld [vmem:[%s2694_s1 + $0x140] sm:$0xff]  }
   0xe   :  { %1753 = vmatprep.subr.bf16.mxu1 %v1956_v13  ;;  %v37_v36 = vld [vmem:[%s2695_s0 + $0x98] sm:$0xff]  ;;  %v36_v42 = vld [vmem:[%s2695_s0 + $0x90] sm:$0xff]  ;;  %1170 = vmatprep.mubr.bf16.mxu0 %v83_v35  ;;  %v1976_v45 = vld [vmem:[%s2694_s1 + $0x1c0] sm:$0xff]  }
   0xf   :  { %v85_v39 = vpack.c.bf16 %v37_v36, %v21_v34  ;;  %v84_v43 = vpack.c.bf16 %v36_v42, %v20_v41  ;;  %v1977_v46 = vld [vmem:[%s2694_s1 + $0x100] sm:$0xff]   ;;  %v1979_v48 = vld [vmem:[%s2694_s1 + $0x148] sm:$0xff]   ;;  %v1983_v52 = vld [vmem:[%s2694_s1 + $0x150] sm:$0xff]  }
  0x10   :  { %1726 = vmatpush3.bf16.msra.mxu0 %v1957_v14  ;;  %v1978_v47 = vld [vmem:[%s2694_s1 + $0x180] sm:$0xff]   ;;  %v1980_v49 = vld [vmem:[%s2694_s1 + $0x1c8] sm:$0xff]   ;;  %v1984_v53 = vld [vmem:[%s2694_s1 + $0x1d0] sm:$0xff]  }
  0x11   :  { %1754 = vmatpush3.bf16.msra.mxu1 %v1958_v15  ;;  %1727 = vmatprep.subr.bf16.mxu0 %v1959_v16  ;;  %v1981_v50 = vld [vmem:[%s2694_s1 + $0x108] sm:$0xff]   ;;  %v1985_v54 = vld [vmem:[%s2694_s1 + $0x110] sm:$0xff]   ;;  %v1987_v56 = vld [vmem:[%s2694_s1 + $0x158] sm:$0xff]  }
  0x12   :  { %1755 = vmatprep.subr.bf16.mxu1 %v1960_v17  ;;  %1219 = vmatprep.mubr.bf16.mxu1 %v85_v39  ;;  %v1982_v51 = vld [vmem:[%s2694_s1 + $0x188] sm:$0xff]   ;;  %v1986_v55 = vld [vmem:[%s2694_s1 + $0x190] sm:$0xff]   ;;  %v1988_v57 = vld [vmem:[%s2694_s1 + $0x1d8] sm:$0xff]  }
  0x13   :  { %v1989_v58 = vld [vmem:[%s2694_s1 + $0x118] sm:$0xff]   ;;  %v1991_v60 = vld [vmem:[%s2694_s1 + $0x160] sm:$0xff]   ;;  %v1995_v0 = vld [vmem:[%s2694_s1 + $0x168] sm:$0xff]  }
  0x14   :  { %1728 = vmatpush3.bf16.msra.mxu0 %v1961_v18  ;;  %v1990_v59 = vld [vmem:[%s2694_s1 + $0x198] sm:$0xff]   ;;  %v1992_v61 = vld [vmem:[%s2694_s1 + $0x1e0] sm:$0xff]   ;;  %v1996_v1 = vld [vmem:[%s2694_s1 + $0x1e8] sm:$0xff]  }
  0x15   :  { %1756 = vmatpush3.bf16.msra.mxu1 %v1962_v19  ;;  %1729 = vmatprep.subr.bf16.mxu0 %v1963_v20  ;;  %v1993_v62 = vld [vmem:[%s2694_s1 + $0x120] sm:$0xff]   ;;  %v51_v2 = vld [vmem:[%s2695_s0 + $0x108] sm:$0xff]  ;;  %v53_v4 = vld [vmem:[%s2695_s0 + $0x118] sm:$0xff] }
  0x16   :  { %1757 = vmatprep.subr.bf16.mxu1 %v1964_v21  ;;  %v1994_v63 = vld [vmem:[%s2694_s1 + $0x1a0] sm:$0xff]   ;;  %v67_v3 = vld [vmem:[%s2695_s0 + $0x188] sm:$0xff]  ;;  %v69_v5 = vld [vmem:[%s2695_s0 + $0x198] sm:$0xff] }
  0x17   :  { %v99_v6 = vpack.c.bf16 %v67_v3, %v51_v2  ;;  %v101_v7 = vpack.c.bf16 %v69_v5, %v53_v4  ;;  %v1997_v8 = vld [vmem:[%s2694_s1 + $0x128] sm:$0xff]   ;;  %v50_v10 = vld [vmem:[%s2695_s0 + $0x100] sm:$0xff]  ;;  %v52_v12 = vld [vmem:[%s2695_s0 + $0x110] sm:$0xff] }
  0x18   :  { %1730 = vmatpush3.bf16.msra.mxu0 %v1965_v22  ;;  %v1998_v9 = vld [vmem:[%s2694_s1 + $0x1a8] sm:$0xff]   ;;  %v66_v11 = vld [vmem:[%s2695_s0 + $0x180] sm:$0xff]  ;;  %v68_v14 = vld [vmem:[%s2695_s0 + $0x190] sm:$0xff] }
  0x19   :  { %1758 = vmatpush3.bf16.msra.mxu1 %v1966_v23  ;;  %1731 = vmatprep.subr.bf16.mxu0 %v1967_v24  ;;  %v98_v13 = vpack.c.bf16 %v66_v11, %v50_v10  ;;  %v100_v15 = vpack.c.bf16 %v68_v14, %v52_v12  ;;  %v1999_v16 = vld [vmem:[%s2694_s1 + $0x170] sm:$0xff]   ;;  %v2003_v20 = vld [vmem:[%s2694_s1 + $0x178] sm:$0xff]   ;;  %v23_v24 = vld [vmem:[%s2695_s0 + $0x28] sm:$0xff] }
  0x1a   :  { %1759 = vmatprep.subr.bf16.mxu1 %v1968_v25  ;;  %v2000_v17 = vld [vmem:[%s2694_s1 + $0x1f0] sm:$0xff]   ;;  %v2004_v21 = vld [vmem:[%s2694_s1 + $0x1f8] sm:$0xff]   ;;  %v39_v25 = vld [vmem:[%s2695_s0 + $0xa8] sm:$0xff] }
  0x1b   :  { %v2001_v18 = vld [vmem:[%s2694_s1 + $0x130] sm:$0xff]   ;;  %v2005_v22 = vld [vmem:[%s2694_s1 + $0x138] sm:$0xff]   ;;  %v2007_v36 = vld [vmem:[%s2694_s1 + $0x240] sm:$0xff]  }
  0x1c   :  { %1732 = vmatpush3.bf16.msra.mxu0 %v1969_v26  ;;  %v2002_v19 = vld [vmem:[%s2694_s1 + $0x1b0] sm:$0xff]   ;;  %v2006_v23 = vld [vmem:[%s2694_s1 + $0x1b8] sm:$0xff]   ;;  %v87_v26 = vpack.c.bf16 %v39_v25, %v23_v24  ;;  %v2008_v37 = vld [vmem:[%s2694_s1 + $0x2c0] sm:$0xff]  }
  0x1d   :  { %1760 = vmatpush3.bf16.msra.mxu1 %v1970_v27  ;;  %1733 = vmatprep.subr.bf16.mxu0 %v1971_v28  ;;  %v25_v27 = vld [vmem:[%s2695_s0 + $0x38] sm:$0xff]  ;;  %v24_v32 = vld [vmem:[%s2695_s0 + $0x30] sm:$0xff]  ;;  %v2009_v38 = vld [vmem:[%s2694_s1 + $0x200] sm:$0xff]  }
  0x1e   :  { %1761 = vmatprep.subr.bf16.mxu1 %v1972_v29  ;;  %v41_v28 = vld [vmem:[%s2695_s0 + $0xb8] sm:$0xff]  ;;  %v22_v29 = vld [vmem:[%s2695_s0 + $0x20] sm:$0xff]  ;;  %v40_v33 = vld [vmem:[%s2695_s0 + $0xb0] sm:$0xff] }
  0x1f   :  { %v88_v35 = vpack.c.bf16 %v40_v33, %v24_v32  ;;  %v2010_v39 = vld [vmem:[%s2694_s1 + $0x280] sm:$0xff]   ;;  %v2012_v41 = vld [vmem:[%s2694_s1 + $0x2c8] sm:$0xff]   ;;  %v2033_v10 = vld [vmem:[%s2694_s1 + $0x230] sm:$0xff]  }
  0x20   :  { %1734 = vmatpush3.bf16.msra.mxu0 %v1973_v30  ;;  %v89_v30 = vpack.c.bf16 %v41_v28, %v25_v27  ;;  %v2013_v42 = vld [vmem:[%s2694_s1 + $0x208] sm:$0xff]   ;;  %v2025_v2 = vld [vmem:[%s2694_s1 + $0x220] sm:$0xff]   ;;  %v2034_v11 = vld [vmem:[%s2694_s1 + $0x2b0] sm:$0xff]  }
  0x21   :  { %1762 = vmatpush3.bf16.msra.mxu1 %v1974_v31  ;;  %1775 = vmatprep.subr.bf16.mxu0 %v1975_v44  ;;  %v38_v31 = vld [vmem:[%s2695_s0 + $0xa0] sm:$0xff]  ;;  %v55_v44 = vld [vmem:[%s2695_s0 + $0x128] sm:$0xff]  ;;  %v2035_v12 = vld [vmem:[%s2694_s1 + $0x278] sm:$0xff]  }
  0x22   :  { %1803 = vmatprep.subr.bf16.mxu1 %v1976_v45  ;;  %v86_v34 = vpack.c.bf16 %v38_v31, %v22_v29  ;;  %v71_v45 = vld [vmem:[%s2695_s0 + $0x1a8] sm:$0xff]  ;;  %v2026_v3 = vld [vmem:[%s2694_s1 + $0x2a0] sm:$0xff]   ;;  %v2037_v14 = vld [vmem:[%s2694_s1 + $0x238] sm:$0xff]  }
  0x23   :  { %1171 = vmatmul.mubr.bf16.vlgmr.msra.gmra.mrb[0].mxu0 %v82_v40  ;;  %v2011_v40 = vld [vmem:[%s2694_s1 + $0x248] sm:$0xff]   ;;  %v28_v24 = vld [vmem:[%s2695_s0 + $0x50] sm:$0xff]  ;;  %v2039_v28 = vld [vmem:[%s2694_s1 + $0x340] sm:$0xff]  }
  0x24   :  { %1220 = vmatmul.mubr.bf16.vlgmr.msra.gmra.mrb[0].mxu1 %v84_v43  ;;  %1776 = vmatpush3.bf16.msra.mxu0 %v1977_v46  ;;  %v2014_v43 = vld [vmem:[%s2694_s1 + $0x288] sm:$0xff]   ;;  %v54_v46 = vld [vmem:[%s2695_s0 + $0x120] sm:$0xff] }
  0x25   :  { %1804 = vmatpush3.bf16.msra.mxu1 %v1978_v47  ;;  %1777 = vmatprep.subr.bf16.mxu0 %v1979_v48  ;;  %v103_v47 = vpack.c.bf16 %v71_v45, %v55_v44  ;;  %v70_v48 = vld [vmem:[%s2695_s0 + $0x1a0] sm:$0xff]  ;;  %v2027_v4 = vld [vmem:[%s2694_s1 + $0x268] sm:$0xff]   ;;  %v61_v44 = vld [vmem:[%s2695_s0 + $0x158] sm:$0xff] }
  0x26   :  { %1805 = vmatprep.subr.bf16.mxu1 %v1980_v49  ;;  %1178 = vmatprep.mubr.bf16.mxu0 %v99_v6  ;;  %v102_v49 = vpack.c.bf16 %v70_v48, %v54_v46  ;;  %v2028_v5 = vld [vmem:[%s2694_s1 + $0x2e8] sm:$0xff]   ;;  %v2040_v29 = vld [vmem:[%s2694_s1 + $0x3c0] sm:$0xff]   ;;  %v77_v45 = vld [vmem:[%s2695_s0 + $0x1d8] sm:$0xff] }
  0x27   :  { %1227 = vmatprep.mubr.bf16.mxu1 %v101_v7  ;;  %v2029_v6 = vld [vmem:[%s2694_s1 + $0x228] sm:$0xff]   ;;  %v2042_v31 = vld [vmem:[%s2694_s1 + $0x380] sm:$0xff]   ;;  %v109_v46 = vpack.c.bf16 %v77_v45, %v61_v44  ;;  %v2050_v48 = vld [vmem:[%s2694_s1 + $0x390] sm:$0xff]  }
  0x28   :  { %1778 = vmatpush3.bf16.msra.mxu0 %v1981_v50  ;;  %v2015_v50 = vld [vmem:[%s2694_s1 + $0x250] sm:$0xff]   ;;  %v2030_v7 = vld [vmem:[%s2694_s1 + $0x2a8] sm:$0xff]  }
  0x29   :  { %1806 = vmatpush3.bf16.msra.mxu1 %v1982_v51  ;;  %1779 = vmatprep.subr.bf16.mxu0 %v1983_v52  ;;  %v2016_v51 = vld [vmem:[%s2694_s1 + $0x2d0] sm:$0xff]   ;;  %v57_v52 = vld [vmem:[%s2695_s0 + $0x138] sm:$0xff]  ;;  %v2043_v32 = vld [vmem:[%s2694_s1 + $0x348] sm:$0xff]  }
  0x2a   :  { %1807 = vmatprep.subr.bf16.mxu1 %v1984_v53  ;;  %v73_v53 = vld [vmem:[%s2695_s0 + $0x1b8] sm:$0xff]  ;;  %v2044_v33 = vld [vmem:[%s2694_s1 + $0x3c8] sm:$0xff]  }
  0x2b   :  { %1179 = vmatmul.mubr.bf16.gmra.mrb[4].mxu0 %v98_v13  ;;  %v2036_v13 = vld [vmem:[%s2694_s1 + $0x2f8] sm:$0xff]  }
  0x2c   :  { %1780 = vmatpush3.bf16.msra.mxu0 %v1985_v54  ;;  %1228 = vmatmul.mubr.bf16.gmra.mrb[4].mxu1 %v100_v15  ;;  %v105_v54 = vpack.c.bf16 %v73_v53, %v57_v52  ;;  %v2038_v15 = vld [vmem:[%s2694_s1 + $0x2b8] sm:$0xff]  }
  0x2d   :  { %1808 = vmatpush3.bf16.msra.mxu1 %v1986_v55  ;;  %1781 = vmatprep.subr.bf16.mxu0 %v1987_v56  ;;  %v2017_v55 = vld [vmem:[%s2694_s1 + $0x210] sm:$0xff]   ;;  %v2051_v52 = vld [vmem:[%s2694_s1 + $0x358] sm:$0xff]  }
  0x2e   :  { %1809 = vmatprep.subr.bf16.mxu1 %v1988_v57  ;;  %1268 = vmatprep.mubr.bf16.mxu0 %v87_v26  ;;  %v2018_v56 = vld [vmem:[%s2694_s1 + $0x290] sm:$0xff]   ;;  %v2052_v53 = vld [vmem:[%s2694_s1 + $0x3d8] sm:$0xff]  }
  0x2f   :  { %1317 = vmatprep.mubr.bf16.mxu1 %v89_v30  ;;  %v56_v57 = vld [vmem:[%s2695_s0 + $0x130] sm:$0xff]  ;;  %v2041_v30 = vld [vmem:[%s2694_s1 + $0x300] sm:$0xff]  }
  0x30   :  { %1782 = vmatpush3.bf16.msra.mxu0 %v1989_v58  ;;  %v72_v58 = vld [vmem:[%s2695_s0 + $0x1b0] sm:$0xff] }
  0x31   :  { %1810 = vmatpush3.bf16.msra.mxu1 %v1990_v59  ;;  %1783 = vmatprep.subr.bf16.mxu0 %v1991_v60  ;;  %v104_v59 = vpack.c.bf16 %v72_v58, %v56_v57  ;;  %v2019_v60 = vld [vmem:[%s2694_s1 + $0x258] sm:$0xff]   ;;  %v44_v26 = vld [vmem:[%s2695_s0 + $0xd0] sm:$0xff]  ;;  %v2056_v57 = vld [vmem:[%s2694_s1 + $0x3e0] sm:$0xff]  }
  0x32   :  { %1811 = vmatprep.subr.bf16.mxu1 %v1992_v61  ;;  %v2020_v61 = vld [vmem:[%s2694_s1 + $0x2d8] sm:$0xff]   ;;  %v92_v27 = vpack.c.bf16 %v44_v26, %v28_v24  ;;  %v2057_v58 = vld [vmem:[%s2694_s1 + $0x320] sm:$0xff]  }
  0x33   :  { %v62_v26 = vld [vmem:[%s2695_s0 + $0x160] sm:$0xff] }
  0x34   :  { %1784 = vmatpush3.bf16.msra.mxu0 %v1993_v62  ;;  %v2021_v62 = vld [vmem:[%s2694_s1 + $0x218] sm:$0xff]  }
  0x35   :  { %1812 = vmatpush3.bf16.msra.mxu1 %v1994_v63  ;;  %1785 = vmatprep.subr.bf16.mxu0 %v1995_v0  ;;  %v2022_v63 = vld [vmem:[%s2694_s1 + $0x298] sm:$0xff]   ;;  %v2023_v0 = vld [vmem:[%s2694_s1 + $0x260] sm:$0xff]  }
  0x36   :  { %1813 = vmatprep.subr.bf16.mxu1 %v1996_v1  ;;  %v2024_v1 = vld [vmem:[%s2694_s1 + $0x2e0] sm:$0xff]  }
  0x38   :  { %1786 = vmatpush3.bf16.msra.mxu0 %v1997_v8  ;;  %v2031_v8 = vld [vmem:[%s2694_s1 + $0x270] sm:$0xff]  }
  0x39   :  { %1814 = vmatpush3.bf16.msra.mxu1 %v1998_v9  ;;  %1787 = vmatprep.subr.bf16.mxu0 %v1999_v16  ;;  %v2032_v9 = vld [vmem:[%s2694_s1 + $0x2f0] sm:$0xff]   ;;  %v27_v16 = vld [vmem:[%s2695_s0 + $0x48] sm:$0xff] }
  0x3a   :  { %1815 = vmatprep.subr.bf16.mxu1 %v2000_v17  ;;  %v43_v17 = vld [vmem:[%s2695_s0 + $0xc8] sm:$0xff] }
  0x3c   :  { %1788 = vmatpush3.bf16.msra.mxu0 %v2001_v18  ;;  %v29_v18 = vld [vmem:[%s2695_s0 + $0x58] sm:$0xff] }
  0x3d   :  { %1816 = vmatpush3.bf16.msra.mxu1 %v2002_v19  ;;  %1789 = vmatprep.subr.bf16.mxu0 %v2003_v20  ;;  %v45_v19 = vld [vmem:[%s2695_s0 + $0xd8] sm:$0xff]  ;;  %v91_v20 = vpack.c.bf16 %v43_v17, %v27_v16  ;;  %v32_v17 = vld [vmem:[%s2695_s0 + $0x70] sm:$0xff] }
  0x3e   :  { %1817 = vmatprep.subr.bf16.mxu1 %v2004_v21  ;;  %v93_v21 = vpack.c.bf16 %v45_v19, %v29_v18  ;;  %v48_v18 = vld [vmem:[%s2695_s0 + $0xf0] sm:$0xff]  ;;  %v63_v19 = vld [vmem:[%s2695_s0 + $0x168] sm:$0xff] }
  0x40   :  { %1790 = vmatpush3.bf16.msra.mxu0 %v2005_v22  ;;  %v26_v22 = vld [vmem:[%s2695_s0 + $0x40] sm:$0xff] }
  0x41   :  { %1818 = vmatpush3.bf16.msra.mxu1 %v2006_v23  ;;  %1831 = vmatprep.subr.bf16.mxu0 %v2007_v36  ;;  %v42_v23 = vld [vmem:[%s2695_s0 + $0xc0] sm:$0xff]  ;;  %v59_v36 = vld [vmem:[%s2695_s0 + $0x148] sm:$0xff] }
  0x42   :  { %1859 = vmatprep.subr.bf16.mxu1 %v2008_v37  ;;  %v90_v25 = vpack.c.bf16 %v42_v23, %v26_v22  ;;  %v75_v37 = vld [vmem:[%s2695_s0 + $0x1c8] sm:$0xff]  ;;  %v65_v22 = vld [vmem:[%s2695_s0 + $0x178] sm:$0xff] }
  0x43   :  { %1269 = vmatmul.mubr.bf16.vlgmr.msra.gmra.mrb[8].mxu0 %v86_v34  ;;  %v2045_v34 = vld [vmem:[%s2694_s1 + $0x308] sm:$0xff]   ;;  %v81_v23 = vld [vmem:[%s2695_s0 + $0x1f8] sm:$0xff] }
  0x44   :  { %1318 = vmatmul.mubr.bf16.vlgmr.msra.gmra.mrb[8].mxu1 %v88_v35  ;;  %1832 = vmatpush3.bf16.msra.mxu0 %v2009_v38  ;;  %v2046_v35 = vld [vmem:[%s2694_s1 + $0x388] sm:$0xff]   ;;  %v107_v38 = vpack.c.bf16 %v75_v37, %v59_v36 }
  0x45   :  { %1860 = vmatpush3.bf16.msra.mxu1 %v2010_v39  ;;  %1833 = vmatprep.subr.bf16.mxu0 %v2011_v40  ;;  %v58_v39 = vld [vmem:[%s2695_s0 + $0x140] sm:$0xff] }
  0x46   :  { %1861 = vmatprep.subr.bf16.mxu1 %v2012_v41  ;;  %1276 = vmatprep.mubr.bf16.mxu0 %v103_v47  ;;  %v74_v40 = vld [vmem:[%s2695_s0 + $0x1c0] sm:$0xff]  ;;  %v2049_v47 = vld [vmem:[%s2694_s1 + $0x310] sm:$0xff]  }
  0x47   :  { %1325 = vmatprep.mubr.bf16.mxu1 %v105_v54  ;;  %v106_v41 = vpack.c.bf16 %v74_v40, %v58_v39  ;;  %v2053_v54 = vld [vmem:[%s2694_s1 + $0x318] sm:$0xff]  }
  0x48   :  { %1834 = vmatpush3.bf16.msra.mxu0 %v2013_v42  ;;  %v2047_v42 = vld [vmem:[%s2694_s1 + $0x350] sm:$0xff]  }
  0x49   :  { %1862 = vmatpush3.bf16.msra.mxu1 %v2014_v43  ;;  %1835 = vmatprep.subr.bf16.mxu0 %v2015_v50  ;;  %v2048_v43 = vld [vmem:[%s2694_s1 + $0x3d0] sm:$0xff]  }
  0x4a   :  { %1863 = vmatprep.subr.bf16.mxu1 %v2016_v51  ;;  %v76_v50 = vld [vmem:[%s2695_s0 + $0x1d0] sm:$0xff] }
  0x4b   :  { %1277 = vmatmul.mubr.bf16.gmra.mrb[12].mxu0 %v102_v49  ;;  %v60_v49 = vld [vmem:[%s2695_s0 + $0x150] sm:$0xff] }
  0x4c   :  { %1836 = vmatpush3.bf16.msra.mxu0 %v2017_v55  ;;  %1326 = vmatmul.mubr.bf16.gmra.mrb[12].mxu1 %v104_v59  ;;  %v108_v51 = vpack.c.bf16 %v76_v50, %v60_v49  ;;  %v2054_v55 = vld [vmem:[%s2694_s1 + $0x398] sm:$0xff]   ;;  %v2058_v59 = vld [vmem:[%s2694_s1 + $0x3a0] sm:$0xff]  }
  0x4d   :  { %1864 = vmatpush3.bf16.msra.mxu1 %v2018_v56  ;;  %1837 = vmatprep.subr.bf16.mxu0 %v2019_v60  ;;  %v2055_v56 = vld [vmem:[%s2694_s1 + $0x360] sm:$0xff]   ;;  %v2059_v60 = vld [vmem:[%s2694_s1 + $0x368] sm:$0xff]  }
  0x4e   :  { %1865 = vmatprep.subr.bf16.mxu1 %v2020_v61  ;;  %1366 = vmatprep.mubr.bf16.mxu0 %v91_v20  ;;  %v2060_v61 = vld [vmem:[%s2694_s1 + $0x3e8] sm:$0xff]   ;;  %v96_v20 = vpack.c.bf16 %v48_v18, %v32_v17 }
  0x4f   :  { %1415 = vmatprep.mubr.bf16.mxu1 %v93_v21  ;;  %v79_v21 = vld [vmem:[%s2695_s0 + $0x1e8] sm:$0xff] }
  0x50   :  { %1838 = vmatpush3.bf16.msra.mxu0 %v2021_v62  ;;  %v2061_v62 = vld [vmem:[%s2694_s1 + $0x328] sm:$0xff]   ;;  %v111_v24 = vpack.c.bf16 %v79_v21, %v63_v19 }
  0x51   :  { %1866 = vmatpush3.bf16.msra.mxu1 %v2022_v63  ;;  %1839 = vmatprep.subr.bf16.mxu0 %v2023_v0  ;;  %v2062_v63 = vld [vmem:[%s2694_s1 + $0x3a8] sm:$0xff]   ;;  %v2063_v0 = vld [vmem:[%s2694_s1 + $0x370] sm:$0xff]  }
  0x52   :  { %1867 = vmatprep.subr.bf16.mxu1 %v2024_v1  ;;  %v2064_v1 = vld [vmem:[%s2694_s1 + $0x3f0] sm:$0xff]  }
  0x54   :  { %1840 = vmatpush3.bf16.msra.mxu0 %v2025_v2  ;;  %v2065_v2 = vld [vmem:[%s2694_s1 + $0x330] sm:$0xff]  }
  0x55   :  { %1868 = vmatpush3.bf16.msra.mxu1 %v2026_v3  ;;  %1841 = vmatprep.subr.bf16.mxu0 %v2027_v4  ;;  %v2066_v3 = vld [vmem:[%s2694_s1 + $0x3b0] sm:$0xff]   ;;  %v2067_v4 = vld [vmem:[%s2694_s1 + $0x378] sm:$0xff]  }
  0x56   :  { %1869 = vmatprep.subr.bf16.mxu1 %v2028_v5  ;;  %v2068_v5 = vld [vmem:[%s2694_s1 + $0x3f8] sm:$0xff]  }
  0x58   :  { %1842 = vmatpush3.bf16.msra.mxu0 %v2029_v6  ;;  %v2069_v6 = vld [vmem:[%s2694_s1 + $0x338] sm:$0xff]  }
  0x59   :  { %1870 = vmatpush3.bf16.msra.mxu1 %v2030_v7  ;;  %1843 = vmatprep.subr.bf16.mxu0 %v2031_v8  ;;  %v2070_v7 = vld [vmem:[%s2694_s1 + $0x3b8] sm:$0xff]   ;;  %v31_v8 = vld [vmem:[%s2695_s0 + $0x68] sm:$0xff] }
  0x5a   :  { %1871 = vmatprep.subr.bf16.mxu1 %v2032_v9  ;;  %v47_v9 = vld [vmem:[%s2695_s0 + $0xe8] sm:$0xff] }
  0x5c   :  { %1844 = vmatpush3.bf16.msra.mxu0 %v2033_v10  ;;  %v33_v10 = vld [vmem:[%s2695_s0 + $0x78] sm:$0xff] }
  0x5d   :  { %1872 = vmatpush3.bf16.msra.mxu1 %v2034_v11  ;;  %1845 = vmatprep.subr.bf16.mxu0 %v2035_v12  ;;  %v95_v11 = vpack.c.bf16 %v47_v9, %v31_v8  ;;  %v49_v12 = vld [vmem:[%s2695_s0 + $0xf8] sm:$0xff] }
  0x5e   :  { %1873 = vmatprep.subr.bf16.mxu1 %v2036_v13  ;;  %v30_v13 = vld [vmem:[%s2695_s0 + $0x60] sm:$0xff] }
  0x60   :  { %1846 = vmatpush3.bf16.msra.mxu0 %v2037_v14  ;;  %v46_v14 = vld [vmem:[%s2695_s0 + $0xe0] sm:$0xff] }
  0x61   :  { %1874 = vmatpush3.bf16.msra.mxu1 %v2038_v15  ;;  %1887 = vmatprep.subr.bf16.mxu0 %v2039_v28  ;;  %v97_v15 = vpack.c.bf16 %v49_v12, %v33_v10  ;;  %v94_v16 = vpack.c.bf16 %v46_v14, %v30_v13  ;;  %v64_v28 = vld [vmem:[%s2695_s0 + $0x170] sm:$0xff] }
  0x62   :  { %1915 = vmatprep.subr.bf16.mxu1 %v2040_v29  ;;  %v80_v29 = vld [vmem:[%s2695_s0 + $0x1f0] sm:$0xff] }
  0x63   :  { %1367 = vmatmul.mubr.bf16.vlgmr.msra.gmra.mrb[16].mxu0 %v90_v25  ;;  %v113_v25 = vpack.c.bf16 %v81_v23, %v65_v22 }
  0x64   :  { %1416 = vmatmul.mubr.bf16.vlgmr.msra.gmra.mrb[16].mxu1 %v92_v27  ;;  %1888 = vmatpush3.bf16.msra.mxu0 %v2041_v30  ;;  %v78_v27 = vld [vmem:[%s2695_s0 + $0x1e0] sm:$0xff] }
  0x65   :  { %1916 = vmatpush3.bf16.msra.mxu1 %v2042_v31  ;;  %1889 = vmatprep.subr.bf16.mxu0 %v2043_v32  ;;  %v110_v30 = vpack.c.bf16 %v78_v27, %v62_v26  ;;  %v112_v31 = vpack.c.bf16 %v80_v29, %v64_v28 }
  0x66   :  { %1917 = vmatprep.subr.bf16.mxu1 %v2044_v33  ;;  %1374 = vmatprep.mubr.bf16.mxu0 %v107_v38 }
  0x67   :  { %1423 = vmatprep.mubr.bf16.mxu1 %v109_v46 }
  0x68   :  { %1890 = vmatpush3.bf16.msra.mxu0 %v2045_v34 }
  0x69   :  { %1918 = vmatpush3.bf16.msra.mxu1 %v2046_v35  ;;  %1891 = vmatprep.subr.bf16.mxu0 %v2047_v42 }
  0x6a   :  { %1919 = vmatprep.subr.bf16.mxu1 %v2048_v43 }
  0x6b   :  { %1375 = vmatmul.mubr.bf16.gmra.mrb[20].mxu0 %v106_v41 }
  0x6c   :  { %1892 = vmatpush3.bf16.msra.mxu0 %v2049_v47  ;;  %1424 = vmatmul.mubr.bf16.gmra.mrb[20].mxu1 %v108_v51 }
  0x6d   :  { %1920 = vmatpush3.bf16.msra.mxu1 %v2050_v48  ;;  %1893 = vmatprep.subr.bf16.mxu0 %v2051_v52 }
  0x6e   :  { %1921 = vmatprep.subr.bf16.mxu1 %v2052_v53  ;;  %1464 = vmatprep.mubr.bf16.mxu0 %v95_v11 }
  0x6f   :  { %1513 = vmatprep.mubr.bf16.mxu1 %v97_v15 }
  0x70   :  { %1894 = vmatpush3.bf16.msra.mxu0 %v2053_v54 }
  0x71   :  { %1922 = vmatpush3.bf16.msra.mxu1 %v2054_v55  ;;  %1895 = vmatprep.subr.bf16.mxu0 %v2055_v56 }
  0x72   :  { %1923 = vmatprep.subr.bf16.mxu1 %v2056_v57 }
  0x74   :  { %1896 = vmatpush3.bf16.msra.mxu0 %v2057_v58 }
  0x75   :  { %1924 = vmatpush3.bf16.msra.mxu1 %v2058_v59  ;;  %1897 = vmatprep.subr.bf16.mxu0 %v2059_v60 }
  0x76   :  { %1925 = vmatprep.subr.bf16.mxu1 %v2060_v61 }
  0x78   :  { %1898 = vmatpush3.bf16.msra.mxu0 %v2061_v62 }
  0x79   :  { %1926 = vmatpush3.bf16.msra.mxu1 %v2062_v63  ;;  %1899 = vmatprep.subr.bf16.mxu0 %v2063_v0 }
  0x7a   :  { %1927 = vmatprep.subr.bf16.mxu1 %v2064_v1 }
  0x7c   :  { %1900 = vmatpush3.bf16.msra.mxu0 %v2065_v2 }
  0x7d   :  { %1928 = vmatpush3.bf16.msra.mxu1 %v2066_v3  ;;  %1901 = vmatprep.subr.bf16.mxu0 %v2067_v4 }
  0x7e   :  { %1929 = vmatprep.subr.bf16.mxu1 %v2068_v5 }
  0x80   :  { %1902 = vmatpush3.bf16.msra.mxu0 %v2069_v6 }
  0x81   :  { %1930 = vmatpush3.bf16.msra.mxu1 %v2070_v7 }
  0x83   :  { %1465 = vmatmul.mubr.bf16.vlgmr.msra.gmra.mrb[24].mxu0 %v94_v16 }
  0x84   :  { %1514 = vmatmul.mubr.bf16.vlgmr.msra.gmra.mrb[24].mxu1 %v96_v20  ;;  %1472 = vmatprep.mubr.bf16.mxu0 %v111_v24 }
  0x85   :  { %1521 = vmatprep.mubr.bf16.mxu1 %v113_v25 }
  0x8b   :  { %1473 = vmatmul.mubr.bf16.gmra.mrb[28].mxu0 %v110_v30 }
  0x8c   :  { %1522 = vmatmul.mubr.bf16.gmra.mrb[28].mxu1 %v112_v31 }
  0xf6   :  { %v1735_v32 = vpop.f32.mrb[0].mxu0 }
  0xf7   :  { %v1763_v33 = vpop.f32.mrb[0].mxu1  ;;  %v1736_v34 = vpop.f32.mrb[1].mxu0 }
  0xf8   :  { %v1737_v35 = vadd.f32 %v1736_v34, %v1735_v32  ;;  %v1764_v36 = vpop.f32.mrb[1].mxu1  ;;  %v1738_v37 = vpop.f32.mrb[2].mxu0 }
  0xf9   :  { %v1765_v38 = vadd.f32 %v1764_v36, %v1763_v33  ;;  %v1766_v39 = vpop.f32.mrb[2].mxu1  ;;  %v1739_v40 = vpop.f32.mrb[3].mxu0 }
  0xfa   :  { %v1740_v41 = vadd.f32 %v1739_v40, %v1738_v37  ;;  %v1767_v42 = vpop.f32.mrb[3].mxu1 }
  0xfb   :  { %v1222_v43 = vadd.f32 %v1765_v38, %v1737_v35  ;;  %v1768_v44 = vadd.f32 %v1767_v42, %v1766_v39 }
  0xfd   :  { %v1225_v45 = vadd.f32 %v1768_v44, %v1740_v41 }
  0xfe   :  { %v1741_v46 = vpop.f32.mrb[4].mxu0 }
  0xff   :  { %v1769_v47 = vpop.f32.mrb[4].mxu1  ;;  %v1742_v48 = vpop.f32.mrb[5].mxu0 }
 0x100   :  { %v1743_v49 = vadd.f32 %v1742_v48, %v1741_v46  ;;  %v1770_v50 = vpop.f32.mrb[5].mxu1  ;;  %v1744_v51 = vpop.f32.mrb[6].mxu0 }
 0x101   :  { %v1771_v52 = vadd.f32 %v1770_v50, %v1769_v47  ;;  %v1772_v53 = vpop.f32.mrb[6].mxu1  ;;  %v1745_v54 = vpop.f32.mrb[7].mxu0 }
 0x102   :  { %v1746_v55 = vadd.f32 %v1745_v54, %v1744_v51  ;;  %v1773_v56 = vpop.f32.mrb[7].mxu1 }
 0x103   :  { %v1230_v57 = vadd.f32 %v1771_v52, %v1743_v49  ;;  %v1774_v58 = vadd.f32 %v1773_v56, %v1772_v53 }
 0x105   :  { %v1233_v59 = vadd.f32 %v1774_v58, %v1746_v55 }
 0x116   :  { %v1791_v60 = vpop.f32.mrb[8].mxu0 }
 0x117   :  { %v1819_v61 = vpop.f32.mrb[8].mxu1  ;;  %v1792_v62 = vpop.f32.mrb[9].mxu0 }
 0x118   :  { %v1820_v63 = vpop.f32.mrb[9].mxu1  ;;  %v1793_v0 = vadd.f32 %v1792_v62, %v1791_v60  ;;  %v1794_v2 = vpop.f32.mrb[10].mxu0 }
 0x119   :  { %v1821_v1 = vadd.f32 %v1820_v63, %v1819_v61  ;;  %v1822_v3 = vpop.f32.mrb[10].mxu1  ;;  %v1795_v4 = vpop.f32.mrb[11].mxu0 }
 0x11a   :  { %v1823_v5 = vpop.f32.mrb[11].mxu1  ;;  %v1271_v6 = vadd.f32 %v1793_v0, %v1222_v43  ;;  %v1796_v7 = vadd.f32 %v1795_v4, %v1794_v2 }
 0x11b   :  { %v1824_v8 = vadd.f32 %v1823_v5, %v1822_v3 }
 0x11c   :  { %v1320_v9 = vadd.f32 %v1821_v1, %v1271_v6  ;;  %v1274_v10 = vadd.f32 %v1796_v7, %v1225_v45 }
 0x11e   :  { %v1323_v11 = vadd.f32 %v1824_v8, %v1274_v10  ;;  %v1797_v12 = vpop.f32.mrb[12].mxu0  ;;  %v1709_v8 = vld [vmem:[%s2696_s2] ss:$0 sm:$0xff] }
 0x11f   :  { %v1798_v13 = vpop.f32.mrb[13].mxu0  ;;  %v1825_v19 = vpop.f32.mrb[12].mxu1 }
 0x120   :  { %v1799_v14 = vadd.f32 %v1798_v13, %v1797_v12  ;;  %v1800_v15 = vpop.f32.mrb[14].mxu0  ;;  %v1826_v21 = vpop.f32.mrb[13].mxu1  ;;  %v1710_v12 = vld [vmem:[%s2697_s3] ss:$0 sm:$0xff] }
 0x121   :  { %v1801_v16 = vpop.f32.mrb[15].mxu0  ;;  %v1827_v22 = vadd.f32 %v1826_v21, %v1825_v19  ;;  %v1828_v23 = vpop.f32.mrb[14].mxu1 }
 0x122   :  { %v1279_v17 = vadd.f32 %v1799_v14, %v1230_v57  ;;  %v1802_v18 = vadd.f32 %v1801_v16, %v1800_v15  ;;  %v1829_v24 = vpop.f32.mrb[15].mxu1 }
 0x123   :  { %v1830_v26 = vadd.f32 %v1829_v24, %v1828_v23 }
 0x124   :  { %v1282_v20 = vadd.f32 %v1802_v18, %v1233_v59  ;;  %v1328_v25 = vadd.f32 %v1827_v22, %v1279_v17 }
 0x126   :  { %v1331_v27 = vadd.f32 %v1830_v26, %v1282_v20 }
 0x136   :  { %v1847_v28 = vpop.f32.mrb[16].mxu0 }
 0x137   :  { %v1875_v29 = vpop.f32.mrb[16].mxu1  ;;  %v1848_v30 = vpop.f32.mrb[17].mxu0 }
 0x138   :  { %v1849_v31 = vadd.f32 %v1848_v30, %v1847_v28  ;;  %v1876_v32 = vpop.f32.mrb[17].mxu1  ;;  %v1850_v33 = vpop.f32.mrb[18].mxu0 }
 0x139   :  { %v1877_v34 = vadd.f32 %v1876_v32, %v1875_v29  ;;  %v1878_v35 = vpop.f32.mrb[18].mxu1  ;;  %v1851_v36 = vpop.f32.mrb[19].mxu0 }
 0x13a   :  { %v1369_v37 = vadd.f32 %v1849_v31, %v1320_v9  ;;  %v1852_v38 = vadd.f32 %v1851_v36, %v1850_v33  ;;  %v1879_v39 = vpop.f32.mrb[19].mxu1 }
 0x13b   :  { %v1880_v40 = vadd.f32 %v1879_v39, %v1878_v35 }
 0x13c   :  { %v1418_v41 = vadd.f32 %v1877_v34, %v1369_v37  ;;  %v1372_v42 = vadd.f32 %v1852_v38, %v1323_v11 }
 0x13e   :  { %v1421_v43 = vadd.f32 %v1880_v40, %v1372_v42  ;;  %v1853_v44 = vpop.f32.mrb[20].mxu0 }
 0x13f   :  { %v1854_v45 = vpop.f32.mrb[21].mxu0  ;;  %v1881_v51 = vpop.f32.mrb[20].mxu1 }
 0x140   :  { %v1855_v46 = vadd.f32 %v1854_v45, %v1853_v44  ;;  %v1856_v47 = vpop.f32.mrb[22].mxu0  ;;  %v1882_v53 = vpop.f32.mrb[21].mxu1 }
 0x141   :  { %v1857_v48 = vpop.f32.mrb[23].mxu0  ;;  %v1883_v54 = vadd.f32 %v1882_v53, %v1881_v51  ;;  %v1884_v55 = vpop.f32.mrb[22].mxu1 }
 0x142   :  { %v1377_v49 = vadd.f32 %v1855_v46, %v1328_v25  ;;  %v1858_v50 = vadd.f32 %v1857_v48, %v1856_v47  ;;  %v1885_v56 = vpop.f32.mrb[23].mxu1 }
 0x143   :  { %v1886_v58 = vadd.f32 %v1885_v56, %v1884_v55 }
 0x144   :  { %v1380_v52 = vadd.f32 %v1858_v50, %v1331_v27  ;;  %v1426_v57 = vadd.f32 %v1883_v54, %v1377_v49 }
 0x146   :  { %v1429_v59 = vadd.f32 %v1886_v58, %v1380_v52 }
 0x156   :  { %v1903_v60 = vpop.f32.mrb[24].mxu0 }
 0x157   :  { %v1931_v61 = vpop.f32.mrb[24].mxu1  ;;  %v1904_v62 = vpop.f32.mrb[25].mxu0 }
 0x158   :  { %v1905_v63 = vadd.f32 %v1904_v62, %v1903_v60  ;;  %v1932_v0 = vpop.f32.mrb[25].mxu1  ;;  %v1906_v1 = vpop.f32.mrb[26].mxu0 }
 0x159   :  { %v1933_v2 = vadd.f32 %v1932_v0, %v1931_v61  ;;  %v1934_v3 = vpop.f32.mrb[26].mxu1  ;;  %v1907_v4 = vpop.f32.mrb[27].mxu0 }
 0x15a   :  { %v1467_v5 = vadd.f32 %v1905_v63, %v1418_v41  ;;  %v1908_v6 = vadd.f32 %v1907_v4, %v1906_v1  ;;  %v1935_v7 = vpop.f32.mrb[27].mxu1 }
 0x15b   :  { %v1936_v9 = vadd.f32 %v1935_v7, %v1934_v3 }
 0x15c   :  { %v1516_v10 = vadd.f32 %v1933_v2, %v1467_v5  ;;  %v1470_v11 = vadd.f32 %v1908_v6, %v1421_v43 }
 0x15e   :  { %v1537_v13 = vmul.f32 %v1709_v8, %v1516_v10  ;;  %v1519_v14 = vadd.f32 %v1936_v9, %v1470_v11  ;;  %v1909_v15 = vpop.f32.mrb[28].mxu0 }
 0x15f   :  { %v1937_v16 = vpop.f32.mrb[28].mxu1  ;;  %v1910_v17 = vpop.f32.mrb[29].mxu0 }
 0x160   :  { %v1548_v18 = vadd.f32 %v1710_v12, %v1537_v13  ;;  %v1538_v19 = vmul.f32 %v1709_v8, %v1519_v14  ;;  %v1911_v20 = vadd.f32 %v1910_v17, %v1909_v15  ;;  %v1938_v21 = vpop.f32.mrb[29].mxu1  ;;  %v1912_v22 = vpop.f32.mrb[30].mxu0 }
 0x161   :  { %v1939_v23 = vadd.f32 %v1938_v21, %v1937_v16  ;;  %v1940_v24 = vpop.f32.mrb[30].mxu1  ;;  %v1913_v25 = vpop.f32.mrb[31].mxu0 }
 0x162   :  { %v1552_v26 = vmax.f32 %v1548_v18, 0.0  ;;  %v1549_v27 = vadd.f32 %v1710_v12, %v1538_v19  ;;  %v1475_v28 = vadd.f32 %v1911_v20, %v1426_v57  ;;  %v1914_v29 = vadd.f32 %v1913_v25, %v1912_v22  ;;  %v1941_v30 = vpop.f32.mrb[31].mxu1 }
 0x163   :  { %v1942_v31 = vadd.f32 %v1941_v30, %v1940_v24 }
 0x164   :  { %v1715_v32 = vpack.c.bf16 %v1552_v26, %v1552_v26  ;;  %v1553_v33 = vmax.f32 %v1549_v27, 0.0  ;;  %v1524_v34 = vadd.f32 %v1939_v23, %v1475_v28  ;;  %v1478_v35 = vadd.f32 %v1914_v29, %v1429_v59 }
 0x166   :  { %1573 = vst.msk [vmem:[%s2698_s4] sm:$0xf] %vm1572_vm0, %v1715_v32  ;;  %v1716_v36 = vpack.c.bf16 %v1553_v33, %v1553_v33  ;;  %v1539_v37 = vmul.f32 %v1709_v8, %v1524_v34  ;;  %v1527_v38 = vadd.f32 %v1942_v31, %v1478_v35 }
 0x168   :  { %1574 = vst.msk [vmem:[%s2698_s4 + $0x4] sm:$0xf] %vm1572_vm0, %v1716_v36  ;;  %v1550_v39 = vadd.f32 %v1710_v12, %v1539_v37  ;;  %v1540_v40 = vmul.f32 %v1709_v8, %v1527_v38 }
 0x16a   :  { %v1554_v41 = vmax.f32 %v1550_v39, 0.0  ;;  %v1551_v42 = vadd.f32 %v1710_v12, %v1540_v40 }
 0x16c   :  { %v1717_v43 = vpack.c.bf16 %v1554_v41, %v1554_v41  ;;  %v1555_v44 = vmax.f32 %v1551_v42, 0.0 }
 0x16e   :  { %1575 = vst.msk [vmem:[%s2698_s4 + $0x8] sm:$0xf] %vm1572_vm0, %v1717_v43  ;;  %v1718_v45 = vpack.c.bf16 %v1555_v44, %v1555_v44 }
 0x170   :  { %1576 = vst.msk [vmem:[%s2698_s4 + $0xc] sm:$0xf] %vm1572_vm0, %v1718_v45 }

</bundles_post_ra>
